<compile_context>
chip_gen: v5e
topology: v5e:2x2
jax: 0.10.0
libtpu: 0.0.40
codegen_flags: <defaults>
</compile_context>

<pallas_src>
import functools

import jax
import jax.numpy as jnp
from jax.experimental import pallas as pl
from jax.experimental.pallas import tpu as pltpu


def _bn_relu(y):
    """BatchNorm2d(eps=0, affine=False, batch stats, biased var) + ReLU.

    `y` is f32 [M, F]; statistics are per channel (column) over all M rows.
    The centered activation is computed once and reused for variance and
    normalization (saves one full pass over the activation).
    """
    mean = jnp.mean(y, axis=0, keepdims=True)
    centered = y - mean
    var = jnp.mean(centered * centered, axis=0, keepdims=True)
    # eps = 0 exactly as in the reference module (constant channels -> NaN there too).
    return jnp.maximum(centered * jax.lax.rsqrt(var), 0.0)


def _shared_mlp(x, w_ref, b_ref):
    """SharedMLP2D on the flattened [M, Fin] layout.

    Conv2d(in=1, out=Fout, kernel=(1, Fin)) == x @ W + b with W: [Fin, Fout].
    bf16 matmul inputs, f32 MXU accumulation, f32 BatchNorm.
    """
    y = jnp.dot(x.astype(jnp.bfloat16), w_ref[...],
                preferred_element_type=jnp.float32) + b_ref[...]
    return _bn_relu(y)


def _pointnet_kernel(B, N,
                     x_ref,
                     w1_ref, b1_ref, w11_ref, b11_ref,
                     w2_ref, b2_ref, w3_ref, b3_ref,
                     w4p_ref, w4g_ref, b4_ref,
                     w5_ref, b5_ref, w6_ref, b6_ref,
                     wp_ref, bp_ref,
                     out_ref):
    M = B * N
    x = x_ref[...]                                               # [M, Fin] f32

    x1 = _shared_mlp(x, w1_ref, b1_ref)                          # [M, 64]
    pointwise = _shared_mlp(x1, w11_ref, b11_ref)                # [M, 64]
    x2 = _shared_mlp(pointwise, w2_ref, b2_ref)                  # [M, 128]
    x3 = _shared_mlp(x2, w3_ref, b3_ref)                         # [M, 1024]

    # Global feature: per-batch max over points -> only B distinct rows.
    f3 = x3.shape[1]
    gmax = jnp.max(x3.reshape(B, N, f3), axis=1)                 # [B, 1024]

    # torch.cat((pointwise, global), -1) @ W4 == pointwise @ W4[:64] + global @ W4[64:]
    # The global branch only needs B rows of MXU work plus a broadcast add.
    g4 = jnp.dot(gmax.astype(jnp.bfloat16), w4g_ref[...],
                 preferred_element_type=jnp.float32) + b4_ref[...]       # [B, 512]
    y4p = jnp.dot(pointwise.astype(jnp.bfloat16), w4p_ref[...],
                  preferred_element_type=jnp.float32)                    # [M, 512]
    f4 = y4p.shape[1]
    y4 = (y4p.reshape(B, N, f4) + g4[:, None, :]).reshape(M, f4)         # [M, 512]
    x4 = _bn_relu(y4)                                            # [M, 512]

    x5 = _shared_mlp(x4, w5_ref, b5_ref)                         # [M, 256]
    x6 = _shared_mlp(x5, w6_ref, b6_ref)                         # [M, 128]

    # Final prediction layer with channels zero-padded to a multiple of 128 so
    # the store below is lane-dense.  Padded channels normalize to 0*rsqrt(0)=NaN
    # but are discarded by the wrapper slice and never affect real channels
    # (BatchNorm statistics are per channel).
    yp = _shared_mlp(x6, wp_ref, bp_ref)                         # [M, Cpad]
    out_ref[...] = yp


def init_params(key, in_features, predicted_cls):
    """Deterministic synthetic parameters (Conv2d-style uniform(+-1/sqrt(fan_in)))."""
    dims = [(in_features, 64), (64, 64), (64, 128), (128, 1024),
            (1088, 512), (512, 256), (256, 128), (128, predicted_cls)]
    names = ["1", "11", "2", "3", "4", "5", "6", "p"]
    params = {}
    for (fin, fout), name in zip(dims, names):
        key, kw, kb = jax.random.split(key, 3)
        bound = 1.0 / float(fin) ** 0.5
        params["w" + name] = jax.random.uniform(
            kw, (fin, fout), jnp.float32, -bound, bound)
        params["b" + name] = jax.random.uniform(
            kb, (1, fout), jnp.float32, -bound, bound)
    return params


def prepare_params(params, predicted_cls):
    """Kernel-ready params: bf16 weights (f32 biases), W4 split into the
    pointwise-feature rows (first 64) and global-feature rows (last 1024),
    and the final layer zero-padded to a multiple-of-128 channel count."""
    p = {}
    for name in ["1", "11", "2", "3", "5", "6"]:
        p["w" + name] = params["w" + name].astype(jnp.bfloat16)
        p["b" + name] = params["b" + name]
    w4 = params["w4"]
    p["w4p"] = w4[:64].astype(jnp.bfloat16)
    p["w4g"] = w4[64:].astype(jnp.bfloat16)
    p["b4"] = params["b4"]

    c_pad = max(128, ((predicted_cls + 127) // 128) * 128)
    wp = jnp.zeros((params["wp"].shape[0], c_pad), jnp.float32)
    wp = wp.at[:, :predicted_cls].set(params["wp"])
    bp = jnp.zeros((1, c_pad), jnp.float32).at[:, :predicted_cls].set(params["bp"])
    p["wp"] = wp.astype(jnp.bfloat16)
    p["bp"] = bp
    return p


def pointnet_segmentation_2d(x, kparams, *, predicted_cls):
    """x: [B, 1, N, in_features] (PyTorch NCHW).  Returns [B, predicted_cls, N]."""
    B, _, N, fin = x.shape
    assert N % 8 == 0, "point_num must be a multiple of 8 for clean (8,128) tiling"
    M = B * N
    c_pad = kparams["wp"].shape[1]
    x2d = x.reshape(M, fin)                                      # glue reshape

    args = (x2d,
            kparams["w1"], kparams["b1"], kparams["w11"], kparams["b11"],
            kparams["w2"], kparams["b2"], kparams["w3"], kparams["b3"],
            kparams["w4p"], kparams["w4g"], kparams["b4"],
            kparams["w5"], kparams["b5"], kparams["w6"], kparams["b6"],
            kparams["wp"], kparams["bp"])

    vmem = pl.BlockSpec(memory_space=pltpu.MemorySpace.VMEM)
    yp = pl.pallas_call(
        functools.partial(_pointnet_kernel, B, N),
        out_shape=jax.ShapeDtypeStruct((M, c_pad), jnp.float32),
        in_specs=[vmem] * len(args),
        out_specs=vmem,
        compiler_params=pltpu.CompilerParams(
            vmem_limit_bytes=48 * 1024 * 1024),
    )(*args)

    # y_predicted.squeeze().permute(0, 2, 1): [M, Cpad] -> [B, N, C] -> [B, C, N]
    return yp[:, :predicted_cls].reshape(B, N, predicted_cls).transpose(0, 2, 1)


if __name__ == "__main__":
    B, N, IN_FEATURES, PREDICTED_CLS = 2, 16, 4, 8
    key = jax.random.PRNGKey(0)
    kx, kp = jax.random.split(key)
    x = jax.random.normal(kx, (B, 1, N, IN_FEATURES), jnp.float32)
    params = init_params(kp, IN_FEATURES, PREDICTED_CLS)
    kparams = prepare_params(params, PREDICTED_CLS)

    y = pointnet_segmentation_2d(x, kparams, predicted_cls=PREDICTED_CLS)
    jax.block_until_ready(y)
    assert y.shape == (B, PREDICTED_CLS, N), y.shape
    print("KERNEL_OK")
</pallas_src>

<mosaic_0001>
module attributes {stable_mosaic.version = 11 : i64} {
  func.func @_pointnet_kernel(%arg0: memref<32x4xf32, #tpu.memory_space<vmem>>, %arg1: memref<4x64xbf16, #tpu.memory_space<vmem>>, %arg2: memref<1x64xf32, #tpu.memory_space<vmem>>, %arg3: memref<64x64xbf16, #tpu.memory_space<vmem>>, %arg4: memref<1x64xf32, #tpu.memory_space<vmem>>, %arg5: memref<64x128xbf16, #tpu.memory_space<vmem>>, %arg6: memref<1x128xf32, #tpu.memory_space<vmem>>, %arg7: memref<128x1024xbf16, #tpu.memory_space<vmem>>, %arg8: memref<1x1024xf32, #tpu.memory_space<vmem>>, %arg9: memref<64x512xbf16, #tpu.memory_space<vmem>>, %arg10: memref<1024x512xbf16, #tpu.memory_space<vmem>>, %arg11: memref<1x512xf32, #tpu.memory_space<vmem>>, %arg12: memref<512x256xbf16, #tpu.memory_space<vmem>>, %arg13: memref<1x256xf32, #tpu.memory_space<vmem>>, %arg14: memref<256x128xbf16, #tpu.memory_space<vmem>>, %arg15: memref<1x128xf32, #tpu.memory_space<vmem>>, %arg16: memref<128x128xbf16, #tpu.memory_space<vmem>>, %arg17: memref<1x128xf32, #tpu.memory_space<vmem>>, %arg18: memref<32x128xf32, #tpu.memory_space<vmem>>) attributes {dimension_semantics = [], scalar_prefetch = 0 : i64, scratch_operands = 0 : i64, tpu.core_type = #tpu.core_type<tc>} {
    %c0 = arith.constant 0 : index
    %c0_0 = arith.constant 0 : index
    %0 = vector.load %arg0[%c0, %c0_0] : memref<32x4xf32, #tpu.memory_space<vmem>>, vector<32x4xf32>
    %1 = arith.truncf %0 : vector<32x4xf32> to vector<32x4xbf16>
    %c0_1 = arith.constant 0 : index
    %c0_2 = arith.constant 0 : index
    %2 = vector.load %arg1[%c0_1, %c0_2] : memref<4x64xbf16, #tpu.memory_space<vmem>>, vector<4x64xbf16>
    %cst = arith.constant dense<0.000000e+00> : vector<32x64xf32>
    %3 = tpu.matmul %1, %2, %cst {dimension_numbers = #tpu.dot_dimension_numbers<[1], [0], [0], [1], [0, 0, 1, 1], [], []>} : vector<32x4xbf16>, vector<4x64xbf16>, vector<32x64xf32> -> vector<32x64xf32>
    %c0_3 = arith.constant 0 : index
    %c0_4 = arith.constant 0 : index
    %4 = vector.load %arg2[%c0_3, %c0_4] : memref<1x64xf32, #tpu.memory_space<vmem>>, vector<1x64xf32>
    %5 = vector.broadcast %4 : vector<1x64xf32> to vector<32x64xf32>
    %6 = arith.addf %3, %5 : vector<32x64xf32>
    %cst_5 = arith.constant dense<0.000000e+00> : vector<64xf32>
    %7 = vector.multi_reduction <add>, %6, %cst_5 [0] : vector<32x64xf32> to vector<64xf32>
    %8 = vector.shape_cast %7 : vector<64xf32> to vector<1x64xf32>
    %cst_6 = arith.constant 3.200000e+01 : f32
    %9 = vector.broadcast %cst_6 : f32 to vector<1x64xf32>
    %10 = arith.divf %8, %9 : vector<1x64xf32>
    %11 = vector.broadcast %10 : vector<1x64xf32> to vector<32x64xf32>
    %12 = arith.subf %6, %11 : vector<32x64xf32>
    %13 = arith.mulf %12, %12 : vector<32x64xf32>
    %cst_7 = arith.constant dense<0.000000e+00> : vector<64xf32>
    %14 = vector.multi_reduction <add>, %13, %cst_7 [0] : vector<32x64xf32> to vector<64xf32>
    %15 = vector.shape_cast %14 : vector<64xf32> to vector<1x64xf32>
    %cst_8 = arith.constant 3.200000e+01 : f32
    %16 = vector.broadcast %cst_8 : f32 to vector<1x64xf32>
    %17 = arith.divf %15, %16 : vector<1x64xf32>
    %18 = math.rsqrt %17 : vector<1x64xf32>
    %19 = vector.broadcast %18 : vector<1x64xf32> to vector<32x64xf32>
    %20 = arith.mulf %12, %19 : vector<32x64xf32>
    %cst_9 = arith.constant 0.000000e+00 : f32
    %21 = vector.broadcast %cst_9 : f32 to vector<32x64xf32>
    %22 = arith.maximumf %20, %21 : vector<32x64xf32>
    %23 = arith.truncf %22 : vector<32x64xf32> to vector<32x64xbf16>
    %c0_10 = arith.constant 0 : index
    %c0_11 = arith.constant 0 : index
    %24 = vector.load %arg3[%c0_10, %c0_11] : memref<64x64xbf16, #tpu.memory_space<vmem>>, vector<64x64xbf16>
    %cst_12 = arith.constant dense<0.000000e+00> : vector<32x64xf32>
    %25 = tpu.matmul %23, %24, %cst_12 {dimension_numbers = #tpu.dot_dimension_numbers<[1], [0], [0], [1], [0, 0, 1, 1], [], []>} : vector<32x64xbf16>, vector<64x64xbf16>, vector<32x64xf32> -> vector<32x64xf32>
    %c0_13 = arith.constant 0 : index
    %c0_14 = arith.constant 0 : index
    %26 = vector.load %arg4[%c0_13, %c0_14] : memref<1x64xf32, #tpu.memory_space<vmem>>, vector<1x64xf32>
    %27 = vector.broadcast %26 : vector<1x64xf32> to vector<32x64xf32>
    %28 = arith.addf %25, %27 : vector<32x64xf32>
    %cst_15 = arith.constant dense<0.000000e+00> : vector<64xf32>
    %29 = vector.multi_reduction <add>, %28, %cst_15 [0] : vector<32x64xf32> to vector<64xf32>
    %30 = vector.shape_cast %29 : vector<64xf32> to vector<1x64xf32>
    %cst_16 = arith.constant 3.200000e+01 : f32
    %31 = vector.broadcast %cst_16 : f32 to vector<1x64xf32>
    %32 = arith.divf %30, %31 : vector<1x64xf32>
    %33 = vector.broadcast %32 : vector<1x64xf32> to vector<32x64xf32>
    %34 = arith.subf %28, %33 : vector<32x64xf32>
    %35 = arith.mulf %34, %34 : vector<32x64xf32>
    %cst_17 = arith.constant dense<0.000000e+00> : vector<64xf32>
    %36 = vector.multi_reduction <add>, %35, %cst_17 [0] : vector<32x64xf32> to vector<64xf32>
    %37 = vector.shape_cast %36 : vector<64xf32> to vector<1x64xf32>
    %cst_18 = arith.constant 3.200000e+01 : f32
    %38 = vector.broadcast %cst_18 : f32 to vector<1x64xf32>
    %39 = arith.divf %37, %38 : vector<1x64xf32>
    %40 = math.rsqrt %39 : vector<1x64xf32>
    %41 = vector.broadcast %40 : vector<1x64xf32> to vector<32x64xf32>
    %42 = arith.mulf %34, %41 : vector<32x64xf32>
    %cst_19 = arith.constant 0.000000e+00 : f32
    %43 = vector.broadcast %cst_19 : f32 to vector<32x64xf32>
    %44 = arith.maximumf %42, %43 : vector<32x64xf32>
    %45 = arith.truncf %44 : vector<32x64xf32> to vector<32x64xbf16>
    %c0_20 = arith.constant 0 : index
    %c0_21 = arith.constant 0 : index
    %46 = vector.load %arg5[%c0_20, %c0_21] : memref<64x128xbf16, #tpu.memory_space<vmem>>, vector<64x128xbf16>
    %cst_22 = arith.constant dense<0.000000e+00> : vector<32x128xf32>
    %47 = tpu.matmul %45, %46, %cst_22 {dimension_numbers = #tpu.dot_dimension_numbers<[1], [0], [0], [1], [0, 0, 1, 1], [], []>} : vector<32x64xbf16>, vector<64x128xbf16>, vector<32x128xf32> -> vector<32x128xf32>
    %c0_23 = arith.constant 0 : index
    %c0_24 = arith.constant 0 : index
    %48 = vector.load %arg6[%c0_23, %c0_24] : memref<1x128xf32, #tpu.memory_space<vmem>>, vector<1x128xf32>
    %49 = vector.broadcast %48 : vector<1x128xf32> to vector<32x128xf32>
    %50 = arith.addf %47, %49 : vector<32x128xf32>
    %cst_25 = arith.constant dense<0.000000e+00> : vector<128xf32>
    %51 = vector.multi_reduction <add>, %50, %cst_25 [0] : vector<32x128xf32> to vector<128xf32>
    %52 = vector.shape_cast %51 : vector<128xf32> to vector<1x128xf32>
    %cst_26 = arith.constant 3.200000e+01 : f32
    %53 = vector.broadcast %cst_26 : f32 to vector<1x128xf32>
    %54 = arith.divf %52, %53 : vector<1x128xf32>
    %55 = vector.broadcast %54 : vector<1x128xf32> to vector<32x128xf32>
    %56 = arith.subf %50, %55 : vector<32x128xf32>
    %57 = arith.mulf %56, %56 : vector<32x128xf32>
    %cst_27 = arith.constant dense<0.000000e+00> : vector<128xf32>
    %58 = vector.multi_reduction <add>, %57, %cst_27 [0] : vector<32x128xf32> to vector<128xf32>
    %59 = vector.shape_cast %58 : vector<128xf32> to vector<1x128xf32>
    %cst_28 = arith.constant 3.200000e+01 : f32
    %60 = vector.broadcast %cst_28 : f32 to vector<1x128xf32>
    %61 = arith.divf %59, %60 : vector<1x128xf32>
    %62 = math.rsqrt %61 : vector<1x128xf32>
    %63 = vector.broadcast %62 : vector<1x128xf32> to vector<32x128xf32>
    %64 = arith.mulf %56, %63 : vector<32x128xf32>
    %cst_29 = arith.constant 0.000000e+00 : f32
    %65 = vector.broadcast %cst_29 : f32 to vector<32x128xf32>
    %66 = arith.maximumf %64, %65 : vector<32x128xf32>
    %67 = arith.truncf %66 : vector<32x128xf32> to vector<32x128xbf16>
    %c0_30 = arith.constant 0 : index
    %c0_31 = arith.constant 0 : index
    %68 = vector.load %arg7[%c0_30, %c0_31] : memref<128x1024xbf16, #tpu.memory_space<vmem>>, vector<128x1024xbf16>
    %cst_32 = arith.constant dense<0.000000e+00> : vector<32x1024xf32>
    %69 = tpu.matmul %67, %68, %cst_32 {dimension_numbers = #tpu.dot_dimension_numbers<[1], [0], [0], [1], [0, 0, 1, 1], [], []>} : vector<32x128xbf16>, vector<128x1024xbf16>, vector<32x1024xf32> -> vector<32x1024xf32>
    %c0_33 = arith.constant 0 : index
    %c0_34 = arith.constant 0 : index
    %70 = vector.load %arg8[%c0_33, %c0_34] : memref<1x1024xf32, #tpu.memory_space<vmem>>, vector<1x1024xf32>
    %71 = vector.broadcast %70 : vector<1x1024xf32> to vector<32x1024xf32>
    %72 = arith.addf %69, %71 : vector<32x1024xf32>
    %cst_35 = arith.constant dense<0.000000e+00> : vector<1024xf32>
    %73 = vector.multi_reduction <add>, %72, %cst_35 [0] : vector<32x1024xf32> to vector<1024xf32>
    %74 = vector.shape_cast %73 : vector<1024xf32> to vector<1x1024xf32>
    %cst_36 = arith.constant 3.200000e+01 : f32
    %75 = vector.broadcast %cst_36 : f32 to vector<1x1024xf32>
    %76 = arith.divf %74, %75 : vector<1x1024xf32>
    %77 = vector.broadcast %76 : vector<1x1024xf32> to vector<32x1024xf32>
    %78 = arith.subf %72, %77 : vector<32x1024xf32>
    %79 = arith.mulf %78, %78 : vector<32x1024xf32>
    %cst_37 = arith.constant dense<0.000000e+00> : vector<1024xf32>
    %80 = vector.multi_reduction <add>, %79, %cst_37 [0] : vector<32x1024xf32> to vector<1024xf32>
    %81 = vector.shape_cast %80 : vector<1024xf32> to vector<1x1024xf32>
    %cst_38 = arith.constant 3.200000e+01 : f32
    %82 = vector.broadcast %cst_38 : f32 to vector<1x1024xf32>
    %83 = arith.divf %81, %82 : vector<1x1024xf32>
    %84 = math.rsqrt %83 : vector<1x1024xf32>
    %85 = vector.broadcast %84 : vector<1x1024xf32> to vector<32x1024xf32>
    %86 = arith.mulf %78, %85 : vector<32x1024xf32>
    %cst_39 = arith.constant 0.000000e+00 : f32
    %87 = vector.broadcast %cst_39 : f32 to vector<32x1024xf32>
    %88 = arith.maximumf %86, %87 : vector<32x1024xf32>
    %89 = vector.shape_cast %88 : vector<32x1024xf32> to vector<2x16x1024xf32>
    %cst_40 = arith.constant dense<0xFF800000> : vector<2x1024xf32>
    %90 = vector.multi_reduction <maximumf>, %89, %cst_40 [1] : vector<2x16x1024xf32> to vector<2x1024xf32>
    %91 = arith.truncf %90 : vector<2x1024xf32> to vector<2x1024xbf16>
    %c0_41 = arith.constant 0 : index
    %c0_42 = arith.constant 0 : index
    %92 = vector.load %arg10[%c0_41, %c0_42] : memref<1024x512xbf16, #tpu.memory_space<vmem>>, vector<1024x512xbf16>
    %cst_43 = arith.constant dense<0.000000e+00> : vector<2x512xf32>
    %93 = tpu.matmul %91, %92, %cst_43 {dimension_numbers = #tpu.dot_dimension_numbers<[1], [0], [0], [1], [0, 0, 1, 1], [], []>} : vector<2x1024xbf16>, vector<1024x512xbf16>, vector<2x512xf32> -> vector<2x512xf32>
    %c0_44 = arith.constant 0 : index
    %c0_45 = arith.constant 0 : index
    %94 = vector.load %arg11[%c0_44, %c0_45] : memref<1x512xf32, #tpu.memory_space<vmem>>, vector<1x512xf32>
    %95 = vector.broadcast %94 : vector<1x512xf32> to vector<2x512xf32>
    %96 = arith.addf %93, %95 : vector<2x512xf32>
    %97 = arith.truncf %44 : vector<32x64xf32> to vector<32x64xbf16>
    %c0_46 = arith.constant 0 : index
    %c0_47 = arith.constant 0 : index
    %98 = vector.load %arg9[%c0_46, %c0_47] : memref<64x512xbf16, #tpu.memory_space<vmem>>, vector<64x512xbf16>
    %cst_48 = arith.constant dense<0.000000e+00> : vector<32x512xf32>
    %99 = tpu.matmul %97, %98, %cst_48 {dimension_numbers = #tpu.dot_dimension_numbers<[1], [0], [0], [1], [0, 0, 1, 1], [], []>} : vector<32x64xbf16>, vector<64x512xbf16>, vector<32x512xf32> -> vector<32x512xf32>
    %100 = vector.shape_cast %99 : vector<32x512xf32> to vector<2x16x512xf32>
    %101 = vector.shape_cast %96 : vector<2x512xf32> to vector<2x1x512xf32>
    %102 = vector.broadcast %101 : vector<2x1x512xf32> to vector<2x16x512xf32>
    %103 = arith.addf %100, %102 : vector<2x16x512xf32>
    %104 = vector.shape_cast %103 : vector<2x16x512xf32> to vector<32x512xf32>
    %cst_49 = arith.constant dense<0.000000e+00> : vector<512xf32>
    %105 = vector.multi_reduction <add>, %104, %cst_49 [0] : vector<32x512xf32> to vector<512xf32>
    %106 = vector.shape_cast %105 : vector<512xf32> to vector<1x512xf32>
    %cst_50 = arith.constant 3.200000e+01 : f32
    %107 = vector.broadcast %cst_50 : f32 to vector<1x512xf32>
    %108 = arith.divf %106, %107 : vector<1x512xf32>
    %109 = vector.broadcast %108 : vector<1x512xf32> to vector<32x512xf32>
    %110 = arith.subf %104, %109 : vector<32x512xf32>
    %111 = arith.mulf %110, %110 : vector<32x512xf32>
    %cst_51 = arith.constant dense<0.000000e+00> : vector<512xf32>
    %112 = vector.multi_reduction <add>, %111, %cst_51 [0] : vector<32x512xf32> to vector<512xf32>
    %113 = vector.shape_cast %112 : vector<512xf32> to vector<1x512xf32>
    %cst_52 = arith.constant 3.200000e+01 : f32
    %114 = vector.broadcast %cst_52 : f32 to vector<1x512xf32>
    %115 = arith.divf %113, %114 : vector<1x512xf32>
    %116 = math.rsqrt %115 : vector<1x512xf32>
    %117 = vector.broadcast %116 : vector<1x512xf32> to vector<32x512xf32>
    %118 = arith.mulf %110, %117 : vector<32x512xf32>
    %cst_53 = arith.constant 0.000000e+00 : f32
    %119 = vector.broadcast %cst_53 : f32 to vector<32x512xf32>
    %120 = arith.maximumf %118, %119 : vector<32x512xf32>
    %121 = arith.truncf %120 : vector<32x512xf32> to vector<32x512xbf16>
    %c0_54 = arith.constant 0 : index
    %c0_55 = arith.constant 0 : index
    %122 = vector.load %arg12[%c0_54, %c0_55] : memref<512x256xbf16, #tpu.memory_space<vmem>>, vector<512x256xbf16>
    %cst_56 = arith.constant dense<0.000000e+00> : vector<32x256xf32>
    %123 = tpu.matmul %121, %122, %cst_56 {dimension_numbers = #tpu.dot_dimension_numbers<[1], [0], [0], [1], [0, 0, 1, 1], [], []>} : vector<32x512xbf16>, vector<512x256xbf16>, vector<32x256xf32> -> vector<32x256xf32>
    %c0_57 = arith.constant 0 : index
    %c0_58 = arith.constant 0 : index
    %124 = vector.load %arg13[%c0_57, %c0_58] : memref<1x256xf32, #tpu.memory_space<vmem>>, vector<1x256xf32>
    %125 = vector.broadcast %124 : vector<1x256xf32> to vector<32x256xf32>
    %126 = arith.addf %123, %125 : vector<32x256xf32>
    %cst_59 = arith.constant dense<0.000000e+00> : vector<256xf32>
    %127 = vector.multi_reduction <add>, %126, %cst_59 [0] : vector<32x256xf32> to vector<256xf32>
    %128 = vector.shape_cast %127 : vector<256xf32> to vector<1x256xf32>
    %cst_60 = arith.constant 3.200000e+01 : f32
    %129 = vector.broadcast %cst_60 : f32 to vector<1x256xf32>
    %130 = arith.divf %128, %129 : vector<1x256xf32>
    %131 = vector.broadcast %130 : vector<1x256xf32> to vector<32x256xf32>
    %132 = arith.subf %126, %131 : vector<32x256xf32>
    %133 = arith.mulf %132, %132 : vector<32x256xf32>
    %cst_61 = arith.constant dense<0.000000e+00> : vector<256xf32>
    %134 = vector.multi_reduction <add>, %133, %cst_61 [0] : vector<32x256xf32> to vector<256xf32>
    %135 = vector.shape_cast %134 : vector<256xf32> to vector<1x256xf32>
    %cst_62 = arith.constant 3.200000e+01 : f32
    %136 = vector.broadcast %cst_62 : f32 to vector<1x256xf32>
    %137 = arith.divf %135, %136 : vector<1x256xf32>
    %138 = math.rsqrt %137 : vector<1x256xf32>
    %139 = vector.broadcast %138 : vector<1x256xf32> to vector<32x256xf32>
    %140 = arith.mulf %132, %139 : vector<32x256xf32>
    %cst_63 = arith.constant 0.000000e+00 : f32
    %141 = vector.broadcast %cst_63 : f32 to vector<32x256xf32>
    %142 = arith.maximumf %140, %141 : vector<32x256xf32>
    %143 = arith.truncf %142 : vector<32x256xf32> to vector<32x256xbf16>
    %c0_64 = arith.constant 0 : index
    %c0_65 = arith.constant 0 : index
    %144 = vector.load %arg14[%c0_64, %c0_65] : memref<256x128xbf16, #tpu.memory_space<vmem>>, vector<256x128xbf16>
    %cst_66 = arith.constant dense<0.000000e+00> : vector<32x128xf32>
    %145 = tpu.matmul %143, %144, %cst_66 {dimension_numbers = #tpu.dot_dimension_numbers<[1], [0], [0], [1], [0, 0, 1, 1], [], []>} : vector<32x256xbf16>, vector<256x128xbf16>, vector<32x128xf32> -> vector<32x128xf32>
    %c0_67 = arith.constant 0 : index
    %c0_68 = arith.constant 0 : index
    %146 = vector.load %arg15[%c0_67, %c0_68] : memref<1x128xf32, #tpu.memory_space<vmem>>, vector<1x128xf32>
    %147 = vector.broadcast %146 : vector<1x128xf32> to vector<32x128xf32>
    %148 = arith.addf %145, %147 : vector<32x128xf32>
    %cst_69 = arith.constant dense<0.000000e+00> : vector<128xf32>
    %149 = vector.multi_reduction <add>, %148, %cst_69 [0] : vector<32x128xf32> to vector<128xf32>
    %150 = vector.shape_cast %149 : vector<128xf32> to vector<1x128xf32>
    %cst_70 = arith.constant 3.200000e+01 : f32
    %151 = vector.broadcast %cst_70 : f32 to vector<1x128xf32>
    %152 = arith.divf %150, %151 : vector<1x128xf32>
    %153 = vector.broadcast %152 : vector<1x128xf32> to vector<32x128xf32>
    %154 = arith.subf %148, %153 : vector<32x128xf32>
    %155 = arith.mulf %154, %154 : vector<32x128xf32>
    %cst_71 = arith.constant dense<0.000000e+00> : vector<128xf32>
    %156 = vector.multi_reduction <add>, %155, %cst_71 [0] : vector<32x128xf32> to vector<128xf32>
    %157 = vector.shape_cast %156 : vector<128xf32> to vector<1x128xf32>
    %cst_72 = arith.constant 3.200000e+01 : f32
    %158 = vector.broadcast %cst_72 : f32 to vector<1x128xf32>
    %159 = arith.divf %157, %158 : vector<1x128xf32>
    %160 = math.rsqrt %159 : vector<1x128xf32>
    %161 = vector.broadcast %160 : vector<1x128xf32> to vector<32x128xf32>
    %162 = arith.mulf %154, %161 : vector<32x128xf32>
    %cst_73 = arith.constant 0.000000e+00 : f32
    %163 = vector.broadcast %cst_73 : f32 to vector<32x128xf32>
    %164 = arith.maximumf %162, %163 : vector<32x128xf32>
    %165 = arith.truncf %164 : vector<32x128xf32> to vector<32x128xbf16>
    %c0_74 = arith.constant 0 : index
    %c0_75 = arith.constant 0 : index
    %166 = vector.load %arg16[%c0_74, %c0_75] : memref<128x128xbf16, #tpu.memory_space<vmem>>, vector<128x128xbf16>
    %cst_76 = arith.constant dense<0.000000e+00> : vector<32x128xf32>
    %167 = tpu.matmul %165, %166, %cst_76 {dimension_numbers = #tpu.dot_dimension_numbers<[1], [0], [0], [1], [0, 0, 1, 1], [], []>} : vector<32x128xbf16>, vector<128x128xbf16>, vector<32x128xf32> -> vector<32x128xf32>
    %c0_77 = arith.constant 0 : index
    %c0_78 = arith.constant 0 : index
    %168 = vector.load %arg17[%c0_77, %c0_78] : memref<1x128xf32, #tpu.memory_space<vmem>>, vector<1x128xf32>
    %169 = vector.broadcast %168 : vector<1x128xf32> to vector<32x128xf32>
    %170 = arith.addf %167, %169 : vector<32x128xf32>
    %cst_79 = arith.constant dense<0.000000e+00> : vector<128xf32>
    %171 = vector.multi_reduction <add>, %170, %cst_79 [0] : vector<32x128xf32> to vector<128xf32>
    %172 = vector.shape_cast %171 : vector<128xf32> to vector<1x128xf32>
    %cst_80 = arith.constant 3.200000e+01 : f32
    %173 = vector.broadcast %cst_80 : f32 to vector<1x128xf32>
    %174 = arith.divf %172, %173 : vector<1x128xf32>
    %175 = vector.broadcast %174 : vector<1x128xf32> to vector<32x128xf32>
    %176 = arith.subf %170, %175 : vector<32x128xf32>
    %177 = arith.mulf %176, %176 : vector<32x128xf32>
    %cst_81 = arith.constant dense<0.000000e+00> : vector<128xf32>
    %178 = vector.multi_reduction <add>, %177, %cst_81 [0] : vector<32x128xf32> to vector<128xf32>
    %179 = vector.shape_cast %178 : vector<128xf32> to vector<1x128xf32>
    %cst_82 = arith.constant 3.200000e+01 : f32
    %180 = vector.broadcast %cst_82 : f32 to vector<1x128xf32>
    %181 = arith.divf %179, %180 : vector<1x128xf32>
    %182 = math.rsqrt %181 : vector<1x128xf32>
    %183 = vector.broadcast %182 : vector<1x128xf32> to vector<32x128xf32>
    %184 = arith.mulf %176, %183 : vector<32x128xf32>
    %cst_83 = arith.constant 0.000000e+00 : f32
    %185 = vector.broadcast %cst_83 : f32 to vector<32x128xf32>
    %186 = arith.maximumf %184, %185 : vector<32x128xf32>
    %c0_84 = arith.constant 0 : index
    %c0_85 = arith.constant 0 : index
    %187 = vector.load %arg18[%c0_84, %c0_85] : memref<32x128xf32, #tpu.memory_space<vmem>>, vector<32x128xf32>
    tpu.vector_store %arg18[%c0_84, %c0_85], %186 {strides = array<i32>} : memref<32x128xf32, #tpu.memory_space<vmem>>, vector<32x128xf32>,
    return
  }
}

</mosaic_0001>

<bundles_post_ra>
// kernel: tpu_custom_call.1
= control target key start
LH: loop header
LB: loop body
LE: loop exit
PB: predicated region body
PF: predicated region fallthrough
CT: control target
= control target key end

     0   :  { %s8876_s0 = inlined_call_operand.vmem [shape: f32[32,4], index: 0, kind: input, shape index: {}]   ;;  %s8877_s1 = inlined_call_operand.hbm [shape: bf16[4,64], index: 1, kind: input, shape index: {}]   ;;  %s8878_s2 = inlined_call_operand.hbm [shape: f32[1,64], index: 2, kind: input, shape index: {}]   ;;  %s8879_s3 = inlined_call_operand.vmem [shape: bf16[64,64], index: 3, kind: input, shape index: {}]   ;;  %s8880_s4 = inlined_call_operand.hbm [shape: f32[1,64], index: 4, kind: input, shape index: {}]   ;;  %s8881_s5 = inlined_call_operand.hbm [shape: bf16[64,128], index: 5, kind: input, shape index: {}]   ;;  %s8882_s6 = inlined_call_operand.hbm [shape: f32[1,128], index: 6, kind: input, shape index: {}]   ;;  %s8883_s7 = inlined_call_operand.hbm [shape: bf16[128,1024], index: 7, kind: input, shape index: {}]   ;;  %s8884_s8 = inlined_call_operand.vmem [shape: f32[1,1024], index: 8, kind: input, shape index: {}]   ;;  %s8885_s9 = inlined_call_operand.hbm [shape: bf16[64,512], index: 9, kind: input, shape index: {}]   ;;  %s8886_s10 = inlined_call_operand.hbm [shape: bf16[1024,512], index: 10, kind: input, shape index: {}]   ;;  %s8887_s11 = inlined_call_operand.vmem [shape: f32[1,512], index: 11, kind: input, shape index: {}]   ;;  %s8888_s12 = inlined_call_operand.hbm [shape: bf16[512,256], index: 12, kind: input, shape index: {}]   ;;  %s8889_s13 = inlined_call_operand.vmem [shape: f32[1,256], index: 13, kind: input, shape index: {}]   ;;  %s8890_s14 = inlined_call_operand.hbm [shape: bf16[256,128], index: 14, kind: input, shape index: {}]   ;;  %s8891_s15 = inlined_call_operand.vmem [shape: f32[1,128], index: 15, kind: input, shape index: {}]   ;;  %s8892_s16 = inlined_call_operand.hbm [shape: bf16[128,128], index: 16, kind: input, shape index: {}]   ;;  %s8893_s17 = inlined_call_operand.vmem [shape: f32[1,128], index: 17, kind: input, shape index: {}]   ;;  %s8894_s18 = inlined_call_operand.hbm [shape: f32[32,128], index: 18, kind: output, shape index: {}]  }
   0x1   :  { %8898 = sst [smem:[#allocation29_spill]] %s8876_s0 }
   0x2   :  { %8899 = sst [smem:[#allocation30_spill]] %s8877_s1 }
   0x3   :  { %8900 = sst [smem:[#allocation31_spill]] %s8878_s2 }
   0x4   :  { %8901 = sst [smem:[#allocation32_spill]] %s8894_s18 }
   0x5   :  { %23 = vsyncpa [#allocation3], 0 }
   0x6   :  { %24 = vsyncpa [#allocation6], 0 }
   0x7   :  { %25 = vsyncpa [#allocation9], 0 }
   0x8   :  { %26 = vsyncpa [#allocation12], 0 }
   0x9   :  { %27 = vsyncpa [#allocation15], 0 }
   0xa   :  { %28 = vsyncpa [#allocation18], 0  ;;  %s8902_s29 = sld [smem:[#allocation31_spill]] }
  0x10   :  { %s48_s30 = sshll.u32 %s8902_s29, 4  ;;  %s49_s30 = int_to_ptr.hbm [resolvable:$true] %s48_s30 }
  0x11   :  { %29 = vsyncpa [#allocation4], 0  ;;  %s7605_s0 = smov [#allocation5]   ;;  %s71_s21 = sshll.u32 %s8881_s5, 4  ;;  %s72_s21 = int_to_ptr.hbm [resolvable:$true] %s71_s21 }
  0x12   :  { %s50_s19 = sshll.u32 %s7605_s0, 4  ;;  %s7606_s22 = smov [#allocation8]   ;;  %s51_s19 = int_to_ptr.vmem [resolvable:$true] %s50_s19 }
  0x13   :  { %53 = dma.hbm_to_vmem [thread:$0]  %s49_s30, 16, %s51_s19, [#allocation6]  }
  0x14   :  { %s73_s2 = sshll.u32 %s7606_s22, 4  ;;  %s7607_s23 = smov 64   ;;  %s74_s2 = int_to_ptr.vmem [resolvable:$true] %s73_s2 }
  0x15   :  { %s7608_s24 = smov 4   ;;  %s95_s27 = sshll.u32 %s8883_s7, 4  ;;  %s96_s27 = int_to_ptr.hbm [resolvable:$true] %s95_s27 }
  0x16   :  { %79 = dma.hbm_to_vmem [thread:$0]  %s72_s21, 512, %s74_s2, [#allocation9], %s7607_s23, %s7607_s23, %s7608_s24  }
  0x17   :  { %s7609_s28 = smov [#allocation11]   ;;  %s7610_s5 = smov 512  }
  0x18   :  { %s97_s29 = sshll.u32 %s7609_s28, 4  ;;  %s7611_s30 = smov 32   ;;  %s98_s29 = int_to_ptr.vmem [resolvable:$true] %s97_s29 }
  0x19   :  { %103 = dma.hbm_to_vmem [thread:$0]  %s96_s27, 8192, %s98_s29, [#allocation12], %s7610_s5, %s7610_s5, %s7611_s30  }
  0x1a   :  { %s123_s1 = sshll.u32 %s8886_s10, 4  ;;  %s7612_s20 = smov [#allocation14]   ;;  %s124_s1 = int_to_ptr.hbm [resolvable:$true] %s123_s1 }
  0x1b   :  { %s125_s22 = sshll.u32 %s7612_s20, 4  ;;  %s153_s2 = sshll.u32 %s8890_s14, 4  ;;  %s126_s22 = int_to_ptr.vmem [resolvable:$true] %s125_s22  ;;  %s154_s2 = int_to_ptr.hbm [resolvable:$true] %s153_s2 }
  0x1c   :  { %s7613_s7 = smov 256   ;;  %s7614_s25 = smov 16  }
  0x1d   :  { %131 = dma.hbm_to_vmem [thread:$0]  %s124_s1, 32768, %s126_s22, [#allocation15], %s7613_s7, %s7613_s7, %s7614_s25  }
  0x1e   :  { %s8903_s28 = sld [smem:[#allocation30_spill]]  ;;  %s7615_s10 = smov [#allocation17]  }
  0x1f   :  { %s155_s5 = sshll.u32 %s7615_s10, 4  ;;  %s7616_s14 = smov [#allocation2]   ;;  %s156_s5 = int_to_ptr.vmem [resolvable:$true] %s155_s5 }
  0x20   :  { %161 = dma.hbm_to_vmem [thread:$0]  %s154_s2, 2048, %s156_s5, [#allocation18], %s7607_s23, %s7607_s23, %s7608_s24  }
  0x21   :  { %s39_s18 = sshll.u32 %s7616_s14, 4  ;;  %s61_s19 = sshll.u32 %s8880_s4, 4  ;;  %s40_s18 = int_to_ptr.vmem [resolvable:$true] %s39_s18  ;;  %s62_s19 = int_to_ptr.hbm [resolvable:$true] %s61_s19 }
  0x22   :  { %s85_s22 = sshll.u32 %s8882_s6, 4  ;;  %s7617_s21 = smov [#allocation7]   ;;  %s86_s22 = int_to_ptr.hbm [resolvable:$true] %s85_s22 }
  0x23   :  { %s63_s26 = sshll.u32 %s7617_s21, 4  ;;  %s7618_s27 = smov [#allocation10]   ;;  %s64_s26 = int_to_ptr.vmem [resolvable:$true] %s63_s26 }
  0x24   :  { %s37_s29 = sshll.u32 %s8903_s28, 4  ;;  %s87_s2 = sshll.u32 %s7618_s27, 4  ;;  %s38_s29 = int_to_ptr.hbm [resolvable:$true] %s37_s29  ;;  %s88_s2 = int_to_ptr.vmem [resolvable:$true] %s87_s2 }
  0x25   :  { %42 = dma.hbm_to_vmem [thread:$0]  %s38_s29, 32, %s40_s18, [#allocation3]  }
  0x26   :  { %66 = dma.hbm_to_vmem [thread:$0]  %s62_s19, 16, %s64_s26, [#allocation6]  }
  0x27   :  { %s110_s5 = sshll.u32 %s8885_s9, 4  ;;  %s138_s14 = sshll.u32 %s8888_s12, 4  ;;  %s111_s5 = int_to_ptr.hbm [resolvable:$true] %s110_s5  ;;  %s139_s14 = int_to_ptr.hbm [resolvable:$true] %s138_s14 }
  0x28   :  { %90 = dma.hbm_to_vmem [thread:$0]  %s86_s22, 16, %s88_s2, [#allocation9]  }
  0x29   :  { %s7619_s18 = smov [#allocation13]   ;;  %s7620_s30 = smov [#allocation16]  }
  0x2a   :  { %s112_s6 = sshll.u32 %s7619_s18, 4  ;;  %s140_s0 = sshll.u32 %s7620_s30, 4  ;;  %s113_s6 = int_to_ptr.vmem [resolvable:$true] %s112_s6  ;;  %s141_s0 = int_to_ptr.vmem [resolvable:$true] %s140_s0 }
  0x2b   :  { %118 = dma.hbm_to_vmem [thread:$0]  %s111_s5, 2048, %s113_s6, [#allocation12], %s7613_s7, %s7613_s7, %s7614_s25  }
  0x2c   :  { %s7621_s19 = smov 128   ;;  %s7622_s9 = smov 8  }
  0x2d   :  { %146 = dma.hbm_to_vmem [thread:$0]  %s139_s14, 8192, %s141_s0, [#allocation15], %s7621_s19, %s7621_s19, %s7622_s9  }
  0x2e   :  { %s168_s12 = sshll.u32 %s8892_s16, 4  ;;  %s7623_s22 = smov [#allocation19]   ;;  %s169_s12 = int_to_ptr.hbm [resolvable:$true] %s168_s12 }
  0x2f   :  { %s170_s21 = sshll.u32 %s7623_s22, 4  ;;  %s171_s21 = int_to_ptr.vmem [resolvable:$true] %s170_s21 }
  0x30   :  { %176 = dma.hbm_to_vmem [thread:$0]  %s169_s12, 1024, %s171_s21, [#allocation18], %s7607_s23, %s7607_s23, %s7608_s24  }
  0x31   :  { %7591 = dma.done.wait [#allocation3], 32  }
  0x32   :  { %7592 = vsyncadd [#allocation3], 4294967264 }
  0x33   :  { %7593 = dma.done.wait [#allocation6], 32  }
  0x34   :  { %7594 = vsyncadd [#allocation6], 4294967264 }
  0x35   :  { %7595 = dma.done.wait [#allocation9], 528  }
  0x36   :  { %7596 = vsyncadd [#allocation9], 4294966768 }
  0x37   :  { %7597 = dma.done.wait [#allocation12], 10240  }
  0x38   :  { %7598 = vsyncadd [#allocation12], 4294957056 }
  0x39   :  { %7599 = dma.done.wait [#allocation15], 40960  }
  0x3a   :  { %7600 = vsyncadd [#allocation15], 4294926336 }
  0x3b   :  { %7601 = dma.done.wait [#allocation18], 3072  }
  0x3c   :  { %7602 = vsyncadd [#allocation18], 4294964224  ;;  %vm242_vm0 = vcmask 1041408   ;;  %v230_v0 = vld [vmem:[#allocation2] sm:$0x3]  ;;  %s8904_s25 = sld [smem:[#allocation29_spill]] }
  0x3d   :  { %v244_v3 = vsel %vm242_vm0, %v230_v0, 0  ;;  %vm235_vm1 = vcmask 31744   ;;  %v7624_v10 = vmov 32.0   ;;  %v7258_v11 = vld [vmem:[#allocation5] ss:$0 sm:$0xff]  ;;  %vm265_vm2 = vcmask 523264  }
  0x3e   :  { %253 = vmatpush.bf16.msra.mxu0 %v244_v3  ;;  %7263 = vrcp.f32 %v7624_v10  ;;  %v6800_v42 = vld [vmem:[%s8879_s3 + $0x18] sm:$0xff]  ;;  %v6799_v49 = vld [vmem:[%s8879_s3 + $0x10] sm:$0xff]  ;;  %v6798_v54 = vld [vmem:[%s8879_s3 + $0x8] sm:$0xff] }
  0x3f   :  { %375 = vmatpush.bf16.msra.mxu1 %v6800_v42  ;;  %v6797_v57 = vld [vmem:[%s8879_s3] sm:$0xff] }
  0x42   :  { %v224_v1 = vld [vmem:[%s8904_s25] sm:$0xff]  ;;  %v225_v2 = vld [vmem:[%s8904_s25 + $0x8] sm:$0xff]  ;;  %v226_v5 = vld [vmem:[%s8904_s25 + $0x10] sm:$0xff] }
  0x43   :  { %v228_v4 = vpack.c.bf16 %v225_v2, %v224_v1  ;;  %v227_v6 = vld [vmem:[%s8904_s25 + $0x18] sm:$0xff]  ;;  %376 = vmatpush.bf16.msra.mxu1 %v6799_v49  ;;  %s8916_s25 = sld [smem:[#allocation32_spill]] }
  0x44   :  { %v229_v7 = vpack.c.bf16 %v227_v6, %v226_v5  ;;  %v7264_v16 = vpop.eup %7263 }
  0x45   :  { %5055 = vmatmul.msk.bf16.vlgmr.msra.gmra.mxu0 %vm235_vm1, %v228_v4  ;;  %v280_v20 = vmul.f32 32.0, %v7264_v16  ;;  %vm284_vm3 = vweird.f32 %v7264_v16 }
  0x47   :  { %v281_v26 = vsub.f32 1.0, %v280_v20  ;;  %377 = vmatpush.bf16.msra.mxu1 %v6798_v54 }
  0x49   :  { %v282_v29 = vmul.f32 %v7264_v16, %v281_v26  ;;  %s5037_s26 = sshll.u32 %s8916_s25, 4  ;;  %s5038_s26 = int_to_ptr.hbm [resolvable:$true] %s5037_s26 }
  0x4b   :  { %v283_v32 = vadd.f32 %v7264_v16, %v282_v29  ;;  %378 = vmatpush.bf16.msra.mxu1 %v6797_v57  ;;  %v6802_v57 = vld [vmem:[#allocation8 + $0x8] sm:$0xff] }
  0x4d   :  { %v7789_v35 = vsel %vm284_vm3, %v7264_v16, %v283_v32 }
  0x55   :  { %5056 = vmatmul.msk.bf16.gmra.mxu0 %vm235_vm1, %v229_v7 }
  0xc2   :  { %v255_v8 = vpop.f32.mrf.mxu0 }
  0xc3   :  { %v256_v14 = vadd.f32 %v7258_v11, %v255_v8 }
  0xc5   :  { %v266_v18 = vsel %vm265_vm2, %v256_v14, 0.0 }
  0xca   :  { %v257_v9 = vpop.f32.mrf.mxu0 }
  0xcb   :  { %v258_v13 = vadd.f32 %v7258_v11, %v257_v9 }
  0xcd   :  { %v267_v17 = vsel %vm265_vm2, %v258_v13, 0.0 }
  0xce   :  { %v268_v21 = vadd.f32 %v267_v17, %v266_v18 }
  0xd2   :  { %v260_v12 = vpop.f32.mrf.mxu0 }
  0xd3   :  { %v261_v15 = vadd.f32 %v7258_v11, %v260_v12 }
  0xd5   :  { %v269_v19 = vsel %vm265_vm2, %v261_v15, 0.0 }
  0xd6   :  { %v270_v24 = vadd.f32 %v269_v19, %v268_v21  ;;  %v7259_v19 = vld [vmem:[#allocation7] ss:$0 sm:$0xff] }
  0xda   :  { %v262_v22 = vpop.f32.mrf.mxu0 }
  0xdb   :  { %v263_v23 = vadd.f32 %v7258_v11, %v262_v22 }
  0xdd   :  { %v271_v25 = vsel %vm265_vm2, %v263_v23, 0.0 }
  0xde   :  { %v272_v27 = vadd.f32 %v271_v25, %v270_v24 }
  0xe0   :  { %v273_v28 = vrot.slane %v272_v27, 4 }
  0xe2   :  { %v274_v30 = vadd.f32 %v273_v28, %v272_v27 }
  0xe4   :  { %v275_v31 = vrot.slane %v274_v30, 2 }
  0xe6   :  { %v276_v33 = vadd.f32 %v275_v31, %v274_v30 }
  0xe8   :  { %v277_v34 = vrot.slane %v276_v33, 1 }
  0xea   :  { %v278_v36 = vadd.f32 %v277_v34, %v276_v33 }
  0xec   :  { %v286_v37 = vmul.f32 %v7789_v35, %v278_v36 }
  0xee   :  { %v287_v38 = vsub.f32 %v256_v14, %v286_v37  ;;  %v288_v39 = vsub.f32 %v258_v13, %v286_v37  ;;  %v289_v40 = vsub.f32 %v261_v15, %v286_v37  ;;  %v290_v41 = vsub.f32 %v263_v23, %v286_v37 }
  0xf0   :  { %v291_v43 = vmul.f32 %v287_v38, %v287_v38  ;;  %v292_v44 = vmul.f32 %v288_v39, %v288_v39  ;;  %v293_v45 = vmul.f32 %v289_v40, %v289_v40  ;;  %v294_v46 = vmul.f32 %v290_v41, %v290_v41 }
  0xf2   :  { %v295_v47 = vsel %vm265_vm2, %v291_v43, 0.0  ;;  %v296_v48 = vsel %vm265_vm2, %v292_v44, 0.0  ;;  %v298_v51 = vsel %vm265_vm2, %v293_v45, 0.0  ;;  %v300_v53 = vsel %vm265_vm2, %v294_v46, 0.0  ;;  %v6804_v45 = vld [vmem:[#allocation8 + $0x18] sm:$0xff] }
  0xf3   :  { %v297_v50 = vadd.f32 %v296_v48, %v295_v47  ;;  %492 = vmatpush.bf16.msra.mxu2 %v6804_v45 }
  0xf5   :  { %v299_v52 = vadd.f32 %v298_v51, %v297_v50 }
  0xf7   :  { %v301_v55 = vadd.f32 %v300_v53, %v299_v52  ;;  %v6803_v52 = vld [vmem:[#allocation8 + $0x10] sm:$0xff] }
  0xf8   :  { %493 = vmatpush.bf16.msra.mxu2 %v6803_v52 }
  0xf9   :  { %v302_v56 = vrot.slane %v301_v55, 4 }
  0xfb   :  { %v303_v58 = vadd.f32 %v302_v56, %v301_v55 }
  0xfc   :  { %494 = vmatpush.bf16.msra.mxu2 %v6802_v57 }
  0xfd   :  { %v304_v59 = vrot.slane %v303_v58, 2 }
  0xff   :  { %v305_v60 = vadd.f32 %v304_v59, %v303_v58 }
 0x101   :  { %v306_v61 = vrot.slane %v305_v60, 1 }
 0x103   :  { %v307_v62 = vadd.f32 %v306_v61, %v305_v60  ;;  %v6801_v60 = vld [vmem:[#allocation8] sm:$0xff] }
 0x104   :  { %495 = vmatpush.bf16.msra.mxu2 %v6801_v60  ;;  %v5255_v60 = vld [vmem:[#allocation11 + $0x140] sm:$0xf] }
 0x105   :  { %v308_v63 = vmul.f32 %v307_v62, %v7789_v35 }
 0x107   :  { %7265 = vrsqrt.f32 %v308_v63  ;;  %vm315_vm5 = vweird.f32 %v308_v63 }
 0x10d   :  { %v7266_v0 = vpop.eup %7265 }
 0x10e   :  { %v310_v1 = vmul.f32 %v7266_v0, %v308_v63  ;;  %vm316_vm4 = vweird.f32 %v7266_v0 }
 0x10f   :  { %vm317_vm6 = vmor %vm315_vm5, %vm316_vm4 }
 0x110   :  { %v311_v2 = vmul.f32 %v7266_v0, %v310_v1 }
 0x112   :  { %v312_v3 = vmul.f32 0.5, %v311_v2 }
 0x114   :  { %v313_v4 = vsub.f32 1.5, %v312_v3 }
 0x116   :  { %v314_v5 = vmul.f32 %v7266_v0, %v313_v4 }
 0x118   :  { %v318_v6 = vsel %vm317_vm6, %v7266_v0, %v314_v5 }
 0x119   :  { %v319_v7 = vmul.f32 %v318_v6, %v287_v38  ;;  %v320_v8 = vmul.f32 %v318_v6, %v288_v39  ;;  %v322_v12 = vmul.f32 %v318_v6, %v290_v41  ;;  %v321_v13 = vmul.f32 %v318_v6, %v289_v40 }
 0x11b   :  { %v323_v9 = vmax.f32 %v319_v7, 0.0  ;;  %v324_v10 = vmax.f32 %v320_v8, 0.0  ;;  %v325_v14 = vmax.f32 %v321_v13, 0.0  ;;  %v326_v15 = vmax.f32 %v322_v12, 0.0 }
 0x11d   :  { %v327_v11 = vpack.c.bf16 %v324_v10, %v323_v9  ;;  %v328_v16 = vpack.c.bf16 %v326_v15, %v325_v14 }
 0x11f   :  { %5073 = vmatmul.msk.bf16.vlgmr.msra.gmra.mxu1 %vm265_vm2, %v327_v11 }
 0x12f   :  { %5074 = vmatmul.msk.bf16.gmra.mxu1 %vm265_vm2, %v328_v16 }
 0x19c   :  { %v380_v17 = vpop.f32.mrf.mxu1 }
 0x19d   :  { %v381_v22 = vadd.f32 %v7259_v19, %v380_v17 }
 0x19f   :  { %v390_v25 = vsel %vm265_vm2, %v381_v22, 0.0 }
 0x1a4   :  { %v382_v18 = vpop.f32.mrf.mxu1 }
 0x1a5   :  { %v383_v21 = vadd.f32 %v7259_v19, %v382_v18 }
 0x1a7   :  { %v391_v24 = vsel %vm265_vm2, %v383_v21, 0.0 }
 0x1a8   :  { %v392_v27 = vadd.f32 %v391_v24, %v390_v25 }
 0x1ac   :  { %v385_v20 = vpop.f32.mrf.mxu1 }
 0x1ad   :  { %v386_v23 = vadd.f32 %v7259_v19, %v385_v20 }
 0x1af   :  { %v393_v26 = vsel %vm265_vm2, %v386_v23, 0.0 }
 0x1b0   :  { %v394_v30 = vadd.f32 %v393_v26, %v392_v27 }
 0x1b4   :  { %v387_v28 = vpop.f32.mrf.mxu1 }
 0x1b5   :  { %v388_v29 = vadd.f32 %v7259_v19, %v387_v28 }
 0x1b7   :  { %v395_v31 = vsel %vm265_vm2, %v388_v29, 0.0 }
 0x1b8   :  { %v396_v32 = vadd.f32 %v395_v31, %v394_v30  ;;  %v5319_v31 = vld [vmem:[#allocation11 + $0x1c0] sm:$0xf] }
 0x1ba   :  { %v397_v33 = vrot.slane %v396_v32, 4 }
 0x1bc   :  { %v398_v34 = vadd.f32 %v397_v33, %v396_v32  ;;  %v6865_v32 = vld [vmem:[#allocation11 + $0x1dc] sm:$0xf0]  ;;  %v6861_v33 = vld [vmem:[#allocation11 + $0x1c4] sm:$0xf] }
 0x1be   :  { %v399_v36 = vrot.slane %v398_v34, 2 }
 0x1c0   :  { %v400_v37 = vadd.f32 %v399_v36, %v398_v34  ;;  %v5320_v34 = vor.u32 %v6865_v32, %v5319_v31  ;;  %v5321_v36 = vld [vmem:[#allocation11 + $0x1e0] sm:$0xf0]  ;;  %v6833_v31 = vld [vmem:[#allocation11 + $0xdc] sm:$0xf0] }
 0x1c1   :  { %v6829_v32 = vld [vmem:[#allocation11 + $0xc4] sm:$0xf] }
 0x1c2   :  { %v401_v38 = vrot.slane %v400_v37, 1  ;;  %957 = vmatpush.bf16.msra.mxu3 %v5320_v34  ;;  %v5193_v34 = vld [vmem:[#allocation11 + $0xe0] sm:$0xf0] }
 0x1c4   :  { %v402_v39 = vadd.f32 %v401_v38, %v400_v37  ;;  %v5327_v37 = vld [vmem:[#allocation11 + $0x1c8] sm:$0xf] }
 0x1c5   :  { %v6866_v38 = vld [vmem:[#allocation11 + $0x1e4] sm:$0xf0] }
 0x1c6   :  { %v403_v40 = vmul.f32 %v402_v39, %v7789_v35 }
 0x1c8   :  { %v404_v41 = vsub.f32 %v381_v22, %v403_v40  ;;  %v405_v42 = vsub.f32 %v383_v21, %v403_v40  ;;  %v406_v43 = vsub.f32 %v386_v23, %v403_v40  ;;  %v407_v44 = vsub.f32 %v388_v29, %v403_v40  ;;  %v7260_v23 = vld [vmem:[#allocation10] ss:$0 sm:$0xff] }
 0x1c9   :  { %v5324_v40 = vor.u32 %v6861_v33, %v5321_v36  ;;  %v5199_v36 = vld [vmem:[#allocation11 + $0xc8] sm:$0xf] }
 0x1ca   :  { %v408_v46 = vmul.f32 %v404_v41, %v404_v41  ;;  %v409_v47 = vmul.f32 %v405_v42, %v405_v42  ;;  %v410_v48 = vmul.f32 %v406_v43, %v406_v43  ;;  %v411_v49 = vmul.f32 %v407_v44, %v407_v44 }
 0x1cb   :  { %976 = vmatpush.bf16.msrb.mxu0 %v5324_v40 }
 0x1cc   :  { %v412_v50 = vsel %vm265_vm2, %v408_v46, 0.0  ;;  %v413_v51 = vsel %vm265_vm2, %v409_v47, 0.0  ;;  %v415_v54 = vsel %vm265_vm2, %v410_v48, 0.0  ;;  %v417_v56 = vsel %vm265_vm2, %v411_v49, 0.0  ;;  %v5287_v46 = vld [vmem:[#allocation11 + $0x180] sm:$0xf] }
 0x1cd   :  { %v414_v53 = vadd.f32 %v413_v51, %v412_v50  ;;  %v6857_v47 = vld [vmem:[#allocation11 + $0x19c] sm:$0xf0]  ;;  %v6853_v49 = vld [vmem:[#allocation11 + $0x184] sm:$0xf]  ;;  %v5295_v51 = vld [vmem:[#allocation11 + $0x188] sm:$0xf] }
 0x1ce   :  { %v5288_v48 = vor.u32 %v6857_v47, %v5287_v46  ;;  %v5289_v50 = vld [vmem:[#allocation11 + $0x1a0] sm:$0xf0] }
 0x1cf   :  { %v416_v55 = vadd.f32 %v415_v54, %v414_v53  ;;  %v5292_v53 = vor.u32 %v6853_v49, %v5289_v50  ;;  %v6858_v54 = vld [vmem:[#allocation11 + $0x1a4] sm:$0xf0]  ;;  %v6821_v49 = vld [vmem:[#allocation11 + $0x84] sm:$0xf] }
 0x1d0   :  { %958 = vmatpush.bf16.msra.mxu3 %v5288_v48  ;;  %v5296_v57 = vor.u32 %v6858_v54, %v5295_v51  ;;  %v6825_v48 = vld [vmem:[#allocation11 + $0x9c] sm:$0xf0]  ;;  %v5161_v50 = vld [vmem:[#allocation11 + $0xa0] sm:$0xf0]  ;;  %v5167_v51 = vld [vmem:[#allocation11 + $0x88] sm:$0xf] }
 0x1d1   :  { %v418_v58 = vadd.f32 %v417_v56, %v416_v55  ;;  %v6854_v55 = vld [vmem:[#allocation11 + $0x18c] sm:$0xf]  ;;  %977 = vmatpush.bf16.msrb.mxu0 %v5292_v53  ;;  %v5164_v54 = vor.u32 %v6821_v49, %v5161_v50  ;;  %v6859_v49 = vld [vmem:[#allocation11 + $0x1ac] sm:$0xf0] }
 0x1d2   :  { %v5297_v56 = vld [vmem:[#allocation11 + $0x1a8] sm:$0xf0] }
 0x1d3   :  { %v419_v59 = vrot.slane %v418_v58, 4 }
 0x1d5   :  { %v420_v61 = vadd.f32 %v419_v59, %v418_v58  ;;  %v5300_v58 = vor.u32 %v6854_v55, %v5297_v56  ;;  %v6822_v56 = vld [vmem:[#allocation11 + $0x8c] sm:$0xf] }
 0x1d7   :  { %v421_v62 = vrot.slane %v420_v61, 2 }
 0x1d9   :  { %v422_v63 = vadd.f32 %v421_v62, %v420_v61  ;;  %v6849_v61 = vld [vmem:[#allocation11 + $0x15c] sm:$0xf0] }
 0x1da   :  { %v5256_v62 = vor.u32 %v6849_v61, %v5255_v60  ;;  %v5127_v61 = vld [vmem:[#allocation11 + $0x40] sm:$0xf] }
 0x1db   :  { %v423_v0 = vrot.slane %v422_v63, 1 }
 0x1dc   :  { %959 = vmatpush.bf16.msra.mxu3 %v5256_v62  ;;  %v6817_v62 = vld [vmem:[#allocation11 + $0x5c] sm:$0xf0] }
 0x1dd   :  { %v424_v1 = vadd.f32 %v423_v0, %v422_v63  ;;  %v6845_v63 = vld [vmem:[#allocation11 + $0x144] sm:$0xf] }
 0x1de   :  { %v5257_v0 = vld [vmem:[#allocation11 + $0x160] sm:$0xf0] }
 0x1df   :  { %v425_v2 = vmul.f32 %v424_v1, %v7789_v35  ;;  %v5263_v1 = vld [vmem:[#allocation11 + $0x148] sm:$0xf] }
 0x1e1   :  { %7267 = vrsqrt.f32 %v425_v2  ;;  %vm432_vm8 = vweird.f32 %v425_v2 }
 0x1e7   :  { %v7268_v3 = vpop.eup %7267 }
 0x1e8   :  { %v427_v4 = vmul.f32 %v7268_v3, %v425_v2  ;;  %vm433_vm7 = vweird.f32 %v7268_v3 }
 0x1e9   :  { %vm434_vm9 = vmor %vm432_vm8, %vm433_vm7 }
 0x1ea   :  { %v428_v5 = vmul.f32 %v7268_v3, %v427_v4  ;;  %v6850_v4 = vld [vmem:[#allocation11 + $0x164] sm:$0xf0] }
 0x1ec   :  { %v429_v6 = vmul.f32 0.5, %v428_v5  ;;  %v6846_v5 = vld [vmem:[#allocation11 + $0x14c] sm:$0xf] }
 0x1ee   :  { %v430_v7 = vsub.f32 1.5, %v429_v6  ;;  %v5265_v6 = vld [vmem:[#allocation11 + $0x168] sm:$0xf0] }
 0x1f0   :  { %v431_v8 = vmul.f32 %v7268_v3, %v430_v7  ;;  %v5264_v7 = vor.u32 %v6850_v4, %v5263_v1  ;;  %v5129_v1 = vld [vmem:[#allocation11 + $0x60] sm:$0xf0] }
 0x1f2   :  { %v435_v9 = vsel %vm434_vm9, %v7268_v3, %v431_v8  ;;  %v5260_v3 = vor.u32 %v6845_v63, %v5257_v0  ;;  %v5268_v8 = vor.u32 %v6846_v5, %v5265_v6  ;;  %v6813_v63 = vld [vmem:[#allocation11 + $0x44] sm:$0xf]  ;;  %v5128_v0 = vor.u32 %v6817_v62, %v5127_v61  ;;  %v6847_v61 = vld [vmem:[#allocation11 + $0x154] sm:$0xf] }
 0x1f3   :  { %v436_v10 = vmul.f32 %v435_v9, %v404_v41  ;;  %v437_v11 = vmul.f32 %v435_v9, %v405_v42  ;;  %v438_v15 = vmul.f32 %v435_v9, %v406_v43  ;;  %v439_v16 = vmul.f32 %v435_v9, %v407_v44  ;;  %v6862_v42 = vld [vmem:[#allocation11 + $0x1cc] sm:$0xf]  ;;  %v5273_v62 = vld [vmem:[#allocation11 + $0x170] sm:$0xf0] }
 0x1f4   :  { %v5328_v41 = vor.u32 %v6866_v38, %v5327_v37  ;;  %v5329_v43 = vld [vmem:[#allocation11 + $0x1e8] sm:$0xf0]  ;;  %978 = vmatpush.bf16.msrb.mxu0 %v5260_v3  ;;  %v6834_v37 = vld [vmem:[#allocation11 + $0xe4] sm:$0xf0]  ;;  %v5132_v5 = vor.u32 %v6813_v63, %v5129_v1  ;;  %v5279_v1 = vld [vmem:[#allocation11 + $0x158] sm:$0xf] }
 0x1f5   :  { %v440_v12 = vmax.f32 %v436_v10, 0.0  ;;  %v441_v13 = vmax.f32 %v437_v11, 0.0  ;;  %v442_v17 = vmax.f32 %v438_v15, 0.0  ;;  %v443_v18 = vmax.f32 %v439_v16, 0.0  ;;  %v5223_v10 = vld [vmem:[#allocation11 + $0x100] sm:$0xf] }
 0x1f6   :  { %v5332_v44 = vor.u32 %v6862_v42, %v5329_v43  ;;  %995 = vmatpush.bf16.msrb.mxu1 %v5328_v41  ;;  %v6841_v11 = vld [vmem:[#allocation11 + $0x11c] sm:$0xf0]  ;;  %v5225_v15 = vld [vmem:[#allocation11 + $0x120] sm:$0xf0]  ;;  %v5231_v16 = vld [vmem:[#allocation11 + $0x108] sm:$0xf]  ;;  %v5196_v43 = vor.u32 %v6829_v32, %v5193_v34 }
 0x1f7   :  { %v7821_v14 = vpack.c.bf16 %v441_v13, %v440_v12  ;;  %v7825_v19 = vpack.c.bf16 %v443_v18, %v442_v17  ;;  %v5224_v12 = vor.u32 %v6841_v11, %v5223_v10  ;;  %v6837_v13 = vld [vmem:[#allocation11 + $0x104] sm:$0xf]  ;;  %v6830_v41 = vld [vmem:[#allocation11 + $0xcc] sm:$0xf]  ;;  %v6818_v3 = vld [vmem:[#allocation11 + $0x64] sm:$0xf0] }
 0x1f8   :  { %1014 = vmatpush.bf16.msrb.mxu2 %v5332_v44  ;;  %v5228_v18 = vor.u32 %v6837_v13, %v5225_v15  ;;  %v5201_v42 = vld [vmem:[#allocation11 + $0xe8] sm:$0xf0]  ;;  %v5200_v44 = vor.u32 %v6834_v37, %v5199_v36  ;;  %v5095_v11 = vld [vmem:[#allocation11] sm:$0xf]  ;;  %v6805_v15 = vld [vmem:[#allocation11 + $0x4] sm:$0xf] }
 0x1f9   :  { %5091 = vmatmul.msk.bf16.vlgmr.msra.gmra.mxu2 %vm265_vm2, %v7821_v14  ;;  %8905 = vst [vmem:[#allocation28_spill] sm:$0xff] %v7825_v19  ;;  %960 = vmatpush.bf16.msra.mxu3 %v5224_v12  ;;  %v6809_v12 = vld [vmem:[#allocation11 + $0x1c] sm:$0xf0]  ;;  %v6867_v32 = vld [vmem:[#allocation11 + $0x1ec] sm:$0xf0] }
 0x1fa   :  { %996 = vmatpush.bf16.msrb.mxu1 %v5296_v57  ;;  %979 = vmatpush.bf16.msrb.mxu0 %v5228_v18  ;;  %v5169_v57 = vld [vmem:[#allocation11 + $0xa8] sm:$0xf0]  ;;  %v5096_v13 = vor.u32 %v6809_v12, %v5095_v11  ;;  %v5337_v37 = vld [vmem:[#allocation11 + $0x1f0] sm:$0xf0]  ;;  %v5247_v12 = vld [vmem:[#allocation11 + $0x118] sm:$0xf] }
 0x1fb   :  { %v5241_v11 = vld [vmem:[#allocation11 + $0x130] sm:$0xf0] }
 0x1fc   :  { %1015 = vmatpush.bf16.msrb.mxu2 %v5300_v58  ;;  %v5172_v58 = vor.u32 %v6822_v56, %v5169_v57  ;;  %v6856_v56 = vld [vmem:[#allocation11 + $0x19c] sm:$0xf] }
 0x1fd   :  { %v5313_v57 = vld [vmem:[#allocation11 + $0x1b8] sm:$0xf0] }
 0x1fe   :  { %997 = vmatpush.bf16.msrb.mxu1 %v5264_v7  ;;  %980 = vmatpush.bf16.msrb.mxu0 %v5196_v43  ;;  %v6814_v7 = vld [vmem:[#allocation11 + $0x4c] sm:$0xf] }
 0x200   :  { %1016 = vmatpush.bf16.msrb.mxu2 %v5268_v8  ;;  %v5137_v8 = vld [vmem:[#allocation11 + $0x68] sm:$0xf0] }
 0x202   :  { %981 = vmatpush.bf16.msrb.mxu0 %v5164_v54 }
 0x206   :  { %982 = vmatpush.bf16.msrb.mxu0 %v5132_v5 }
 0x209   :  { %5092 = vmatmul.msk.bf16.gmra.mxu2 %vm265_vm2, %v7825_v19 }
 0x27c   :  { %v497_v20 = vpop.f32.mrf.mxu2 }
 0x27d   :  { %v7831_v25 = vadd.f32 %v7260_v23, %v497_v20  ;;  %v6842_v20 = vld [vmem:[#allocation11 + $0x124] sm:$0xf0] }
 0x284   :  { %v499_v21 = vpop.f32.mrf.mxu2 }
 0x285   :  { %v7829_v24 = vadd.f32 %v7260_v23, %v499_v21  ;;  %v6838_v21 = vld [vmem:[#allocation11 + $0x10c] sm:$0xf] }
 0x287   :  { %v507_v27 = vadd.f32 %v7829_v24, %v7831_v25 }
 0x28c   :  { %v502_v22 = vpop.f32.mrf.mxu2 }
 0x28d   :  { %v7833_v26 = vadd.f32 %v7260_v23, %v502_v22  ;;  %v5233_v22 = vld [vmem:[#allocation11 + $0x128] sm:$0xf0] }
 0x28f   :  { %v508_v29 = vadd.f32 %v507_v27, %v7833_v26  ;;  %v5236_v27 = vor.u32 %v6838_v21, %v5233_v22  ;;  %v6810_v21 = vld [vmem:[#allocation11 + $0x24] sm:$0xf0]  ;;  %v6806_v22 = vld [vmem:[#allocation11 + $0xc] sm:$0xf] }
 0x291   :  { %1017 = vmatpush.bf16.msrb.mxu2 %v5236_v27 }
 0x294   :  { %v504_v28 = vpop.f32.mrf.mxu2 }
 0x295   :  { %v7838_v30 = vadd.f32 %v7260_v23, %v504_v28  ;;  %v5232_v23 = vor.u32 %v6842_v20, %v5231_v16  ;;  %v5097_v16 = vld [vmem:[#allocation11 + $0x20] sm:$0xf0] }
 0x296   :  { %v5100_v20 = vor.u32 %v6805_v15, %v5097_v16  ;;  %v6840_v15 = vld [vmem:[#allocation11 + $0x11c] sm:$0xf] }
 0x297   :  { %v509_v39 = vadd.f32 %v508_v29, %v7838_v30  ;;  %v5191_v29 = vld [vmem:[#allocation11 + $0xc0] sm:$0xf]  ;;  %998 = vmatpush.bf16.msrb.mxu1 %v5232_v23  ;;  %v5105_v23 = vld [vmem:[#allocation11 + $0x28] sm:$0xf0]  ;;  %v5249_v16 = vld [vmem:[#allocation11 + $0x138] sm:$0xf0] }
 0x298   :  { %v5192_v33 = vor.u32 %v6833_v31, %v5191_v29  ;;  %983 = vmatpush.bf16.msrb.mxu0 %v5100_v20  ;;  %v5335_v31 = vld [vmem:[#allocation11 + $0x1d0] sm:$0xf] }
 0x299   :  { %v510_v45 = vrot.slane %v509_v39, 4  ;;  %v5336_v36 = vor.u32 %v6867_v32, %v5335_v31  ;;  %v5209_v32 = vld [vmem:[#allocation11 + $0xf0] sm:$0xf0] }
 0x29a   :  { %961 = vmatpush.bf16.msra.mxu3 %v5192_v33  ;;  %v6863_v33 = vld [vmem:[#allocation11 + $0x1d4] sm:$0xf] }
 0x29b   :  { %v511_v52 = vadd.f32 %v510_v45, %v509_v39  ;;  %v5204_v45 = vor.u32 %v6830_v41, %v5201_v42  ;;  %999 = vmatpush.bf16.msrb.mxu1 %v5200_v44  ;;  %v5343_v41 = vld [vmem:[#allocation11 + $0x1d8] sm:$0xf]  ;;  %v5340_v43 = vor.u32 %v6863_v33, %v5337_v37 }
 0x29c   :  { %v6868_v42 = vld [vmem:[#allocation11 + $0x1f4] sm:$0xf0] }
 0x29d   :  { %v512_v59 = vrot.slane %v511_v52, 2  ;;  %1018 = vmatpush.bf16.msrb.mxu2 %v5204_v45  ;;  %v5344_v44 = vor.u32 %v6868_v42, %v5343_v41  ;;  %v6864_v45 = vld [vmem:[#allocation11 + $0x1dc] sm:$0xf]  ;;  %1052 = vmatpush.bf16.msra.mxu0 %v5340_v43  ;;  %v5215_v33 = vld [vmem:[#allocation11 + $0xd8] sm:$0xf] }
 0x29e   :  { %v6836_v37 = vld [vmem:[#allocation11 + $0xf4] sm:$0xf0]  ;;  %v6832_v41 = vld [vmem:[#allocation11 + $0xdc] sm:$0xf] }
 0x29f   :  { %v513_v2 = vadd.f32 %v512_v59, %v511_v52  ;;  %v6826_v52 = vld [vmem:[#allocation11 + $0xa4] sm:$0xf0]  ;;  %v5217_v42 = vld [vmem:[#allocation11 + $0xf8] sm:$0xf0]  ;;  %v5216_v43 = vor.u32 %v6836_v37, %v5215_v33 }
 0x2a0   :  { %v5168_v55 = vor.u32 %v6826_v52, %v5167_v51  ;;  %v5305_v51 = vld [vmem:[#allocation11 + $0x1b0] sm:$0xf0]  ;;  %v5311_v52 = vld [vmem:[#allocation11 + $0x198] sm:$0xf] }
 0x2a1   :  { %v514_v9 = vrot.slane %v513_v2, 1  ;;  %1019 = vmatpush.bf16.msrb.mxu2 %v5172_v58  ;;  %v5271_v58 = vld [vmem:[#allocation11 + $0x150] sm:$0xf] }
 0x2a2   :  { %1000 = vmatpush.bf16.msrb.mxu1 %v5168_v55 }
 0x2a3   :  { %v515_v17 = vadd.f32 %v514_v9, %v513_v2  ;;  %v5135_v2 = vld [vmem:[#allocation11 + $0x48] sm:$0xf]  ;;  %v5140_v9 = vor.u32 %v6814_v7, %v5137_v8  ;;  %v5239_v7 = vld [vmem:[#allocation11 + $0x110] sm:$0xf] }
 0x2a4   :  { %v5136_v6 = vor.u32 %v6818_v3, %v5135_v2  ;;  %v6852_v2 = vld [vmem:[#allocation11 + $0x174] sm:$0xf0]  ;;  %v6848_v3 = vld [vmem:[#allocation11 + $0x15c] sm:$0xf]  ;;  %v6843_v8 = vld [vmem:[#allocation11 + $0x12c] sm:$0xf0] }
 0x2a5   :  { %v516_v28 = vmul.f32 %v515_v17, %v7789_v35  ;;  %v5103_v17 = vld [vmem:[#allocation11 + $0x8] sm:$0xf]  ;;  %1020 = vmatpush.bf16.msrb.mxu2 %v5140_v9  ;;  %v5280_v5 = vor.u32 %v6852_v2, %v5279_v1  ;;  %v6820_v1 = vld [vmem:[#allocation11 + $0x74] sm:$0xf0]  ;;  %v6816_v2 = vld [vmem:[#allocation11 + $0x5c] sm:$0xf] }
 0x2a6   :  { %1001 = vmatpush.bf16.msrb.mxu1 %v5136_v6  ;;  %v5104_v27 = vor.u32 %v6810_v21, %v5103_v17  ;;  %v5281_v6 = vld [vmem:[#allocation11 + $0x178] sm:$0xf0]  ;;  %v5240_v17 = vor.u32 %v6843_v8, %v5239_v7  ;;  %v5252_v21 = vor.u32 %v6840_v15, %v5249_v16  ;;  %v6811_v7 = vld [vmem:[#allocation11 + $0x2c] sm:$0xf0]  ;;  %v6807_v8 = vld [vmem:[#allocation11 + $0x14] sm:$0xf] }
 0x2a7   :  { %v7843_v38 = vsub.f32 %v7831_v25, %v516_v28  ;;  %v7846_v39 = vsub.f32 %v7829_v24, %v516_v28  ;;  %v7849_v40 = vsub.f32 %v7833_v26, %v516_v28  ;;  %v7852_v46 = vsub.f32 %v7838_v30, %v516_v28  ;;  %v5159_v24 = vld [vmem:[#allocation11 + $0x80] sm:$0xf]  ;;  %v5119_v15 = vld [vmem:[#allocation11 + $0x18] sm:$0xf] }
 0x2a8   :  { %v5160_v26 = vor.u32 %v6825_v48, %v5159_v24  ;;  %v5108_v28 = vor.u32 %v6806_v22, %v5105_v23  ;;  %v5284_v9 = vor.u32 %v6848_v3, %v5281_v6  ;;  %v5153_v3 = vld [vmem:[#allocation11 + $0x78] sm:$0xf0]  ;;  %v5111_v6 = vld [vmem:[#allocation11 + $0x10] sm:$0xf] }
 0x2a9   :  { %v521_v47 = vmul.f32 %v7843_v38, %v7843_v38  ;;  %v522_v25 = vmul.f32 %v7846_v39, %v7846_v39  ;;  %v523_v53 = vmul.f32 %v7849_v40, %v7849_v40  ;;  %v524_v59 = vmul.f32 %v7852_v46, %v7852_v46 }
 0x2aa   :  { %962 = vmatpush.bf16.msra.mxu3 %v5160_v26  ;;  %1002 = vmatpush.bf16.msrb.mxu1 %v5104_v27  ;;  %v6855_v26 = vld [vmem:[#allocation11 + $0x194] sm:$0xf]  ;;  %v5207_v27 = vld [vmem:[#allocation11 + $0xd0] sm:$0xf] }
 0x2ab   :  { %v525_v30 = vadd.f32 %v522_v25, %v521_v47  ;;  %1021 = vmatpush.bf16.msrb.mxu2 %v5108_v28  ;;  %v5345_v47 = vld [vmem:[#allocation11 + $0x1f8] sm:$0xf0]  ;;  %v5303_v25 = vld [vmem:[#allocation11 + $0x190] sm:$0xf]  ;;  %v5308_v54 = vor.u32 %v6855_v26, %v5305_v51  ;;  %v5183_v26 = vld [vmem:[#allocation11 + $0x98] sm:$0xf] }
 0x2ac   :  { %v5348_v48 = vor.u32 %v6864_v45, %v5345_v47  ;;  %v5304_v50 = vor.u32 %v6859_v49, %v5303_v25  ;;  %v6835_v28 = vld [vmem:[#allocation11 + $0xec] sm:$0xf0]  ;;  %v6823_v25 = vld [vmem:[#allocation11 + $0x94] sm:$0xf]  ;;  %v6828_v51 = vld [vmem:[#allocation11 + $0xb4] sm:$0xf0] }
 0x2ad   :  { %v526_v60 = vadd.f32 %v525_v30, %v523_v53  ;;  %v6860_v53 = vld [vmem:[#allocation11 + $0x1b4] sm:$0xf0]  ;;  %1053 = vmatpush.bf16.msra.mxu0 %v5308_v54  ;;  %v5208_v31 = vor.u32 %v6835_v28, %v5207_v27  ;;  %v5175_v45 = vld [vmem:[#allocation11 + $0x90] sm:$0xf]  ;;  %v5177_v49 = vld [vmem:[#allocation11 + $0xb0] sm:$0xf0] }
 0x2ae   :  { %963 = vmatpush.bf16.msra.mxu3 %v5128_v0  ;;  %1071 = vmatpush.bf16.msra.mxu1 %v5344_v44  ;;  %v5312_v55 = vor.u32 %v6860_v53, %v5311_v52  ;;  %v5220_v44 = vor.u32 %v6832_v41, %v5217_v42  ;;  %v6827_v47 = vld [vmem:[#allocation11 + $0xac] sm:$0xf0]  ;;  %v6824_v52 = vld [vmem:[#allocation11 + $0x9c] sm:$0xf] }
 0x2af   :  { %v527_v4 = vadd.f32 %v526_v60, %v524_v59  ;;  %1090 = vmatpush.bf16.msra.mxu2 %v5348_v48  ;;  %v5316_v59 = vor.u32 %v6856_v56, %v5313_v57  ;;  %v6851_v60 = vld [vmem:[#allocation11 + $0x16c] sm:$0xf0]  ;;  %v5176_v48 = vor.u32 %v6827_v47, %v5175_v45  ;;  %v5185_v53 = vld [vmem:[#allocation11 + $0xb8] sm:$0xf0] }
 0x2b0   :  { %v5272_v0 = vor.u32 %v6851_v60, %v5271_v58  ;;  %v5188_v56 = vor.u32 %v6824_v52, %v5185_v53  ;;  %v5143_v57 = vld [vmem:[#allocation11 + $0x50] sm:$0xf]  ;;  %v6815_v60 = vld [vmem:[#allocation11 + $0x54] sm:$0xf]  ;;  %v7882_v41 = vld [vmem:[%s8884_s8] sm:$0xff] }
 0x2b1   :  { %v528_v10 = vrot.slane %v527_v4, 4  ;;  %v6819_v58 = vld [vmem:[#allocation11 + $0x6c] sm:$0xf0]  ;;  %v622_v45 = vperm.slane %v7882_v41, 1  ;;  %v621_v53 = vperm.slane %v7882_v41, 0 }
 0x2b2   :  { %964 = vmatpush.bf16.msra.mxu3 %v5096_v13  ;;  %1072 = vmatpush.bf16.msra.mxu1 %v5312_v55  ;;  %v6844_v13 = vld [vmem:[#allocation11 + $0x134] sm:$0xf0]  ;;  %v5184_v55 = vor.u32 %v6828_v51, %v5183_v26 }
 0x2b3   :  { %v529_v18 = vadd.f32 %v528_v10, %v527_v4  ;;  %v5276_v4 = vor.u32 %v6847_v61, %v5273_v62  ;;  %1091 = vmatpush.bf16.msra.mxu2 %v5316_v59  ;;  %v6839_v10 = vld [vmem:[#allocation11 + $0x114] sm:$0xf]  ;;  %v5248_v20 = vor.u32 %v6844_v13, %v5247_v12  ;;  %v5144_v59 = vor.u32 %v6819_v58, %v5143_v57  ;;  %v5151_v62 = vld [vmem:[#allocation11 + $0x58] sm:$0xf] }
 0x2b4   :  { %v5145_v61 = vld [vmem:[#allocation11 + $0x70] sm:$0xf0]  ;;  %v5112_v13 = vor.u32 %v6811_v7, %v5111_v6 }
 0x2b5   :  { %v530_v29 = vrot.slane %v529_v18, 2  ;;  %1054 = vmatpush.bf16.msra.mxu0 %v5276_v4  ;;  %v5152_v4 = vor.u32 %v6820_v1, %v5151_v62 }
 0x2b6   :  { %1033 = vmatpush.bf16.msrb.mxu3 %v5336_v36  ;;  %1073 = vmatpush.bf16.msra.mxu1 %v5280_v5  ;;  %v5156_v5 = vor.u32 %v6816_v2, %v5153_v3 }
 0x2b7   :  { %v531_v34 = vadd.f32 %v530_v29, %v529_v18  ;;  %v5244_v18 = vor.u32 %v6839_v10, %v5241_v11  ;;  %1092 = vmatpush.bf16.msra.mxu2 %v5284_v9  ;;  %v6831_v29 = vld [vmem:[#allocation11 + $0xd4] sm:$0xf] }
 0x2b8   :  { %v5212_v36 = vor.u32 %v6831_v29, %v5209_v32  ;;  %v5113_v10 = vld [vmem:[#allocation11 + $0x30] sm:$0xf0] }
 0x2b9   :  { %v532_v24 = vrot.slane %v531_v34, 1  ;;  %1055 = vmatpush.bf16.msra.mxu0 %v5244_v18  ;;  %v5116_v16 = vor.u32 %v6807_v8, %v5113_v10  ;;  %v6808_v18 = vld [vmem:[#allocation11 + $0x1c] sm:$0xf]  ;;  %v6931_v10 = vld [vmem:[#allocation14 + $0x1ec] sm:$0xf0] }
 0x2ba   :  { %1034 = vmatpush.bf16.msrb.mxu3 %v5304_v50  ;;  %1074 = vmatpush.bf16.msra.mxu1 %v5248_v20  ;;  %v5180_v50 = vor.u32 %v6823_v25, %v5177_v49  ;;  %v5121_v20 = vld [vmem:[#allocation11 + $0x38] sm:$0xf0]  ;;  %v623_v25 = vperm.slane %v7882_v41, 2 }
 0x2bb   :  { %v533_v30 = vadd.f32 %v532_v24, %v531_v34  ;;  %1093 = vmatpush.bf16.msra.mxu2 %v5252_v21  ;;  %v5124_v28 = vor.u32 %v6808_v18, %v5121_v20 }
 0x2bd   :  { %v7863_v63 = vmul.f32 %v533_v30, %v7789_v35  ;;  %1056 = vmatpush.bf16.msra.mxu0 %v5212_v36 }
 0x2be   :  { %1035 = vmatpush.bf16.msrb.mxu3 %v5272_v0  ;;  %1075 = vmatpush.bf16.msra.mxu1 %v5216_v43  ;;  %v5148_v0 = vor.u32 %v6815_v60, %v5145_v61 }
 0x2bf   :  { %7269 = vrsqrt.f32 %v7863_v63  ;;  %vm541_vm11 = vweird.f32 %v7863_v63  ;;  %1094 = vmatpush.bf16.msra.mxu2 %v5220_v44 }
 0x2c1   :  { %1057 = vmatpush.bf16.msra.mxu0 %v5180_v50 }
 0x2c2   :  { %1036 = vmatpush.bf16.msrb.mxu3 %v5240_v17  ;;  %1076 = vmatpush.bf16.msra.mxu1 %v5184_v55  ;;  %v6812_v17 = vld [vmem:[#allocation11 + $0x34] sm:$0xf0]  ;;  %v624_v55 = vperm.slane %v7882_v41, 3 }
 0x2c3   :  { %1095 = vmatpush.bf16.msra.mxu2 %v5188_v56 }
 0x2c5   :  { %v7270_v22 = vpop.eup %7269  ;;  %1058 = vmatpush.bf16.msra.mxu0 %v5148_v0 }
 0x2c6   :  { %v536_v23 = vmul.f32 %v7270_v22, %v7863_v63  ;;  %vm542_vm10 = vweird.f32 %v7270_v22  ;;  %1037 = vmatpush.bf16.msrb.mxu3 %v5208_v31  ;;  %1077 = vmatpush.bf16.msra.mxu1 %v5152_v4 }
 0x2c7   :  { %vm7869_vm12 = vmor %vm541_vm11, %vm542_vm10  ;;  %1096 = vmatpush.bf16.msra.mxu2 %v5156_v5 }
 0x2c8   :  { %v537_v34 = vmul.f32 %v7270_v22, %v536_v23 }
 0x2c9   :  { %1059 = vmatpush.bf16.msra.mxu0 %v5116_v16  ;;  %v5719_v16 = vld [vmem:[#allocation14 + $0x2e0] sm:$0xf] }
 0x2ca   :  { %v538_v24 = vmul.f32 0.5, %v537_v34  ;;  %1038 = vmatpush.bf16.msrb.mxu3 %v5176_v48 }
 0x2cb   :  { %1097 = vmatpush.bf16.msra.mxu2 %v5124_v28 }
 0x2cc   :  { %v539_v30 = vsub.f32 1.5, %v538_v24 }
 0x2ce   :  { %v540_v63 = vmul.f32 %v7270_v22, %v539_v30  ;;  %1039 = vmatpush.bf16.msrb.mxu3 %v5144_v59 }
 0x2d0   :  { %v544_v9 = vsel %vm7869_vm12, %v7270_v22, %v540_v63  ;;  %v5120_v22 = vor.u32 %v6812_v17, %v5119_v15  ;;  %v6963_v17 = vld [vmem:[#allocation14 + $0x2ec] sm:$0xf0] }
 0x2d1   :  { %v545_v11 = vmul.f32 %v544_v9, %v7843_v38  ;;  %v546_v12 = vmul.f32 %v544_v9, %v7846_v39  ;;  %v547_v38 = vmul.f32 %v544_v9, %v7849_v40  ;;  %v548_v39 = vmul.f32 %v544_v9, %v7852_v46  ;;  %v5591_v9 = vld [vmem:[#allocation14 + $0x1e0] sm:$0xf] }
 0x2d2   :  { %1040 = vmatpush.bf16.msrb.mxu3 %v5112_v13  ;;  %1078 = vmatpush.bf16.msra.mxu1 %v5120_v22  ;;  %v5592_v15 = vor.u32 %v6931_v10, %v5591_v9 }
 0x2d3   :  { %v549_v21 = vmax.f32 %v545_v11, 0.0  ;;  %v550_v23 = vmax.f32 %v546_v12, 0.0  ;;  %v551_v29 = vmax.f32 %v547_v38, 0.0  ;;  %v552_v31 = vmax.f32 %v548_v39, 0.0 }
 0x2d5   :  { %v553_v27 = vpack.c.bf16 %v550_v23, %v549_v21  ;;  %v554_v32 = vpack.c.bf16 %v552_v31, %v551_v29 }
 0x2d7   :  { %965 = vmatmul.bf16.vlgmr.msra.gmra.mxu3 %v553_v27  ;;  %984 = vmatmul.bf16.vlgmr.msrb.gmra.mxu0 %v553_v27 }
 0x2d8   :  { %1003 = vmatmul.bf16.vlgmr.msrb.gmra.mxu1 %v553_v27  ;;  %1022 = vmatmul.bf16.vlgmr.msrb.gmra.mxu2 %v553_v27 }
 0x2d9   :  { %3221 = vmatpush.bf16.msrb.mxu0 %v5592_v15 }
 0x2e7   :  { %970 = vmatmul.bf16.gmra.mxu3 %v554_v32  ;;  %989 = vmatmul.bf16.gmra.mxu0 %v554_v32 }
 0x2e8   :  { %1008 = vmatmul.bf16.gmra.mxu1 %v554_v32  ;;  %1027 = vmatmul.bf16.gmra.mxu2 %v554_v32 }
 0x2f7   :  { %1041 = vmatmul.bf16.vlgmr.msrb.gmra.mxu3 %v553_v27  ;;  %1060 = vmatmul.bf16.vlgmr.msra.gmra.mxu0 %v553_v27 }
 0x2f8   :  { %1079 = vmatmul.bf16.vlgmr.msra.gmra.mxu1 %v553_v27  ;;  %1098 = vmatmul.bf16.vlgmr.msra.gmra.mxu2 %v553_v27  ;;  %v5720_v27 = vor.u32 %v6963_v17, %v5719_v16 }
 0x2fa   :  { %3234 = vmatpush.bf16.msrb.mxu1 %v5720_v27 }
 0x307   :  { %1046 = vmatmul.bf16.gmra.mxu3 %v554_v32  ;;  %1065 = vmatmul.bf16.gmra.mxu0 %v554_v32 }
 0x308   :  { %1084 = vmatmul.bf16.gmra.mxu1 %v554_v32  ;;  %1103 = vmatmul.bf16.gmra.mxu2 %v554_v32 }
 0x354   :  { %v985_v33 = vpop.f32.mrf.mxu0 }
 0x355   :  { %v1004_v34 = vpop.f32.mrf.mxu1  ;;  %v7890_v49 = vadd.f32 %v985_v33, %v622_v45 }
 0x356   :  { %v7894_v50 = vadd.f32 %v1004_v34, %v623_v25 }
 0x35a   :  { %v966_v40 = vpop.f32.mrf.mxu3 }
 0x35b   :  { %v1023_v36 = vpop.f32.mrf.mxu2  ;;  %v7914_v1 = vadd.f32 %v966_v40, %v621_v53 }
 0x35c   :  { %v987_v46 = vpop.f32.mrf.mxu0  ;;  %v7919_v4 = vadd.f32 %v1023_v36, %v624_v55 }
 0x35d   :  { %v1006_v37 = vpop.f32.mrf.mxu1  ;;  %v7886_v24 = vadd.f32 %v987_v46, %v622_v45 }
 0x35e   :  { %v7888_v48 = vadd.f32 %v1006_v37, %v623_v25 }
 0x35f   :  { %v1118_v30 = vadd.f32 %v7886_v24, %v7890_v49 }
 0x360   :  { %v1127_v56 = vadd.f32 %v7888_v48, %v7894_v50 }
 0x362   :  { %v968_v42 = vpop.f32.mrf.mxu3 }
 0x363   :  { %v1025_v43 = vpop.f32.mrf.mxu2  ;;  %v7904_v58 = vadd.f32 %v968_v42, %v621_v53 }
 0x364   :  { %v990_v44 = vpop.f32.mrf.mxu0  ;;  %v7909_v62 = vadd.f32 %v1025_v43, %v624_v55 }
 0x365   :  { %v1009_v47 = vpop.f32.mrf.mxu1  ;;  %v7892_v26 = vadd.f32 %v990_v44, %v622_v45  ;;  %v1109_v7 = vadd.f32 %v7904_v58, %v7914_v1 }
 0x366   :  { %v7896_v51 = vadd.f32 %v1009_v47, %v623_v25  ;;  %v1136_v11 = vadd.f32 %v7909_v62, %v7919_v4  ;;  %v7937_v47 = vperm.slane %v7882_v41, 5 }
 0x367   :  { %v1119_v59 = vadd.f32 %v1118_v30, %v7892_v26 }
 0x368   :  { %v1128_v63 = vadd.f32 %v1127_v56, %v7896_v51 }
 0x36a   :  { %v971_v52 = vpop.f32.mrf.mxu3 }
 0x36b   :  { %v1028_v54 = vpop.f32.mrf.mxu2  ;;  %v7916_v2 = vadd.f32 %v971_v52, %v621_v53 }
 0x36c   :  { %v992_v57 = vpop.f32.mrf.mxu0  ;;  %v7921_v5 = vadd.f32 %v1028_v54, %v624_v55 }
 0x36d   :  { %v7907_v60 = vadd.f32 %v992_v57, %v622_v45  ;;  %v1011_v61 = vpop.f32.mrf.mxu1  ;;  %v1110_v18 = vadd.f32 %v1109_v7, %v7916_v2 }
 0x36e   :  { %v7912_v0 = vadd.f32 %v1011_v61, %v623_v25  ;;  %v1137_v22 = vadd.f32 %v1136_v11, %v7921_v5  ;;  %v7940_v25 = vperm.slane %v7882_v41, 6  ;;  %v7946_v61 = vperm.slane %v7882_v41, 4 }
 0x36f   :  { %v1120_v3 = vadd.f32 %v1119_v59, %v7907_v60 }
 0x370   :  { %v1129_v6 = vadd.f32 %v1128_v63, %v7912_v0 }
 0x371   :  { %v1121_v8 = vrot.slane %v1120_v3, 4 }
 0x372   :  { %v1130_v12 = vrot.slane %v1129_v6, 4  ;;  %v973_v13 = vpop.f32.mrf.mxu3 }
 0x373   :  { %v1122_v20 = vadd.f32 %v1121_v8, %v1120_v3  ;;  %v7929_v21 = vadd.f32 %v973_v13, %v621_v53  ;;  %v1030_v23 = vpop.f32.mrf.mxu2 }
 0x374   :  { %v1131_v28 = vadd.f32 %v1130_v12, %v1129_v6  ;;  %v7932_v38 = vadd.f32 %v1030_v23, %v624_v55  ;;  %v1061_v39 = vpop.f32.mrf.mxu0 }
 0x375   :  { %v1123_v29 = vrot.slane %v1122_v20, 2  ;;  %v1111_v31 = vadd.f32 %v1110_v18, %v7929_v21  ;;  %v1080_v32 = vpop.f32.mrf.mxu1  ;;  %v7950_v7 = vadd.f32 %v1061_v39, %v7937_v47 }
 0x376   :  { %v1132_v33 = vrot.slane %v1131_v28, 2  ;;  %v1138_v34 = vadd.f32 %v1137_v22, %v7932_v38  ;;  %v7953_v8 = vadd.f32 %v1080_v32, %v7940_v25 }
 0x377   :  { %v1124_v40 = vadd.f32 %v1123_v29, %v1122_v20  ;;  %v1112_v36 = vrot.slane %v1111_v31, 4 }
 0x378   :  { %v1133_v46 = vadd.f32 %v1132_v33, %v1131_v28  ;;  %v1139_v37 = vrot.slane %v1138_v34, 4  ;;  %v5575_v33 = vld [vmem:[#allocation14 + $0x1c0] sm:$0xf] }
 0x379   :  { %v1125_v42 = vrot.slane %v1124_v40, 1  ;;  %v1113_v43 = vadd.f32 %v1112_v36, %v1111_v31 }
 0x37a   :  { %v1134_v44 = vrot.slane %v1133_v46, 1  ;;  %v1140_v45 = vadd.f32 %v1139_v37, %v1138_v34  ;;  %v1042_v52 = vpop.f32.mrf.mxu3 }
 0x37b   :  { %v1126_v53 = vadd.f32 %v1125_v42, %v1124_v40  ;;  %v1114_v30 = vrot.slane %v1113_v43, 2  ;;  %v7942_v56 = vpop.f32.mrf.mxu2  ;;  %v6927_v42 = vld [vmem:[#allocation14 + $0x1cc] sm:$0xf0] }
 0x37c   :  { %v1135_v54 = vadd.f32 %v1134_v44, %v1133_v46  ;;  %v1141_v55 = vrot.slane %v1140_v45, 2  ;;  %v1063_v57 = vpop.f32.mrf.mxu0  ;;  %v6959_v44 = vld [vmem:[#allocation14 + $0x2cc] sm:$0xf0] }
 0x37d   :  { %v1182_v59 = vmul.f32 %v1126_v53, %v7789_v35  ;;  %v1082_v63 = vpop.f32.mrf.mxu1  ;;  %v1115_v6 = vadd.f32 %v1114_v30, %v1113_v43  ;;  %v5703_v43 = vld [vmem:[#allocation14 + $0x2c0] sm:$0xf] }
 0x37e   :  { %v1183_v3 = vmul.f32 %v1135_v54, %v7789_v35  ;;  %v1142_v12 = vadd.f32 %v1141_v55, %v1140_v45  ;;  %v7994_v18 = vadd.f32 %v1082_v63, %v7940_v25 }
 0x37f   :  { %v7956_v9 = vsub.f32 %v7890_v49, %v1182_v59  ;;  %v7959_v10 = vsub.f32 %v7886_v24, %v1182_v59  ;;  %v7962_v11 = vsub.f32 %v7892_v26, %v1182_v59  ;;  %v7965_v13 = vsub.f32 %v7907_v60, %v1182_v59 }
 0x380   :  { %v7968_v15 = vsub.f32 %v7894_v50, %v1183_v3  ;;  %v7971_v16 = vsub.f32 %v7888_v48, %v1183_v3  ;;  %v7974_v17 = vsub.f32 %v7896_v51, %v1183_v3  ;;  %v7981_v26 = vsub.f32 %v7912_v0, %v1183_v3 }
 0x381   :  { %v1222_v24 = vmul.f32 %v7956_v9, %v7956_v9  ;;  %v1230_v49 = vmul.f32 %v7959_v10, %v7959_v10  ;;  %v7984_v60 = vadd.f32 %v1042_v52, %v7946_v61  ;;  %v7991_v51 = vadd.f32 %v1063_v57, %v7937_v47 }
 0x382   :  { %v1223_v50 = vmul.f32 %v7968_v15, %v7968_v15  ;;  %v1231_v48 = vmul.f32 %v7971_v16, %v7971_v16  ;;  %v1044_v20 = vpop.f32.mrf.mxu3  ;;  %v1238_v0 = vmul.f32 %v7962_v11, %v7962_v11  ;;  %v1116_v27 = vrot.slane %v1115_v6, 1 }
 0x383   :  { %v1262_v23 = vadd.f32 %v1230_v49, %v1222_v24  ;;  %v1143_v22 = vrot.slane %v1142_v12, 1  ;;  %v1246_v28 = vmul.f32 %v7965_v13, %v7965_v13  ;;  %v1239_v39 = vmul.f32 %v7974_v17, %v7974_v17  ;;  %v8011_v30 = vpop.f32.mrf.mxu2 }
 0x384   :  { %v1271_v29 = vadd.f32 %v1231_v48, %v1223_v50  ;;  %v8003_v31 = vadd.f32 %v1044_v20, %v7946_v61  ;;  %v1066_v32 = vpop.f32.mrf.mxu0  ;;  %v1247_v40 = vmul.f32 %v7981_v26, %v7981_v26  ;;  %v1117_v36 = vadd.f32 %v1116_v27, %v1115_v6 }
 0x385   :  { %v1263_v34 = vadd.f32 %v1262_v23, %v1238_v0  ;;  %v1144_v46 = vadd.f32 %v1143_v22, %v1142_v12  ;;  %v1085_v37 = vpop.f32.mrf.mxu1  ;;  %v1154_v52 = vadd.f32 %v7991_v51, %v7950_v7  ;;  %v1163_v53 = vadd.f32 %v7994_v18, %v7953_v8 }
 0x386   :  { %v1272_v45 = vadd.f32 %v1271_v29, %v1239_v39  ;;  %v8014_v54 = vadd.f32 %v1066_v32, %v7937_v47  ;;  %v1181_v57 = vmul.f32 %v1117_v36, %v7789_v35  ;;  %v1145_v63 = vadd.f32 %v8003_v31, %v7984_v60 }
 0x387   :  { %v1264_v55 = vadd.f32 %v1263_v34, %v1246_v28  ;;  %v1184_v59 = vmul.f32 %v1144_v46, %v7789_v35  ;;  %v8021_v6 = vadd.f32 %v1085_v37, %v7940_v25  ;;  %v5576_v12 = vor.u32 %v6927_v42, %v5575_v33 }
 0x388   :  { %v1273_v3 = vadd.f32 %v1272_v45, %v1247_v40  ;;  %v5704_v24 = vor.u32 %v6959_v44, %v5703_v43  ;;  %v8024_v50 = vsub.f32 %v7914_v1, %v1181_v57  ;;  %v8027_v48 = vsub.f32 %v7904_v58, %v1181_v57 }
 0x389   :  { %v1265_v49 = vrot.slane %v1264_v55, 4  ;;  %v8030_v20 = vsub.f32 %v7916_v2, %v1181_v57  ;;  %v8033_v23 = vsub.f32 %v7929_v21, %v1181_v57  ;;  %v8036_v27 = vsub.f32 %v7919_v4, %v1184_v59  ;;  %3222 = vmatpush.bf16.msrb.mxu0 %v5576_v12  ;;  %v6899_v57 = vld [vmem:[#allocation14 + $0xec] sm:$0xf0] }
 0x38a   :  { %v1274_v0 = vrot.slane %v1273_v3, 4  ;;  %v8039_v22 = vsub.f32 %v7909_v62, %v1184_v59  ;;  %v1047_v28 = vpop.f32.mrf.mxu3  ;;  %3235 = vmatpush.bf16.msrb.mxu1 %v5704_v24  ;;  %v1221_v58 = vmul.f32 %v8024_v50, %v8024_v50  ;;  %v1229_v2 = vmul.f32 %v8027_v48, %v8027_v48 }
 0x38b   :  { %v1266_v1 = vadd.f32 %v1265_v49, %v1264_v55  ;;  %v1155_v39 = vadd.f32 %v1154_v52, %v8014_v54  ;;  %v1237_v4 = vmul.f32 %v8030_v20, %v8030_v20  ;;  %v8049_v29 = vsub.f32 %v7921_v5, %v1184_v59  ;;  %v5463_v55 = vld [vmem:[#allocation14 + $0xe0] sm:$0xf]  ;;  %v1104_v12 = vpop.f32.mrf.mxu2 }
 0x38c   :  { %v1275_v21 = vadd.f32 %v1274_v0, %v1273_v3  ;;  %v8052_v62 = vsub.f32 %v7932_v38, %v1184_v59  ;;  %v1253_v33 = vadd.f32 %v1229_v2, %v1221_v58  ;;  %v1224_v34 = vmul.f32 %v8036_v27, %v8036_v27  ;;  %v1068_v36 = vpop.f32.mrf.mxu0  ;;  %v5847_v49 = vld [vmem:[#allocation14 + $0x3e0] sm:$0xf]  ;;  %v6995_v0 = vld [vmem:[#allocation14 + $0x3ec] sm:$0xf0] }
 0x38d   :  { %v1267_v32 = vrot.slane %v1266_v1, 2  ;;  %v1232_v40 = vmul.f32 %v8039_v22, %v8039_v22  ;;  %v1087_v46 = vpop.f32.mrf.mxu1  ;;  %v1245_v42 = vmul.f32 %v8033_v23, %v8033_v23  ;;  %v1164_v5 = vadd.f32 %v1163_v53, %v8021_v6 }
 0x38e   :  { %v1276_v37 = vrot.slane %v1275_v21, 2  ;;  %v8062_v43 = vadd.f32 %v1047_v28, %v7946_v61  ;;  %v1254_v44 = vadd.f32 %v1253_v33, %v1237_v4  ;;  %v1240_v45 = vmul.f32 %v8049_v29, %v8049_v29 }
 0x38f   :  { %v1268_v38 = vadd.f32 %v1267_v32, %v1266_v1  ;;  %v1280_v52 = vadd.f32 %v1232_v40, %v1224_v34  ;;  %v1248_v3 = vmul.f32 %v8052_v62, %v8052_v62  ;;  %v8069_v24 = vadd.f32 %v1068_v36, %v7937_v47 }
 0x390   :  { %v1277_v59 = vadd.f32 %v1276_v37, %v1275_v21  ;;  %v8072_v53 = vadd.f32 %v1087_v46, %v7940_v25  ;;  %v1255_v1 = vadd.f32 %v1254_v44, %v1245_v42  ;;  %v1146_v2 = vadd.f32 %v1145_v63, %v8062_v43 }
 0x391   :  { %v1269_v28 = vrot.slane %v1268_v38, 1  ;;  %v1281_v58 = vadd.f32 %v1280_v52, %v1240_v45  ;;  %v1156_v21 = vadd.f32 %v1155_v39, %v8069_v24  ;;  %v5464_v33 = vor.u32 %v6899_v57, %v5463_v55 }
 0x392   :  { %v1278_v4 = vrot.slane %v1277_v59, 1  ;;  %v1165_v32 = vadd.f32 %v1164_v5, %v8072_v53  ;;  %v1049_v34 = vpop.f32.mrf.mxu3  ;;  %v1256_v47 = vrot.slane %v1255_v1, 4  ;;  %v5848_v37 = vor.u32 %v6995_v0, %v5847_v49 }
 0x393   :  { %v1270_v40 = vadd.f32 %v1269_v28, %v1268_v38  ;;  %v1282_v36 = vadd.f32 %v1281_v58, %v1248_v3  ;;  %v1157_v46 = vrot.slane %v1156_v21, 4  ;;  %3208 = vmatpush.bf16.msra.mxu3 %v5464_v33  ;;  %v8078_v42 = vadd.f32 %v1049_v34, %v7946_v61  ;;  %v6923_v58 = vld [vmem:[#allocation14 + $0x1ac] sm:$0xf0] }
 0x394   :  { %v1279_v25 = vadd.f32 %v1278_v4, %v1277_v59  ;;  %v1166_v19 = vrot.slane %v1165_v32, 4  ;;  %v1257_v44 = vadd.f32 %v1256_v47, %v1255_v1  ;;  %3247 = vmatpush.bf16.msrb.mxu2 %v5848_v37  ;;  %v628_v61 = vperm.slane %v7882_v41, 7  ;;  %v5559_v1 = vld [vmem:[#allocation14 + $0x1a0] sm:$0xf]  ;;  %v6955_v33 = vld [vmem:[#allocation14 + $0x2ac] sm:$0xf0] }
 0x395   :  { %v8081_v63 = vmul.f32 %v1270_v40, %v7789_v35  ;;  %v1283_v39 = vrot.slane %v1282_v36, 4  ;;  %v1158_v38 = vadd.f32 %v1157_v46, %v1156_v21  ;;  %v1147_v52 = vadd.f32 %v1146_v2, %v8078_v42  ;;  %v1106_v2 = vpop.f32.mrf.mxu2  ;;  %v6895_v37 = vld [vmem:[#allocation14 + $0xcc] sm:$0xf0] }
 0x396   :  { %v8084_v5 = vmul.f32 %v1279_v25, %v7789_v35  ;;  %v1167_v45 = vadd.f32 %v1166_v19, %v1165_v32  ;;  %v1258_v55 = vrot.slane %v1257_v44, 2  ;;  %v8091_v28 = vadd.f32 %v8011_v30, %v628_v61  ;;  %v5687_v32 = vld [vmem:[#allocation14 + $0x2a0] sm:$0xf] }
 0x397   :  { %7271 = vrsqrt.f32 %v8081_v63  ;;  %v1284_v57 = vadd.f32 %v1283_v39, %v1282_v36  ;;  %v1159_v59 = vrot.slane %v1158_v38, 2  ;;  %v1148_v4 = vrot.slane %v1147_v52, 4  ;;  %v5447_v36 = vld [vmem:[#allocation14 + $0xc0] sm:$0xf] }
 0x398   :  { %7273 = vrsqrt.f32 %v8084_v5  ;;  %v1168_v3 = vrot.slane %v1167_v45, 2  ;;  %v1259_v49 = vadd.f32 %v1258_v55, %v1257_v44  ;;  %v5560_v21 = vor.u32 %v6923_v58, %v5559_v1 }
 0x399   :  { %v1285_v0 = vrot.slane %v1284_v57, 2  ;;  %v1160_v19 = vadd.f32 %v1159_v59, %v1158_v38  ;;  %v8094_v41 = vadd.f32 %v7942_v56, %v628_v61  ;;  %v8096_v25 = vadd.f32 %v1104_v12, %v628_v61 }
 0x39a   :  { %v1260_v34 = vrot.slane %v1259_v49, 1  ;;  %v1169_v47 = vadd.f32 %v1168_v3, %v1167_v45  ;;  %3223 = vmatpush.bf16.msrb.mxu0 %v5560_v21  ;;  %v5688_v46 = vor.u32 %v6955_v33, %v5687_v32  ;;  %v5448_v44 = vor.u32 %v6895_v37, %v5447_v36 }
 0x39b   :  { %v1286_v40 = vadd.f32 %v1285_v0, %v1284_v57  ;;  %v1161_v30 = vrot.slane %v1160_v19, 1  ;;  %v1172_v59 = vadd.f32 %v8091_v28, %v8094_v41  ;;  %v8100_v1 = vadd.f32 %v1106_v2, %v628_v61 }
 0x39c   :  { %v1261_v38 = vadd.f32 %v1260_v34, %v1259_v49  ;;  %v1149_v3 = vadd.f32 %v1148_v4, %v1147_v52  ;;  %3236 = vmatpush.bf16.msrb.mxu1 %v5688_v46  ;;  %3209 = vmatpush.bf16.msra.mxu3 %v5448_v44  ;;  %v1170_v49 = vrot.slane %v1169_v47, 1  ;;  %vm1349_vm14 = vweird.f32 %v8081_v63 }
 0x39d   :  { %v7272_v39 = vpop.eup %7271  ;;  %v1287_v55 = vrot.slane %v1286_v40, 1  ;;  %v1162_v45 = vadd.f32 %v1161_v30, %v1160_v19  ;;  %v1173_v32 = vadd.f32 %v1172_v59, %v8096_v25  ;;  %vm1359_vm3 = vweird.f32 %v8084_v5 }
 0x39e   :  { %v7274_v57 = vpop.eup %7273  ;;  %v1344_v56 = vmul.f32 %v7272_v39, %v8081_v63  ;;  %v8105_v0 = vmul.f32 %v1261_v38, %v7789_v35  ;;  %v1171_v36 = vadd.f32 %v1170_v49, %v1169_v47  ;;  %v1150_v37 = vrot.slane %v1149_v3, 2 }
 0x39f   :  { %v1354_v12 = vmul.f32 %v7274_v57, %v8084_v5  ;;  %v1288_v58 = vadd.f32 %v1287_v55, %v1286_v40  ;;  %v1186_v61 = vmul.f32 %v1162_v45, %v7789_v35  ;;  %v8120_v34 = vadd.f32 %v1173_v32, %v8100_v1 }
 0x3a0   :  { %v1345_v21 = vmul.f32 %v7272_v39, %v1344_v56  ;;  %7275 = vrsqrt.f32 %v8105_v0  ;;  %vm1350_vm13 = vweird.f32 %v7272_v39  ;;  %vm1360_vm15 = vweird.f32 %v7274_v57 }
 0x3a1   :  { %v1355_v2 = vmul.f32 %v7274_v57, %v1354_v12  ;;  %v8111_v19 = vmul.f32 %v1288_v58, %v7789_v35  ;;  %v8114_v4 = vsub.f32 %v7950_v7, %v1186_v61  ;;  %v8117_v33 = vsub.f32 %v7991_v51, %v1186_v61  ;;  %vm1351_vm1 = vmor %vm1349_vm14, %vm1350_vm13 }
 0x3a2   :  { %v1346_v52 = vmul.f32 0.5, %v1345_v21  ;;  %v8128_v51 = vsub.f32 %v8014_v54, %v1186_v61  ;;  %v8132_v55 = vsub.f32 %v8069_v24, %v1186_v61  ;;  %v8136_v56 = vmul.f32 %v1171_v36, %v7789_v35  ;;  %vm1361_vm4 = vmor %vm1359_vm3, %vm1360_vm15 }
 0x3a3   :  { %v1356_v40 = vmul.f32 0.5, %v1355_v2  ;;  %7277 = vrsqrt.f32 %v8111_v19  ;;  %v1226_v46 = vmul.f32 %v8114_v4, %v8114_v4  ;;  %v1234_v7 = vmul.f32 %v8117_v33, %v8117_v33 }
 0x3a4   :  { %v1347_v30 = vsub.f32 1.5, %v1346_v52  ;;  %v1175_v45 = vrot.slane %v8120_v34, 4  ;;  %v8140_v49 = vadd.f32 %v1150_v37, %v1149_v3  ;;  %vm1339_vm5 = vweird.f32 %v8105_v0 }
 0x3a5   :  { %v1357_v44 = vsub.f32 1.5, %v1356_v40  ;;  %v1298_v58 = vadd.f32 %v1234_v7, %v1226_v46  ;;  %v1242_v5 = vmul.f32 %v8128_v51, %v8128_v51  ;;  %v1250_v3 = vmul.f32 %v8132_v55, %v8132_v55 }
 0x3a6   :  { %v1348_v38 = vmul.f32 %v7272_v39, %v1347_v30  ;;  %v7276_v47 = vpop.eup %7275  ;;  %vm1369_vm7 = vweird.f32 %v8111_v19 }
 0x3a7   :  { %v1358_v59 = vmul.f32 %v7274_v57, %v1357_v44  ;;  %v1334_v54 = vmul.f32 %v7276_v47, %v8105_v0  ;;  %v1299_v37 = vadd.f32 %v1298_v58, %v1242_v5  ;;  %vm1340_vm6 = vweird.f32 %v7276_v47 }
 0x3a8   :  { %v1352_v12 = vsel %vm1351_vm1, %v7272_v39, %v1348_v38  ;;  %vm1341_vm8 = vmor %vm1339_vm5, %vm1340_vm6  ;;  %v1152_v0 = vrot.slane %v8140_v49, 1  ;;  %vm1903_vm6 = vcmask 1041409  }
 0x3a9   :  { %v8142_v63 = vpop.eup %7277  ;;  %v1430_v24 = vmul.f32 %v1352_v12, %v7962_v11  ;;  %v1438_v21 = vmul.f32 %v1352_v12, %v7965_v13  ;;  %v1362_v32 = vsel %vm1361_vm4, %v7274_v57, %v1358_v59  ;;  %v1335_v39 = vmul.f32 %v7276_v47, %v1334_v54 }
 0x3aa   :  { %v1364_v61 = vmul.f32 %v8142_v63, %v8111_v19  ;;  %v8156_v11 = vsub.f32 %v7953_v8, %v8136_v56  ;;  %v8160_v13 = vsub.f32 %v7994_v18, %v8136_v56  ;;  %v1414_v40 = vmul.f32 %v1352_v12, %v7956_v9 }
 0x3ab   :  { %v1462_v2 = vmax.f32 %v1430_v24, 0.0  ;;  %v1470_v52 = vmax.f32 %v1438_v21, 0.0  ;;  %v1431_v57 = vmul.f32 %v1362_v32, %v7974_v17  ;;  %v1439_v36 = vmul.f32 %v1362_v32, %v7981_v26 }
 0x3ac   :  { %v1422_v30 = vmul.f32 %v1352_v12, %v7959_v10  ;;  %v1336_v7 = vmul.f32 0.5, %v1335_v39  ;;  %v1365_v44 = vmul.f32 %v8142_v63, %v1364_v61  ;;  %v1415_v8 = vmul.f32 %v1362_v32, %v7968_v15 }
 0x3ad   :  { %v1540_v46 = vmax.f32 %v1462_v2, %v1470_v52  ;;  %v1423_v38 = vmul.f32 %v1362_v32, %v7971_v16  ;;  %v1463_v59 = vmax.f32 %v1431_v57, 0.0  ;;  %v1471_v18 = vmax.f32 %v1439_v36, 0.0 }
 0x3ae   :  { %v1337_v24 = vsub.f32 1.5, %v1336_v7  ;;  %v1366_v9 = vmul.f32 0.5, %v1365_v44  ;;  %v1446_v17 = vmax.f32 %v1414_v40, 0.0  ;;  %v1300_v26 = vadd.f32 %v1299_v37, %v1250_v3 }
 0x3af   :  { %v1541_v54 = vrot.slane %v1540_v46, 4  ;;  %v1547_v21 = vmax.f32 %v1463_v59, %v1471_v18  ;;  %v1454_v10 = vmax.f32 %v1422_v30, 0.0  ;;  %v1447_v39 = vmax.f32 %v1415_v8, 0.0 }
 0x3b0   :  { %v1338_v58 = vmul.f32 %v7276_v47, %v1337_v24  ;;  %v1367_v5 = vsub.f32 1.5, %v1366_v9  ;;  %v1455_v61 = vmax.f32 %v1423_v38, 0.0  ;;  %v1301_v16 = vrot.slane %v1300_v26, 4  ;;  %v6991_v9 = vld [vmem:[#allocation14 + $0x3cc] sm:$0xf0] }
 0x3b1   :  { %v1542_v12 = vmax.f32 %v1540_v46, %v1541_v54  ;;  %v1548_v15 = vrot.slane %v1547_v21, 4  ;;  %v1227_v52 = vmul.f32 %v8156_v11, %v8156_v11  ;;  %v1235_v40 = vmul.f32 %v8160_v13, %v8160_v13 }
 0x3b2   :  { %v1342_v2 = vsel %vm1341_vm8, %v7276_v47, %v1338_v58  ;;  %v1368_v3 = vmul.f32 %v8142_v63, %v1367_v5  ;;  %vm1370_vm9 = vweird.f32 %v8142_v63  ;;  %v8180_v57 = vsub.f32 %v8021_v6, %v8136_v56 }
 0x3b3   :  { %v1543_v32 = vrot.slane %v1542_v12, 2  ;;  %v1549_v36 = vmax.f32 %v1547_v21, %v1548_v15  ;;  %v1413_v37 = vmul.f32 %v1342_v2, %v8024_v50  ;;  %v1421_v47 = vmul.f32 %v1342_v2, %v8027_v48  ;;  %vm1371_vm10 = vmor %vm1369_vm7, %vm1370_vm9 }
 0x3b4   :  { %v1302_v30 = vadd.f32 %v1301_v16, %v1300_v26  ;;  %v8185_v46 = vmax.f32 %v1446_v17, %v1454_v10  ;;  %v8187_v7 = vmax.f32 %v1447_v39, %v1455_v61  ;;  %v1429_v44 = vmul.f32 %v1342_v2, %v8030_v20 }
 0x3b5   :  { %v8192_v8 = vsub.f32 %v8072_v53, %v8136_v56  ;;  %v8194_v6 = vmax.f32 %v1542_v12, %v1543_v32  ;;  %v1437_v38 = vmul.f32 %v1342_v2, %v8033_v23  ;;  %v1307_v50 = vadd.f32 %v1235_v40, %v1227_v52  ;;  %v5831_v53 = vld [vmem:[#allocation14 + $0x3c0] sm:$0xf]  ;;  %v6919_v40 = vld [vmem:[#allocation14 + $0x18c] sm:$0xf0] }
 0x3b6   :  { %v1372_v48 = vsel %vm1371_vm10, %v8142_v63, %v1368_v3  ;;  %v1243_v59 = vmul.f32 %v8180_v57, %v8180_v57  ;;  %v1153_v18 = vadd.f32 %v1152_v0, %v8140_v49  ;;  %v1176_v20 = vadd.f32 %v1175_v45, %v8120_v34  ;;  %v5543_v52 = vld [vmem:[#allocation14 + $0x180] sm:$0xf] }
 0x3b7   :  { %v1550_v56 = vrot.slane %v1549_v36, 2  ;;  %v1445_v54 = vmax.f32 %v1413_v37, 0.0  ;;  %v1453_v24 = vmax.f32 %v1421_v47, 0.0  ;;  %v1303_v23 = vrot.slane %v1302_v30, 2  ;;  %v6951_v47 = vld [vmem:[#allocation14 + $0x28c] sm:$0xf0] }
 0x3b8   :  { %v1461_v63 = vmax.f32 %v1429_v44, 0.0  ;;  %v1251_v21 = vmul.f32 %v8192_v8, %v8192_v8  ;;  %v1469_v26 = vmax.f32 %v1437_v38, 0.0  ;;  %v1308_v12 = vadd.f32 %v1307_v50, %v1243_v59  ;;  %v6891_v38 = vld [vmem:[#allocation14 + $0xac] sm:$0xf0]  ;;  %v5815_v50 = vld [vmem:[#allocation14 + $0x3a0] sm:$0xf] }
 0x3b9   :  { %v1304_v10 = vadd.f32 %v1303_v23, %v1302_v30  ;;  %v8212_v34 = vmul.f32 %v1372_v48, %v8036_v27  ;;  %v8215_v45 = vmul.f32 %v1372_v48, %v8039_v22  ;;  %v1185_v58 = vmul.f32 %v1153_v18, %v7789_v35 }
 0x3ba   :  { %v5832_v5 = vor.u32 %v6991_v9, %v5831_v53  ;;  %v8218_v39 = vmax.f32 %v1549_v36, %v1550_v56  ;;  %v8220_v61 = vmax.f32 %v1445_v54, %v1453_v24  ;;  %v1309_v16 = vadd.f32 %v1308_v12, %v1251_v21  ;;  %v6915_v56 = vld [vmem:[#allocation14 + $0x16c] sm:$0xf0] }
 0x3bb   :  { %v1305_v15 = vrot.slane %v1304_v10, 1  ;;  %v8223_v32 = vsub.f32 %v7984_v60, %v1185_v58  ;;  %v8226_v2 = vsub.f32 %v8003_v31, %v1185_v58  ;;  %v8229_v27 = vsub.f32 %v8062_v43, %v1185_v58  ;;  %v5671_v60 = vld [vmem:[#allocation14 + $0x280] sm:$0xf]  ;;  %v6947_v21 = vld [vmem:[#allocation14 + $0x26c] sm:$0xf0] }
 0x3bc   :  { %v1177_v22 = vrot.slane %v1176_v20, 2  ;;  %3248 = vmatpush.bf16.msrb.mxu2 %v5832_v5  ;;  %v8232_v3 = vmul.f32 %v1372_v48, %v8049_v29  ;;  %v8235_v0 = vmul.f32 %v1372_v48, %v8052_v62  ;;  %v1310_v37 = vrot.slane %v1309_v16, 4  ;;  %v5431_v29 = vld [vmem:[#allocation14 + $0xa0] sm:$0xf]  ;;  %v6987_v62 = vld [vmem:[#allocation14 + $0x3ac] sm:$0xf0] }
 0x3bd   :  { %v1306_v36 = vadd.f32 %v1305_v15, %v1304_v10  ;;  %v8237_v30 = vmax.f32 %v1461_v63, %v1469_v26  ;;  %v8240_v31 = vsub.f32 %v8078_v42, %v1185_v58  ;;  %v1225_v43 = vmul.f32 %v8223_v32, %v8223_v32  ;;  %v5527_v42 = vld [vmem:[#allocation14 + $0x160] sm:$0xf] }
 0x3be   :  { %v1233_v44 = vmul.f32 %v8226_v2, %v8226_v2  ;;  %v1448_v48 = vmax.f32 %v8212_v34, 0.0  ;;  %v1456_v59 = vmax.f32 %v8215_v45, 0.0  ;;  %v1311_v53 = vadd.f32 %v1310_v37, %v1309_v16  ;;  %v5655_v63 = vld [vmem:[#allocation14 + $0x260] sm:$0xf]  ;;  %v6887_v45 = vld [vmem:[#allocation14 + $0x8c] sm:$0xf0] }
 0x3bf   :  { %v8249_v18 = vmul.f32 %v1306_v36, %v7789_v35  ;;  %v1241_v54 = vmul.f32 %v8229_v27, %v8229_v27  ;;  %v1178_v23 = vadd.f32 %v1177_v22, %v1176_v20  ;;  %v5544_v9 = vor.u32 %v6919_v40, %v5543_v52  ;;  %v5415_v26 = vld [vmem:[#allocation14 + $0x80] sm:$0xf]  ;;  %v6983_v22 = vld [vmem:[#allocation14 + $0x38c] sm:$0xf0] }
 0x3c0   :  { %v1289_v24 = vadd.f32 %v1233_v44, %v1225_v43  ;;  %v1464_v10 = vmax.f32 %v8232_v3, 0.0  ;;  %v1472_v12 = vmax.f32 %v8235_v0, 0.0  ;;  %v1312_v34 = vrot.slane %v1311_v53, 2  ;;  %v5799_v20 = vld [vmem:[#allocation14 + $0x380] sm:$0xf] }
 0x3c1   :  { %7279 = vrsqrt.f32 %v8249_v18  ;;  %v1249_v58 = vmul.f32 %v8240_v31, %v8240_v31  ;;  %v1179_v15 = vrot.slane %v1178_v23, 1  ;;  %3224 = vmatpush.bf16.msrb.mxu0 %v5544_v9  ;;  %v5672_v16 = vor.u32 %v6951_v47, %v5671_v60  ;;  %v5511_v3 = vld [vmem:[#allocation14 + $0x140] sm:$0xf]  ;;  %v6911_v43 = vld [vmem:[#allocation14 + $0x14c] sm:$0xf0] }
 0x3c2   :  { %v1290_v5 = vadd.f32 %v1289_v24, %v1241_v54  ;;  %v1313_v52 = vadd.f32 %v1312_v34, %v1311_v53  ;;  %v5432_v40 = vor.u32 %v6891_v38, %v5431_v29  ;;  %v5816_v36 = vor.u32 %v6987_v62, %v5815_v50  ;;  %v8258_v0 = vld [vmem:[#allocation14 + $0x240] sm:$0xf]  ;;  %v6943_v54 = vld [vmem:[#allocation14 + $0x24c] sm:$0xf0] }
 0x3c3   :  { %v5528_v37 = vor.u32 %v6915_v56, %v5527_v42  ;;  %v1180_v17 = vadd.f32 %v1179_v15, %v1178_v23  ;;  %3237 = vmatpush.bf16.msrb.mxu1 %v5672_v16  ;;  %v5656_v19 = vor.u32 %v6947_v21, %v5655_v63  ;;  %v8261_v24 = vld [vmem:[#allocation14 + $0x60] sm:$0xf]  ;;  %v1534_v47 = vrot.slane %v8237_v30, 4  ;;  %v6883_v50 = vld [vmem:[#allocation14 + $0x6c] sm:$0xf0] }
 0x3c4   :  { %v1291_v49 = vadd.f32 %v1290_v5, %v1249_v58  ;;  %v1314_v29 = vrot.slane %v1313_v52, 1  ;;  %3210 = vmatpush.bf16.msra.mxu3 %v5432_v40  ;;  %3249 = vmatpush.bf16.msrb.mxu2 %v5816_v36  ;;  %v5416_v38 = vor.u32 %v6887_v45, %v5415_v26  ;;  %v5800_v42 = vor.u32 %v6983_v22, %v5799_v20  ;;  %v5783_v23 = vld [vmem:[#allocation14 + $0x360] sm:$0xf]  ;;  %v6979_v9 = vld [vmem:[#allocation14 + $0x36c] sm:$0xf0] }
 0x3c5   :  { %v1188_v53 = vmul.f32 %v1180_v17, %v7789_v35  ;;  %3225 = vmatpush.bf16.msrb.mxu0 %v5528_v37  ;;  %v5512_v56 = vor.u32 %v6911_v43, %v5511_v3  ;;  %v8268_v21 = vmax.f32 %v1448_v48, %v1456_v59  ;;  %v1554_v34 = vmax.f32 %v1464_v10, %v1472_v12  ;;  %v5495_v15 = vld [vmem:[#allocation14 + $0x120] sm:$0xf]  ;;  %v6907_v16 = vld [vmem:[#allocation14 + $0x12c] sm:$0xf0] }
 0x3c6   :  { %v1292_v62 = vrot.slane %v1291_v49, 4  ;;  %v1315_v58 = vadd.f32 %v1314_v29, %v1313_v52  ;;  %v5640_v5 = vor.u32 %v6943_v54, %v8258_v0  ;;  %v5400_v20 = vor.u32 %v6883_v50, %v8261_v24  ;;  %v5623_v22 = vld [vmem:[#allocation14 + $0x220] sm:$0xf]  ;;  %v6939_v40 = vld [vmem:[#allocation14 + $0x22c] sm:$0xf0] }
 0x3c7   :  { %v8266_v63 = vpop.eup %7279  ;;  %v8274_v17 = vsub.f32 %v8094_v41, %v1188_v53  ;;  %3238 = vmatpush.bf16.msrb.mxu1 %v5656_v19  ;;  %v8277_v48 = vld [vmem:[#allocation14 + $0x40] sm:$0xf]  ;;  %v8283_v10 = vsub.f32 %v8091_v28, %v1188_v53  ;;  %v8286_v12 = vsub.f32 %v8096_v25, %v1188_v53  ;;  %v6879_v41 = vld [vmem:[#allocation14 + $0x4c] sm:$0xf0]  ;;  %v5496_v28 = vor.u32 %v6907_v16, %v5495_v15 }
 0x3c8   :  { %v1384_v26 = vmul.f32 %v8266_v63, %v8249_v18  ;;  %v1293_v45 = vadd.f32 %v1292_v62, %v1291_v49  ;;  %v8280_v59 = vmul.f32 %v1315_v58, %v7789_v35  ;;  %3211 = vmatpush.bf16.msra.mxu3 %v5416_v38  ;;  %v5784_v49 = vor.u32 %v6979_v9, %v5783_v23  ;;  %v8288_v52 = vld [vmem:[#allocation14 + $0x340] sm:$0xf]  ;;  %v8290_v19 = vld [vmem:[#allocation14 + $0x34c] sm:$0xf0] }
 0x3c9   :  { %v1228_v3 = vmul.f32 %v8274_v17, %v8274_v17  ;;  %3250 = vmatpush.bf16.msrb.mxu2 %v5800_v42  ;;  %3226 = vmatpush.bf16.msrb.mxu0 %v5512_v56  ;;  %v5479_v43 = vld [vmem:[#allocation14 + $0x100] sm:$0xf]  ;;  %v6903_v0 = vld [vmem:[#allocation14 + $0x10c] sm:$0xf0]  ;;  %v1555_v25 = vrot.slane %v1554_v34, 4  ;;  %v8297_v54 = vsub.f32 %v8100_v1, %v1188_v53  ;;  %v1236_v24 = vmul.f32 %v8283_v10, %v8283_v10 }
 0x3ca   :  { %v1385_v36 = vmul.f32 %v8266_v63, %v1384_v26  ;;  %v1294_v37 = vrot.slane %v1293_v45, 2  ;;  %7281 = vrsqrt.f32 %v8280_v59  ;;  %v8301_v29 = vld [vmem:[#allocation14 + $0x200] sm:$0xf]  ;;  %v8303_v38 = vld [vmem:[#allocation14 + $0x20c] sm:$0xf0]  ;;  %v8306_v62 = vmax.f32 %v8237_v30, %v1534_v47 }
 0x3cb   :  { %v6103_v50 = vld [vmem:[#allocation14 + $0x5e0] sm:$0xf]  ;;  %3239 = vmatpush.bf16.msrb.mxu1 %v5640_v5  ;;  %v5624_v23 = vor.u32 %v6939_v40, %v5623_v22  ;;  %v7059_v9 = vld [vmem:[#allocation14 + $0x5ec] sm:$0xf0]  ;;  %vm1390_vm11 = vweird.f32 %v8266_v63  ;;  %v1244_v1 = vmul.f32 %v8286_v12, %v8286_v12  ;;  %v1316_v53 = vadd.f32 %v1236_v24, %v1228_v3 }
 0x3cc   :  { %v1386_v42 = vmul.f32 0.5, %v1385_v36  ;;  %v1295_v56 = vadd.f32 %v1294_v37, %v1293_v45  ;;  %v8308_v58 = vld [vmem:[#allocation14 + $0x6e0] sm:$0xf]  ;;  %3212 = vmatpush.bf16.msra.mxu3 %v5400_v20  ;;  %v5384_v15 = vor.u32 %v6879_v41, %v8277_v48  ;;  %v7091_v16 = vld [vmem:[#allocation14 + $0x6ec] sm:$0xf0]  ;;  %v5768_v5 = vor.u32 %v8290_v19, %v8288_v52 }
 0x3cd   :  { %v5367_v26 = vld [vmem:[#allocation14 + $0x20] sm:$0xf]  ;;  %v6875_v30 = vld [vmem:[#allocation14 + $0x2c] sm:$0xf0]  ;;  %3251 = vmatpush.bf16.msrb.mxu2 %v5784_v49  ;;  %3227 = vmatpush.bf16.msrb.mxu0 %v5496_v28  ;;  %v5480_v45 = vor.u32 %v6903_v0, %v5479_v43  ;;  %v8316_v37 = vmax.f32 %v1554_v34, %v1555_v25  ;;  %v1252_v20 = vmul.f32 %v8297_v54, %v8297_v54  ;;  %vm1389_vm12 = vweird.f32 %v8249_v18 }
 0x3ce   :  { %v1387_v47 = vsub.f32 1.5, %v1386_v42  ;;  %v1296_v36 = vrot.slane %v1295_v56, 1  ;;  %v5751_v22 = vld [vmem:[#allocation14 + $0x320] sm:$0xf]  ;;  %v6971_v40 = vld [vmem:[#allocation14 + $0x32c] sm:$0xf0]  ;;  %v1317_v3 = vadd.f32 %v1316_v53, %v1244_v1  ;;  %v6104_v48 = vor.u32 %v7059_v9, %v6103_v50  ;;  %vm1391_vm13 = vmor %vm1389_vm12, %vm1390_vm11 }
 0x3cf   :  { %v6087_v41 = vld [vmem:[#allocation14 + $0x5c0] sm:$0xf]  ;;  %v7055_v24 = vld [vmem:[#allocation14 + $0x5cc] sm:$0xf0]  ;;  %3240 = vmatpush.bf16.msrb.mxu1 %v5624_v23  ;;  %v5608_v52 = vor.u32 %v8303_v38, %v8301_v29  ;;  %v6232_v18 = vor.u32 %v7091_v16, %v8308_v58  ;;  %v5368_v25 = vor.u32 %v6875_v30, %v5367_v26  ;;  %v5752_v50 = vor.u32 %v6971_v40, %v5751_v22 }
 0x3d0   :  { %v1388_v42 = vmul.f32 %v8266_v63, %v1387_v47  ;;  %v1297_v49 = vadd.f32 %v1296_v36, %v1295_v56  ;;  %v8324_v19 = vld [vmem:[#allocation14 + $0x6c0] sm:$0xf]  ;;  %v8326_v34 = vld [vmem:[#allocation14 + $0x6cc] sm:$0xf0]  ;;  %v8330_v43 = vpop.eup %7281  ;;  %v1318_v0 = vadd.f32 %v1317_v3, %v1252_v20  ;;  %3213 = vmatpush.bf16.msra.mxu3 %v5384_v15  ;;  %v1536_v15 = vrot.slane %v8306_v62, 2 }
 0x3d1   :  { %v8328_v28 = vld [vmem:[#allocation14] sm:$0xf]  ;;  %v6871_v56 = vld [vmem:[#allocation14 + $0xc] sm:$0xf0]  ;;  %v1394_v38 = vmul.f32 %v8330_v43, %v8280_v59  ;;  %3252 = vmatpush.bf16.msrb.mxu2 %v5768_v5  ;;  %3228 = vmatpush.bf16.msrb.mxu0 %v5480_v45  ;;  %v6088_v26 = vor.u32 %v7055_v24, %v6087_v41  ;;  %v1557_v36 = vrot.slane %v8316_v37, 2  ;;  %vm1400_vm14 = vweird.f32 %v8330_v43 }
 0x3d2   :  { %v5735_v23 = vld [vmem:[#allocation14 + $0x300] sm:$0xf]  ;;  %v1392_v29 = vsel %vm1391_vm13, %v8266_v63, %v1388_v42  ;;  %v8339_v9 = vmul.f32 %v1297_v49, %v7789_v35  ;;  %v6967_v1 = vld [vmem:[#allocation14 + $0x30c] sm:$0xf0]  ;;  %v1319_v5 = vrot.slane %v1318_v0, 4  ;;  %vm1399_vm15 = vweird.f32 %v8280_v59 }
 0x3d3   :  { %v5975_v53 = vld [vmem:[#allocation14 + $0x4e0] sm:$0xf]  ;;  %v7027_v47 = vld [vmem:[#allocation14 + $0x4ec] sm:$0xf0]  ;;  %v1434_v58 = vmul.f32 %v1392_v29, %v8128_v51  ;;  %v1442_v16 = vmul.f32 %v1392_v29, %v8132_v55  ;;  %v1395_v22 = vmul.f32 %v8330_v43, %v1394_v38  ;;  %3241 = vmatpush.bf16.msrb.mxu1 %v5608_v52  ;;  %v6216_v51 = vor.u32 %v8326_v34, %v8324_v19  ;;  %vm1401_vm1 = vmor %vm1399_vm15, %vm1400_vm14 }
 0x3d4   :  { %v6359_v63 = vld [vmem:[#allocation14 + $0x7e0] sm:$0xf]  ;;  %v7123_v30 = vld [vmem:[#allocation14 + $0x7ec] sm:$0xf0]  ;;  %7283 = vrsqrt.f32 %v8339_v9  ;;  %3214 = vmatpush.bf16.msra.mxu3 %v5368_v25  ;;  %v5352_v55 = vor.u32 %v6871_v56, %v8328_v28  ;;  %v1320_v24 = vadd.f32 %v1319_v5, %v1318_v0  ;;  %v5736_v42 = vor.u32 %v6967_v1, %v5735_v23 }
 0x3d5   :  { %3273 = vmatpush.bf16.msra.mxu0 %v6104_v48  ;;  %v6071_v45 = vld [vmem:[#allocation14 + $0x5a0] sm:$0xf]  ;;  %v7051_v40 = vld [vmem:[#allocation14 + $0x5ac] sm:$0xf0]  ;;  %v1466_v20 = vmax.f32 %v1434_v58, 0.0  ;;  %v1474_v3 = vmax.f32 %v1442_v16, 0.0  ;;  %3253 = vmatpush.bf16.msrb.mxu2 %v5752_v50  ;;  %v5976_v49 = vor.u32 %v7027_v47, %v5975_v53  ;;  %v8351_v52 = vmax.f32 %v8306_v62, %v1536_v15 }
 0x3d6   :  { %v6199_v48 = vld [vmem:[#allocation14 + $0x6a0] sm:$0xf]  ;;  %v1396_v41 = vmul.f32 0.5, %v1395_v22  ;;  %v7083_v38 = vld [vmem:[#allocation14 + $0x6ac] sm:$0xf0]  ;;  %v6072_v25 = vor.u32 %v7051_v40, %v6071_v45  ;;  %v8354_v34 = vmax.f32 %v8316_v37, %v1557_v36  ;;  %v1321_v0 = vrot.slane %v1320_v24, 2 }
 0x3d7   :  { %3286 = vmatpush.bf16.msra.mxu1 %v6232_v18  ;;  %v5959_v60 = vld [vmem:[#allocation14 + $0x4c0] sm:$0xf]  ;;  %v1568_v58 = vmax.f32 %v1466_v20, %v1474_v3  ;;  %v6360_v18 = vor.u32 %v7123_v30, %v6359_v63  ;;  %v7023_v16 = vld [vmem:[#allocation14 + $0x4cc] sm:$0xf0]  ;;  %v1499_v23 = vrot.slane %v8268_v21, 4  ;;  %v8359_v62 = vmul.f32 %v1392_v29, %v8114_v4 }
 0x3d8   :  { %v6343_v44 = vld [vmem:[#allocation14 + $0x7c0] sm:$0xf]  ;;  %v7119_v19 = vld [vmem:[#allocation14 + $0x7cc] sm:$0xf0]  ;;  %v1397_v28 = vsub.f32 1.5, %v1396_v41  ;;  %v8362_v1 = vmul.f32 %v1392_v29, %v8117_v33  ;;  %3215 = vmatpush.bf16.msra.mxu3 %v5352_v55  ;;  %v6200_v53 = vor.u32 %v7083_v38, %v6199_v48  ;;  %v5960_v63 = vor.u32 %v7023_v16, %v5959_v60 }
 0x3d9   :  { %3274 = vmatpush.bf16.msra.mxu0 %v6088_v26  ;;  %v6055_v50 = vld [vmem:[#allocation14 + $0x580] sm:$0xf]  ;;  %v7047_v56 = vld [vmem:[#allocation14 + $0x58c] sm:$0xf0]  ;;  %v1322_v26 = vadd.f32 %v1321_v0, %v1320_v24  ;;  %3254 = vmatpush.bf16.msrb.mxu2 %v5736_v42  ;;  %v1569_v22 = vrot.slane %v1568_v58, 4  ;;  %v6344_v29 = vor.u32 %v7119_v19, %v6343_v44  ;;  %v1538_v40 = vrot.slane %v8351_v52, 1 }
 0x3da   :  { %v6183_v47 = vld [vmem:[#allocation14 + $0x680] sm:$0xf]  ;;  %v8364_v37 = vpop.eup %7283  ;;  %v1398_v15 = vmul.f32 %v8330_v43, %v1397_v28  ;;  %v7079_v30 = vld [vmem:[#allocation14 + $0x68c] sm:$0xf0]  ;;  %v6056_v5 = vor.u32 %v7047_v56, %v6055_v50  ;;  %v1559_v55 = vrot.slane %v8354_v34, 1  ;;  %v1450_v48 = vmax.f32 %v8359_v62, 0.0 }
 0x3db   :  { %3287 = vmatpush.bf16.msra.mxu1 %v6216_v51  ;;  %v5943_v4 = vld [vmem:[#allocation14 + $0x4a0] sm:$0xf]  ;;  %v7019_v36 = vld [vmem:[#allocation14 + $0x4ac] sm:$0xf0]  ;;  %v1374_v33 = vmul.f32 %v8364_v37, %v8339_v9  ;;  %v1323_v20 = vrot.slane %v1322_v26, 1  ;;  %v6184_v24 = vor.u32 %v7079_v30, %v6183_v47  ;;  %v1458_v16 = vmax.f32 %v8362_v1, 0.0 }
 0x3dc   :  { %3260 = vmatpush.bf16.msrb.mxu3 %v5976_v49  ;;  %v6327_v45 = vld [vmem:[#allocation14 + $0x7a0] sm:$0xf]  ;;  %v7115_v59 = vld [vmem:[#allocation14 + $0x7ac] sm:$0xf0]  ;;  %v1402_v60 = vsel %vm1401_vm1, %v8330_v43, %v1398_v15  ;;  %v5944_v38 = vor.u32 %v7019_v36, %v5943_v4  ;;  %v1570_v19 = vmax.f32 %v1568_v58, %v1569_v22  ;;  %vm1379_vm3 = vweird.f32 %v8339_v9 }
 0x3dd   :  { %3299 = vmatpush.bf16.msra.mxu2 %v6360_v18  ;;  %3275 = vmatpush.bf16.msra.mxu0 %v6072_v25  ;;  %v6039_v3 = vld [vmem:[#allocation14 + $0x560] sm:$0xf]  ;;  %v7043_v51 = vld [vmem:[#allocation14 + $0x56c] sm:$0xf0]  ;;  %v1435_v41 = vmul.f32 %v1402_v60, %v8180_v57  ;;  %v1443_v44 = vmul.f32 %v1402_v60, %v8192_v8  ;;  %v1375_v42 = vmul.f32 %v8364_v37, %v1374_v33  ;;  %vm1380_vm4 = vweird.f32 %v8364_v37 }
 0x3de   :  { %v1324_v49 = vadd.f32 %v1323_v20, %v1322_v26  ;;  %v6167_v18 = vld [vmem:[#allocation14 + $0x660] sm:$0xf]  ;;  %v7075_v43 = vld [vmem:[#allocation14 + $0x66c] sm:$0xf0]  ;;  %v6328_v28 = vor.u32 %v7115_v59, %v6327_v45  ;;  %v6040_v0 = vor.u32 %v7043_v51, %v6039_v3  ;;  %v1419_v15 = vmul.f32 %v1402_v60, %v8156_v11  ;;  %vm1381_vm5 = vmor %vm1379_vm3, %vm1380_vm4 }
 0x3df   :  { %3288 = vmatpush.bf16.msra.mxu1 %v6200_v53  ;;  %v5927_v25 = vld [vmem:[#allocation14 + $0x480] sm:$0xf]  ;;  %v7015_v57 = vld [vmem:[#allocation14 + $0x48c] sm:$0xf0]  ;;  %v1467_v56 = vmax.f32 %v1435_v41, 0.0  ;;  %v1475_v62 = vmax.f32 %v1443_v44, 0.0  ;;  %v1427_v26 = vmul.f32 %v1402_v60, %v8160_v13  ;;  %v6168_v58 = vor.u32 %v7075_v43, %v6167_v18 }
 0x3e0   :  { %3261 = vmatpush.bf16.msrb.mxu3 %v5960_v63  ;;  %v6311_v50 = vld [vmem:[#allocation14 + $0x780] sm:$0xf]  ;;  %v1376_v8 = vmul.f32 0.5, %v1375_v42  ;;  %v8381_v53 = vmul.f32 %v1324_v49, %v7789_v35  ;;  %v7111_v47 = vld [vmem:[#allocation14 + $0x78c] sm:$0xf0]  ;;  %v5928_v4 = vor.u32 %v7015_v57, %v5927_v25  ;;  %v8388_v33 = vmax.f32 %v1450_v48, %v1458_v16 }
 0x3e1   :  { %3300 = vmatpush.bf16.msra.mxu2 %v6344_v29  ;;  %3276 = vmatpush.bf16.msra.mxu0 %v6056_v5  ;;  %v6023_v1 = vld [vmem:[#allocation14 + $0x540] sm:$0xf]  ;;  %v7039_v63 = vld [vmem:[#allocation14 + $0x54c] sm:$0xf0]  ;;  %v1571_v11 = vrot.slane %v1570_v19, 2  ;;  %v6312_v13 = vor.u32 %v7111_v47, %v6311_v50  ;;  %v8908_v45 = vrot.slane %v8185_v46, 4  ;;  %v1575_v60 = vmax.f32 %v1467_v56, %v1475_v62 }
 0x3e2   :  { %v1377_v30 = vsub.f32 1.5, %v1376_v8  ;;  %7285 = vrsqrt.f32 %v8381_v53  ;;  %v6151_v36 = vld [vmem:[#allocation14 + $0x640] sm:$0xf]  ;;  %v7071_v22 = vld [vmem:[#allocation14 + $0x64c] sm:$0xf0]  ;;  %v6024_v3 = vor.u32 %v7039_v63, %v6023_v1  ;;  %v8909_v48 = vrot.slane %v8187_v7, 4 }
 0x3e3   :  { %3289 = vmatpush.bf16.msra.mxu1 %v6184_v24  ;;  %v5911_v29 = vld [vmem:[#allocation14 + $0x460] sm:$0xf]  ;;  %v7011_v5 = vld [vmem:[#allocation14 + $0x46c] sm:$0xf0]  ;;  %v1486_v59 = vmax.f32 %v8185_v46, %v8908_v45  ;;  %v1451_v42 = vmax.f32 %v1419_v15, 0.0  ;;  %v1459_v49 = vmax.f32 %v1427_v26, 0.0  ;;  %v6152_v46 = vor.u32 %v7071_v22, %v6151_v36 }
 0x3e4   :  { %3262 = vmatpush.bf16.msrb.mxu3 %v5944_v38  ;;  %v1378_v20 = vmul.f32 %v8364_v37, %v1377_v30  ;;  %v6295_v51 = vld [vmem:[#allocation14 + $0x760] sm:$0xf]  ;;  %v7107_v41 = vld [vmem:[#allocation14 + $0x76c] sm:$0xf0]  ;;  %v1493_v44 = vmax.f32 %v8187_v7, %v8909_v48  ;;  %v5912_v25 = vor.u32 %v7011_v5, %v5911_v29  ;;  %v8910_v7 = vrot.slane %v8194_v6, 1 }
 0x3e5   :  { %3301 = vmatpush.bf16.msra.mxu2 %v6328_v28  ;;  %3277 = vmatpush.bf16.msra.mxu0 %v6040_v0  ;;  %v6007_v24 = vld [vmem:[#allocation14 + $0x520] sm:$0xf]  ;;  %v7035_v38 = vld [vmem:[#allocation14 + $0x52c] sm:$0xf0]  ;;  %v1487_v18 = vrot.slane %v1486_v59, 2  ;;  %v8407_v50 = vmax.f32 %v1570_v19, %v1571_v11  ;;  %v6296_v9 = vor.u32 %v7107_v41, %v6295_v51  ;;  %v8911_v56 = vrot.slane %v8218_v39, 1 }
 0x3e6   :  { %v8402_v43 = vsel %vm1381_vm5, %v8364_v37, %v1378_v20  ;;  %v6135_v16 = vld [vmem:[#allocation14 + $0x620] sm:$0xf]  ;;  %v7067_v28 = vld [vmem:[#allocation14 + $0x62c] sm:$0xf0]  ;;  %v1546_v0 = vmax.f32 %v8194_v6, %v8910_v7  ;;  %v1494_v57 = vrot.slane %v1493_v44, 2  ;;  %v1576_v15 = vrot.slane %v1575_v60, 4 }
 0x3e7   :  { %3290 = vmatpush.bf16.msra.mxu1 %v6168_v58  ;;  %v1553_v62 = vmax.f32 %v8218_v39, %v8911_v56  ;;  %v5895_v37 = vld [vmem:[#allocation14 + $0x440] sm:$0xf]  ;;  %v7007_v8 = vld [vmem:[#allocation14 + $0x44c] sm:$0xf0]  ;;  %v6008_v26 = vor.u32 %v7035_v38, %v6007_v24  ;;  %v1488_v58 = vmax.f32 %v1486_v59, %v1487_v18  ;;  %v8414_v19 = vmax.f32 %v1451_v42, %v1459_v49 }
 0x3e8   :  { %3263 = vmatpush.bf16.msrb.mxu3 %v5928_v4  ;;  %v8412_v47 = vpop.eup %7285  ;;  %v1495_v1 = vmax.f32 %v1493_v44, %v1494_v57  ;;  %v6279_v6 = vld [vmem:[#allocation14 + $0x740] sm:$0xf]  ;;  %v7103_v63 = vld [vmem:[#allocation14 + $0x74c] sm:$0xf0]  ;;  %v1433_v30 = vmul.f32 %v8402_v43, %v8229_v27  ;;  %v1441_v4 = vmul.f32 %v8402_v43, %v8240_v31  ;;  %v6136_v39 = vor.u32 %v7067_v28, %v6135_v16  ;;  %v5593_v57 = vld [vmem:[#allocation14 + $0x1f0] sm:$0xf0] }
 0x3e9   :  { %3302 = vmatpush.bf16.msra.mxu2 %v6312_v13  ;;  %3278 = vmatpush.bf16.msra.mxu0 %v6024_v3  ;;  %v5991_v36 = vld [vmem:[#allocation14 + $0x500] sm:$0xf]  ;;  %v7031_v22 = vld [vmem:[#allocation14 + $0x50c] sm:$0xf0]  ;;  %v1404_v11 = vmul.f32 %v8412_v47, %v8381_v53  ;;  %v1489_v13 = vrot.slane %v1488_v58, 1  ;;  %v1598_v29 = vpack.c.bf16 %v1546_v0, %v1546_v0  ;;  %v5896_v5 = vor.u32 %v7007_v8, %v5895_v37 }
 0x3ea   :  { %v6119_v45 = vld [vmem:[#allocation14 + $0x600] sm:$0xf]  ;;  %v7063_v59 = vld [vmem:[#allocation14 + $0x60c] sm:$0xf0]  ;;  %vm1409_vm7 = vweird.f32 %v8381_v53  ;;  %v1496_v27 = vrot.slane %v1495_v1, 1  ;;  %v1599_v20 = vpack.c.bf16 %v1553_v62, %v1553_v62  ;;  %v6280_v3 = vor.u32 %v7103_v63, %v6279_v6 }
 0x3eb   :  { %3291 = vmatpush.bf16.msra.mxu1 %v6152_v46  ;;  %v5879_v31 = vld [vmem:[#allocation14 + $0x420] sm:$0xf]  ;;  %v8423_v51 = vmax.f32 %v1575_v60, %v1576_v15  ;;  %v1405_v41 = vmul.f32 %v8412_v47, %v1404_v11  ;;  %v1490_v24 = vmax.f32 %v1488_v58, %v1489_v13  ;;  %v5992_v48 = vor.u32 %v7031_v22, %v5991_v36  ;;  %v7003_v44 = vld [vmem:[#allocation14 + $0x42c] sm:$0xf0]  ;;  %v6929_v0 = vld [vmem:[#allocation14 + $0x1e4] sm:$0xf] }
 0x3ec   :  { %3264 = vmatpush.bf16.msrb.mxu3 %v5912_v25  ;;  %v6263_v42 = vld [vmem:[#allocation14 + $0x720] sm:$0xf]  ;;  %v7099_v49 = vld [vmem:[#allocation14 + $0x72c] sm:$0xf0]  ;;  %v1465_v46 = vmax.f32 %v1433_v30, 0.0  ;;  %v1473_v38 = vmax.f32 %v1441_v4, 0.0  ;;  %v1497_v18 = vmax.f32 %v1495_v1, %v1496_v27  ;;  %v6120_v25 = vor.u32 %v7063_v59, %v6119_v45 }
 0x3ed   :  { %3303 = vmatpush.bf16.msra.mxu2 %v6296_v9  ;;  %3279 = vmatpush.bf16.msra.mxu0 %v6008_v26  ;;  %v8428_v16 = vmul.f32 %v8402_v43, %v8223_v32  ;;  %v1406_v28 = vmul.f32 0.5, %v1405_v41  ;;  %v1590_v60 = vpack.c.bf16 %v1490_v24, %v1490_v24  ;;  %v1896_v7 = vunpack.c.l.b16 %v1598_v29  ;;  %v6961_v26 = vld [vmem:[#allocation14 + $0x2e4] sm:$0xf]  ;;  %v5721_v58 = vld [vmem:[#allocation14 + $0x2f0] sm:$0xf0] }
 0x3ee   :  { %v1591_v9 = vpack.c.bf16 %v1497_v18, %v1497_v18  ;;  %v1897_v56 = vunpack.c.l.b16 %v1599_v20  ;;  %v5880_v62 = vor.u32 %v7003_v44, %v5879_v31  ;;  %v6264_v37 = vor.u32 %v7099_v49, %v6263_v42  ;;  %v6925_v29 = vld [vmem:[#allocation14 + $0x1c4] sm:$0xf]  ;;  %v5705_v27 = vld [vmem:[#allocation14 + $0x2d0] sm:$0xf0]  ;;  %v5863_v41 = vld [vmem:[#allocation14 + $0x400] sm:$0xf] }
 0x3ef   :  { %3292 = vmatpush.bf16.msra.mxu1 %v6136_v39  ;;  %v1407_v8 = vsub.f32 1.5, %v1406_v28  ;;  %vm1410_vm8 = vweird.f32 %v8412_v47  ;;  %v1888_v15 = vunpack.c.l.b16 %v1590_v60  ;;  %v8912_v32 = vrot.slane %v8220_v61, 4  ;;  %v6957_v53 = vld [vmem:[#allocation14 + $0x2c4] sm:$0xf]  ;;  %v6999_v24 = vld [vmem:[#allocation14 + $0x40c] sm:$0xf0] }
 0x3f0   :  { %3265 = vmatpush.bf16.msrb.mxu3 %v5896_v5  ;;  %v8434_v6 = vmax.f32 %v1465_v46, %v1473_v38  ;;  %v1889_v63 = vunpack.c.l.b16 %v1591_v9  ;;  %v5596_v30 = vor.u32 %v6929_v0, %v5593_v57  ;;  %v1500_v4 = vmax.f32 %v8268_v21, %v1499_v23  ;;  %vm1411_vm9 = vmor %vm1409_vm7, %vm1410_vm8  ;;  %v6247_v42 = vld [vmem:[#allocation14 + $0x700] sm:$0xf]  ;;  %v7095_v49 = vld [vmem:[#allocation14 + $0x70c] sm:$0xf0] }
 0x3f1   :  { %3304 = vmatpush.bf16.msra.mxu2 %v6280_v3  ;;  %3280 = vmatpush.bf16.msra.mxu0 %v5992_v48  ;;  %v1479_v1 = vmax.f32 %v8220_v61, %v8912_v32  ;;  %v1408_v39 = vmul.f32 %v8412_v47, %v1407_v8  ;;  %v1905_v36 = vsel %vm1903_vm6, %v1896_v7, %v1888_v15  ;;  %v1578_v20 = vrot.slane %v8423_v51, 2  ;;  %v6921_v38 = vld [vmem:[#allocation14 + $0x1a4] sm:$0xf]  ;;  %v5561_v18 = vld [vmem:[#allocation14 + $0x1b0] sm:$0xf0] }
 0x3f2   :  { %v1539_v11 = vmax.f32 %v8351_v52, %v1538_v40  ;;  %v8448_v61 = vpack.c.b16 %v1905_v36, %v1905_v36  ;;  %v1906_v13 = vsel %vm1903_vm6, %v1897_v56, %v1889_v63  ;;  %v5724_v21 = vor.u32 %v6961_v26, %v5721_v58  ;;  %v5577_v40 = vld [vmem:[#allocation14 + $0x1d0] sm:$0xf0]  ;;  %v6953_v7 = vld [vmem:[#allocation14 + $0x2a4] sm:$0xf] }
 0x3f3   :  { %3293 = vmatpush.bf16.msra.mxu1 %v6120_v25  ;;  %v1480_v22 = vrot.slane %v1479_v1, 2  ;;  %v1501_v23 = vrot.slane %v1500_v4, 2  ;;  %v1412_v5 = vsel %vm1411_vm9, %v8412_v47, %v1408_v39  ;;  %v8452_v45 = vpack.c.b16 %v1906_v13, %v1906_v13  ;;  %v5689_v0 = vld [vmem:[#allocation14 + $0x2b0] sm:$0xf0]  ;;  %v6897_v26 = vld [vmem:[#allocation14 + $0xe4] sm:$0xf] }
 0x3f4   :  { %3266 = vmatpush.bf16.msrb.mxu3 %v5880_v62  ;;  %v1560_v52 = vmax.f32 %v8354_v34, %v1559_v55  ;;  %v8460_v3 = vmul.f32 %v8402_v43, %v8226_v2  ;;  %v1449_v31 = vmax.f32 %v8428_v16, 0.0  ;;  %v1436_v47 = vmul.f32 %v1412_v5, %v8286_v12  ;;  %3229 = vmatmul.bf16.vlgmr.msrb.gmra.mxu0 %v8448_v61  ;;  %v5465_v58 = vld [vmem:[#allocation14 + $0xf0] sm:$0xf0]  ;;  %v6949_v13 = vld [vmem:[#allocation14 + $0x284] sm:$0xf] }
 0x3f5   :  { %3305 = vmatpush.bf16.msra.mxu2 %v6264_v37  ;;  %v1481_v59 = vmax.f32 %v1479_v1, %v1480_v22  ;;  %v1444_v48 = vmul.f32 %v1412_v5, %v8297_v54  ;;  %3242 = vmatmul.bf16.vlgmr.msrb.gmra.mxu1 %v8452_v45  ;;  %v1597_v55 = vpack.c.bf16 %v1539_v11, %v1539_v11  ;;  %v1562_v2 = vrot.slane %v8434_v6, 4 }
 0x3f6   :  { %3325 = vmatpush.bf16.msrb.mxu0 %v5596_v30  ;;  %v1502_v44 = vmax.f32 %v1500_v4, %v1501_v23  ;;  %v8469_v43 = vmul.f32 %v1412_v5, %v8274_v17  ;;  %v1468_v12 = vmax.f32 %v1436_v47, 0.0  ;;  %v5580_v46 = vor.u32 %v6925_v29, %v5577_v40  ;;  %v6917_v4 = vld [vmem:[#allocation14 + $0x184] sm:$0xf]  ;;  %v5449_v47 = vld [vmem:[#allocation14 + $0xd0] sm:$0xf0] }
 0x3f7   :  { %v1482_v34 = vrot.slane %v1481_v59, 1  ;;  %3338 = vmatpush.bf16.msrb.mxu1 %v5724_v21  ;;  %v1476_v25 = vmax.f32 %v1444_v48, 0.0  ;;  %v1600_v60 = vpack.c.bf16 %v1560_v52, %v1560_v52  ;;  %v1428_v57 = vmul.f32 %v1412_v5, %v8283_v10  ;;  %v5545_v10 = vld [vmem:[#allocation14 + $0x190] sm:$0xf0] }
 0x3f8   :  { %v1503_v28 = vrot.slane %v1502_v44, 1  ;;  %v5708_v9 = vor.u32 %v6957_v53, %v5705_v27  ;;  %v5864_v56 = vor.u32 %v6999_v24, %v5863_v41  ;;  %v6248_v62 = vor.u32 %v7095_v49, %v6247_v42  ;;  %v5673_v21 = vld [vmem:[#allocation14 + $0x290] sm:$0xf0] }
 0x3f9   :  { %v1483_v54 = vmax.f32 %v1481_v59, %v1482_v34  ;;  %v1582_v37 = vmax.f32 %v1468_v12, %v1476_v25  ;;  %v1895_v17 = vunpack.c.l.b16 %v1597_v55  ;;  %v1457_v32 = vmax.f32 %v8460_v3, 0.0  ;;  %v6993_v59 = vld [vmem:[#allocation14 + $0x3e4] sm:$0xf]  ;;  %v5849_v52 = vld [vmem:[#allocation14 + $0x3f0] sm:$0xf0] }
 0x3fa   :  { %v1504_v15 = vmax.f32 %v1502_v44, %v1503_v28  ;;  %3326 = vmatpush.bf16.msrb.mxu0 %v5580_v46  ;;  %v1563_v1 = vmax.f32 %v8434_v6, %v1562_v2  ;;  %3267 = vmatpush.bf16.msrb.mxu3 %v5864_v56  ;;  %v5564_v63 = vor.u32 %v6921_v38, %v5561_v18  ;;  %v1898_v11 = vunpack.c.l.b16 %v1600_v60  ;;  %v6893_v3 = vld [vmem:[#allocation14 + $0xc4] sm:$0xf]  ;;  %v5529_v34 = vld [vmem:[#allocation14 + $0x170] sm:$0xf0] }
 0x3fb   :  { %v1589_v8 = vpack.c.bf16 %v1483_v54, %v1483_v54  ;;  %3339 = vmatpush.bf16.msrb.mxu1 %v5708_v9  ;;  %v5692_v30 = vor.u32 %v6953_v7, %v5689_v0  ;;  %v1583_v39 = vrot.slane %v1582_v37, 4  ;;  %3306 = vmatpush.bf16.msra.mxu2 %v6248_v62  ;;  %v8475_v23 = vmax.f32 %v8423_v51, %v1578_v20  ;;  %v6913_v20 = vld [vmem:[#allocation14 + $0x164] sm:$0xf]  ;;  %v5833_v54 = vld [vmem:[#allocation14 + $0x3d0] sm:$0xf0] }
 0x3fc   :  { %v1592_v22 = vpack.c.bf16 %v1504_v15, %v1504_v15  ;;  %v1452_v29 = vmax.f32 %v8469_v43, 0.0  ;;  %v1460_v5 = vmax.f32 %v1428_v57, 0.0  ;;  %v5468_v6 = vor.u32 %v6897_v26, %v5465_v58  ;;  %v6945_v2 = vld [vmem:[#allocation14 + $0x264] sm:$0xf]  ;;  %v5657_v43 = vld [vmem:[#allocation14 + $0x270] sm:$0xf0] }
 0x3fd   :  { %v1887_v36 = vunpack.c.l.b16 %v1589_v8  ;;  %v1584_v40 = vmax.f32 %v1582_v37, %v1583_v39  ;;  %v5548_v41 = vor.u32 %v6917_v4, %v5545_v10  ;;  %v1564_v24 = vrot.slane %v1563_v1, 2  ;;  %v6989_v25 = vld [vmem:[#allocation14 + $0x3c4] sm:$0xf]  ;;  %v5433_v57 = vld [vmem:[#allocation14 + $0xb0] sm:$0xf0] }
 0x3fe   :  { %v1890_v27 = vunpack.c.l.b16 %v1592_v22  ;;  %3327 = vmatpush.bf16.msrb.mxu0 %v5564_v63  ;;  %v5676_v51 = vor.u32 %v6949_v13, %v5673_v21  ;;  %v1513_v55 = vrot.slane %v8388_v33, 4  ;;  %v5852_v49 = vor.u32 %v6993_v59, %v5849_v52  ;;  %v6889_v0 = vld [vmem:[#allocation14 + $0xa4] sm:$0xf]  ;;  %v5513_v37 = vld [vmem:[#allocation14 + $0x150] sm:$0xf0] }
 0x3ff   :  { %v1904_v53 = vsel %vm1903_vm6, %v1895_v17, %v1887_v36  ;;  %3340 = vmatpush.bf16.msrb.mxu1 %v5692_v30  ;;  %v1585_v44 = vrot.slane %v1584_v40, 2  ;;  %v1520_v12 = vrot.slane %v8414_v19, 4  ;;  %v1505_v46 = vmax.f32 %v1449_v31, %v1457_v32  ;;  %v6985_v31 = vld [vmem:[#allocation14 + $0x3a4] sm:$0xf]  ;;  %v5817_v15 = vld [vmem:[#allocation14 + $0x3b0] sm:$0xf0] }
 0x400   :  { %v8479_v48 = vpack.c.b16 %v1904_v53, %v1904_v53  ;;  %v1907_v42 = vsel %vm1903_vm6, %v1898_v11, %v1890_v27  ;;  %v8486_v38 = vmax.f32 %v1452_v29, %v1460_v5  ;;  %v1573_v28 = vrot.slane %v8407_v50, 1  ;;  %v6909_v62 = vld [vmem:[#allocation14 + $0x144] sm:$0xf]  ;;  %v5641_v58 = vld [vmem:[#allocation14 + $0x250] sm:$0xf0] }
 0x401   :  { %v8489_v18 = vpack.c.b16 %v1907_v42, %v1907_v42  ;;  %v1580_v60 = vrot.slane %v8475_v23, 1  ;;  %v5452_v7 = vor.u32 %v6893_v3, %v5449_v47  ;;  %v5532_v9 = vor.u32 %v6913_v20, %v5529_v34  ;;  %v6941_v26 = vld [vmem:[#allocation14 + $0x244] sm:$0xf]  ;;  %v5497_v11 = vld [vmem:[#allocation14 + $0x130] sm:$0xf0] }
 0x402   :  { %3216 = vmatmul.bf16.vlgmr.msra.gmra.mxu3 %v8479_v48  ;;  %3328 = vmatpush.bf16.msrb.mxu0 %v5548_v41  ;;  %v1565_v16 = vmax.f32 %v1563_v1, %v1564_v24  ;;  %v5660_v56 = vor.u32 %v6945_v2, %v5657_v43  ;;  %v1586_v8 = vmax.f32 %v1584_v40, %v1585_v44  ;;  %v1506_v63 = vrot.slane %v1505_v46, 4  ;;  %v6885_v4 = vld [vmem:[#allocation14 + $0x84] sm:$0xf]  ;;  %v5417_v1 = vld [vmem:[#allocation14 + $0x90] sm:$0xf0] }
 0x403   :  { %3312 = vmatpush.bf16.msra.mxu3 %v5468_v6  ;;  %3255 = vmatmul.bf16.vlgmr.msrb.gmra.mxu2 %v8489_v18  ;;  %v5836_v17 = vor.u32 %v6989_v25, %v5833_v54  ;;  %v1514_v32 = vmax.f32 %v8388_v33, %v1513_v55  ;;  %v1527_v30 = vrot.slane %v8486_v38, 4  ;;  %v1521_v10 = vmax.f32 %v8414_v19, %v1520_v12  ;;  %v6905_v22 = vld [vmem:[#allocation14 + $0x124] sm:$0xf]  ;;  %v5625_v6 = vld [vmem:[#allocation14 + $0x230] sm:$0xf0] }
 0x404   :  { %3341 = vmatpush.bf16.msrb.mxu1 %v5676_v51  ;;  %3351 = vmatpush.bf16.msrb.mxu2 %v5852_v49  ;;  %v5436_v39 = vor.u32 %v6889_v0, %v5433_v57  ;;  %v5516_v36 = vor.u32 %v6909_v62, %v5513_v37  ;;  %v1574_v21 = vmax.f32 %v8407_v50, %v1573_v28  ;;  %v1566_v29 = vrot.slane %v1565_v16, 1  ;;  %v6937_v33 = vld [vmem:[#allocation14 + $0x224] sm:$0xf]  ;;  %v5801_v47 = vld [vmem:[#allocation14 + $0x390] sm:$0xf0] }
 0x405   :  { %v1515_v13 = vrot.slane %v1514_v32, 2  ;;  %v5644_v5 = vor.u32 %v6941_v26, %v5641_v58  ;;  %v1522_v59 = vrot.slane %v1521_v10, 2  ;;  %v1581_v52 = vmax.f32 %v8475_v23, %v1580_v60  ;;  %v6981_v53 = vld [vmem:[#allocation14 + $0x384] sm:$0xf]  ;;  %v5401_v24 = vld [vmem:[#allocation14 + $0x70] sm:$0xf0] }
 0x406   :  { %3329 = vmatpush.bf16.msrb.mxu0 %v5532_v9  ;;  %v1587_v40 = vrot.slane %v1586_v8, 1  ;;  %v5820_v19 = vor.u32 %v6985_v31, %v5817_v15  ;;  %v5420_v3 = vor.u32 %v6885_v4, %v5417_v1  ;;  %v6881_v41 = vld [vmem:[#allocation14 + $0x64] sm:$0xf]  ;;  %v5500_v51 = vor.u32 %v6905_v22, %v5497_v11  ;;  %v5481_v44 = vld [vmem:[#allocation14 + $0x110] sm:$0xf0] }
 0x407   :  { %3313 = vmatpush.bf16.msra.mxu3 %v5452_v7  ;;  %v1516_v27 = vmax.f32 %v1514_v32, %v1515_v13  ;;  %v1523_v20 = vmax.f32 %v1521_v10, %v1522_v59  ;;  %v1507_v50 = vmax.f32 %v1505_v46, %v1506_v63  ;;  %v5628_v34 = vor.u32 %v6937_v33, %v5625_v6  ;;  %v6901_v55 = vld [vmem:[#allocation14 + $0x104] sm:$0xf]  ;;  %v5609_v43 = vld [vmem:[#allocation14 + $0x210] sm:$0xf0] }
 0x408   :  { %3342 = vmatpush.bf16.msrb.mxu1 %v5660_v56  ;;  %3352 = vmatpush.bf16.msrb.mxu2 %v5836_v17  ;;  %v1602_v49 = vpack.c.bf16 %v1574_v21, %v1574_v21  ;;  %v1528_v23 = vmax.f32 %v8486_v38, %v1527_v30  ;;  %v6933_v2 = vld [vmem:[#allocation14 + $0x204] sm:$0xf]  ;;  %v1603_v25 = vpack.c.bf16 %v1581_v52, %v1581_v52  ;;  %v5785_v31 = vld [vmem:[#allocation14 + $0x370] sm:$0xf0]  ;;  %vm3803_vm10 = vcmask 1040384  }
 0x409   :  { %v1517_v42 = vrot.slane %v1516_v27, 1  ;;  %v1524_v12 = vrot.slane %v1523_v20, 1  ;;  %v1508_v54 = vrot.slane %v1507_v50, 2  ;;  %v1567_v28 = vmax.f32 %v1565_v16, %v1566_v29  ;;  %v6977_v9 = vld [vmem:[#allocation14 + $0x364] sm:$0xf] }
 0x40a   :  { %3330 = vmatpush.bf16.msrb.mxu0 %v5516_v36  ;;  %v5804_v60 = vor.u32 %v6981_v53, %v5801_v47  ;;  %v1529_v46 = vrot.slane %v1528_v23, 2  ;;  %v1588_v0 = vmax.f32 %v1586_v8, %v1587_v40  ;;  %v5404_v57 = vor.u32 %v6881_v41, %v5401_v24  ;;  %v6877_v56 = vld [vmem:[#allocation14 + $0x44] sm:$0xf]  ;;  %v5385_v38 = vld [vmem:[#allocation14 + $0x50] sm:$0xf0] }
 0x40b   :  { %3314 = vmatpush.bf16.msra.mxu3 %v5436_v39  ;;  %v1518_v7 = vmax.f32 %v1516_v27, %v1517_v42  ;;  %v5484_v62 = vor.u32 %v6901_v55, %v5481_v44  ;;  %v1525_v37 = vmax.f32 %v1523_v20, %v1524_v12  ;;  %v1509_v17 = vmax.f32 %v1507_v50, %v1508_v54  ;;  %v7057_v32 = vld [vmem:[#allocation14 + $0x5e4] sm:$0xf]  ;;  %v6105_v16 = vld [vmem:[#allocation14 + $0x5f0] sm:$0xf0] }
 0x40c   :  { %3343 = vmatpush.bf16.msrb.mxu1 %v5644_v5  ;;  %3353 = vmatpush.bf16.msrb.mxu2 %v5820_v19  ;;  %v5612_v15 = vor.u32 %v6933_v2, %v5609_v43  ;;  %v1900_v58 = vunpack.c.l.b16 %v1602_v49  ;;  %v1530_v63 = vmax.f32 %v1528_v23, %v1529_v46  ;;  %v1901_v4 = vunpack.c.l.b16 %v1603_v25  ;;  %v7089_v8 = vld [vmem:[#allocation14 + $0x6e4] sm:$0xf]  ;;  %v6233_v1 = vld [vmem:[#allocation14 + $0x6f0] sm:$0xf0] }
 0x40d   :  { %v1594_v26 = vpack.c.bf16 %v1518_v7, %v1518_v7  ;;  %v1595_v30 = vpack.c.bf16 %v1525_v37, %v1525_v37  ;;  %v1510_v10 = vrot.slane %v1509_v17, 1  ;;  %v1601_v39 = vpack.c.bf16 %v1567_v28, %v1567_v28  ;;  %v6973_v29 = vld [vmem:[#allocation14 + $0x344] sm:$0xf]  ;;  %v5769_v5 = vld [vmem:[#allocation14 + $0x350] sm:$0xf0] }
 0x40e   :  { %3331 = vmatpush.bf16.msrb.mxu0 %v5500_v51  ;;  %v5788_v36 = vor.u32 %v6977_v9, %v5785_v31  ;;  %v1531_v11 = vrot.slane %v1530_v63, 1  ;;  %v1604_v13 = vpack.c.bf16 %v1588_v0, %v1588_v0  ;;  %v5388_v21 = vor.u32 %v6877_v56, %v5385_v38  ;;  %v5369_v47 = vld [vmem:[#allocation14 + $0x30] sm:$0xf0]  ;;  %v7053_v41 = vld [vmem:[#allocation14 + $0x5c4] sm:$0xf] }
 0x40f   :  { %3315 = vmatpush.bf16.msra.mxu3 %v5420_v3  ;;  %v1892_v22 = vunpack.c.l.b16 %v1594_v26  ;;  %v1893_v33 = vunpack.c.l.b16 %v1595_v30  ;;  %v6108_v6 = vor.u32 %v7057_v32, %v6105_v16  ;;  %v1511_v59 = vmax.f32 %v1509_v17, %v1510_v10  ;;  %v6873_v3 = vld [vmem:[#allocation14 + $0x24] sm:$0xf]  ;;  %v6217_v44 = vld [vmem:[#allocation14 + $0x6d0] sm:$0xf0] }
 0x410   :  { %3344 = vmatpush.bf16.msrb.mxu1 %v5628_v34  ;;  %3354 = vmatpush.bf16.msrb.mxu2 %v5804_v60  ;;  %v6236_v40 = vor.u32 %v7089_v8, %v6233_v1  ;;  %v1532_v19 = vmax.f32 %v1530_v63, %v1531_v11  ;;  %v1899_v51 = vunpack.c.l.b16 %v1601_v39  ;;  %v5772_v20 = vor.u32 %v6973_v29, %v5769_v5  ;;  %v6089_v34 = vld [vmem:[#allocation14 + $0x5d0] sm:$0xf0]  ;;  %v7085_v55 = vld [vmem:[#allocation14 + $0x6c4] sm:$0xf] }
 0x411   :  { %v1909_v52 = vsel %vm1903_vm6, %v1900_v58, %v1892_v22  ;;  %v1910_v27 = vsel %vm1903_vm6, %v1901_v4, %v1893_v33  ;;  %v1593_v24 = vpack.c.bf16 %v1511_v59, %v1511_v59  ;;  %v1902_v49 = vunpack.c.l.b16 %v1604_v13  ;;  %v6969_v23 = vld [vmem:[#allocation14 + $0x324] sm:$0xf]  ;;  %v5753_v2 = vld [vmem:[#allocation14 + $0x330] sm:$0xf0] }
 0x412   :  { %3332 = vmatpush.bf16.msrb.mxu0 %v5484_v62  ;;  %v8501_v53 = vpack.c.b16 %v1909_v52, %v1909_v52  ;;  %v8504_v50 = vpack.c.b16 %v1910_v27, %v1910_v27  ;;  %v1596_v42 = vpack.c.bf16 %v1532_v19, %v1532_v19  ;;  %v5372_v12 = vor.u32 %v6873_v3, %v5369_v47  ;;  %v6869_v25 = vld [vmem:[#allocation14 + $0x4] sm:$0xf]  ;;  %v5353_v7 = vld [vmem:[#allocation14 + $0x10] sm:$0xf0] }
 0x413   :  { %3316 = vmatpush.bf16.msra.mxu3 %v5404_v57  ;;  %v1891_v43 = vunpack.c.l.b16 %v1593_v24  ;;  %v6092_v28 = vor.u32 %v7053_v41, %v6089_v34  ;;  %v6220_v60 = vor.u32 %v7085_v55, %v6217_v44  ;;  %v6965_v46 = vld [vmem:[#allocation14 + $0x304] sm:$0xf]  ;;  %v5756_v9 = vor.u32 %v6969_v23, %v5753_v2  ;;  %v5977_v62 = vld [vmem:[#allocation14 + $0x4f0] sm:$0xf0] }
 0x414   :  { %3345 = vmatpush.bf16.msrb.mxu1 %v5612_v15  ;;  %3355 = vmatpush.bf16.msrb.mxu2 %v5788_v36  ;;  %v1894_v54 = vunpack.c.l.b16 %v1596_v42  ;;  %v7025_v57 = vld [vmem:[#allocation14 + $0x4e4] sm:$0xf]  ;;  %v6073_v17 = vld [vmem:[#allocation14 + $0x5b0] sm:$0xf0]  ;;  %v5356_v32 = vor.u32 %v6869_v25, %v5353_v7  ;;  %vm3809_vm11 = vcmask 1043459   ;;  %vm3811_vm12 = vcmask 1042433  }
 0x415   :  { %3281 = vmatmul.bf16.vlgmr.msra.gmra.mxu0 %v8501_v53  ;;  %3294 = vmatmul.bf16.vlgmr.msra.gmra.mxu1 %v8504_v50  ;;  %v1908_v0 = vsel %vm1903_vm6, %v1899_v51, %v1891_v43  ;;  %v7049_v37 = vld [vmem:[#allocation14 + $0x5a4] sm:$0xf]  ;;  %v5737_v38 = vld [vmem:[#allocation14 + $0x310] sm:$0xf0]  ;;  %v5980_v30 = vor.u32 %v7025_v57, %v5977_v62 }
 0x416   :  { %3377 = vmatpush.bf16.msra.mxu0 %v6108_v6  ;;  %v8509_v31 = vpack.c.b16 %v1908_v0, %v1908_v0  ;;  %v1911_v56 = vsel %vm1903_vm6, %v1902_v49, %v1894_v54  ;;  %v7081_v26 = vld [vmem:[#allocation14 + $0x6a4] sm:$0xf]  ;;  %v6201_v58 = vld [vmem:[#allocation14 + $0x6b0] sm:$0xf0]  ;;  %v6076_v4 = vor.u32 %v7049_v37, %v6073_v17  ;;  %v5740_v1 = vor.u32 %v6965_v46, %v5737_v38 }
 0x417   :  { %3317 = vmatpush.bf16.msra.mxu3 %v5388_v21  ;;  %v8512_v15 = vpack.c.b16 %v1911_v56, %v1911_v56  ;;  %v7121_v16 = vld [vmem:[#allocation14 + $0x7e4] sm:$0xf]  ;;  %v6361_v63 = vld [vmem:[#allocation14 + $0x7f0] sm:$0xf0]  ;;  %v6204_v10 = vor.u32 %v7081_v26, %v6201_v58 }
 0x418   :  { %3390 = vmatpush.bf16.msra.mxu1 %v6236_v40  ;;  %3356 = vmatpush.bf16.msrb.mxu2 %v5772_v20  ;;  %v7021_v8 = vld [vmem:[#allocation14 + $0x4c4] sm:$0xf]  ;;  %v5961_v39 = vld [vmem:[#allocation14 + $0x4d0] sm:$0xf0]  ;;  %v6364_v11 = vor.u32 %v7121_v16, %v6361_v63 }
 0x419   :  { %3268 = vmatmul.bf16.vlgmr.msrb.gmra.mxu3 %v8509_v31  ;;  %v7045_v36 = vld [vmem:[#allocation14 + $0x584] sm:$0xf]  ;;  %v6057_v22 = vld [vmem:[#allocation14 + $0x590] sm:$0xf0]  ;;  %3307 = vmatmul.bf16.vlgmr.msra.gmra.mxu2 %v8512_v15  ;;  %v5964_v33 = vor.u32 %v7021_v8, %v5961_v39 }
 0x41a   :  { %3378 = vmatpush.bf16.msra.mxu0 %v6092_v28  ;;  %v7077_v13 = vld [vmem:[#allocation14 + $0x684] sm:$0xf]  ;;  %v6185_v21 = vld [vmem:[#allocation14 + $0x690] sm:$0xf0]  ;;  %v6060_v6 = vor.u32 %v7045_v36, %v6057_v22  ;;  %v5599_v36 = vld [vmem:[#allocation14 + $0x1e8] sm:$0xf] }
 0x41b   :  { %3318 = vmatpush.bf16.msra.mxu3 %v5372_v12  ;;  %v7117_v29 = vld [vmem:[#allocation14 + $0x7c4] sm:$0xf]  ;;  %v6345_v5 = vld [vmem:[#allocation14 + $0x7d0] sm:$0xf0]  ;;  %v6188_v52 = vor.u32 %v7077_v13, %v6185_v21  ;;  %v6932_v22 = vld [vmem:[#allocation14 + $0x1f4] sm:$0xf0] }
 0x41c   :  { %3391 = vmatpush.bf16.msra.mxu1 %v6220_v60  ;;  %3357 = vmatpush.bf16.msrb.mxu2 %v5756_v9  ;;  %v7017_v59 = vld [vmem:[#allocation14 + $0x4a4] sm:$0xf]  ;;  %v5945_v40 = vld [vmem:[#allocation14 + $0x4b0] sm:$0xf0]  ;;  %v6348_v3 = vor.u32 %v7117_v29, %v6345_v5  ;;  %v5727_v13 = vld [vmem:[#allocation14 + $0x2e8] sm:$0xf] }
 0x41d   :  { %v7041_v19 = vld [vmem:[#allocation14 + $0x564] sm:$0xf]  ;;  %v6041_v27 = vld [vmem:[#allocation14 + $0x570] sm:$0xf0]  ;;  %v5948_v20 = vor.u32 %v7017_v59, %v5945_v40  ;;  %v6964_v21 = vld [vmem:[#allocation14 + $0x2f4] sm:$0xf0] }
 0x41e   :  { %3379 = vmatpush.bf16.msra.mxu0 %v6076_v4  ;;  %v7073_v47 = vld [vmem:[#allocation14 + $0x664] sm:$0xf]  ;;  %v6169_v41 = vld [vmem:[#allocation14 + $0x670] sm:$0xf0]  ;;  %v6044_v34 = vor.u32 %v7041_v19, %v6041_v27  ;;  %v5728_v19 = vor.u32 %v6964_v21, %v5727_v13  ;;  %v5663_v13 = vld [vmem:[#allocation14 + $0x268] sm:$0xf] }
 0x41f   :  { %3319 = vmatpush.bf16.msra.mxu3 %v5356_v32  ;;  %v7113_v24 = vld [vmem:[#allocation14 + $0x7a4] sm:$0xf]  ;;  %v6329_v51 = vld [vmem:[#allocation14 + $0x7b0] sm:$0xf0]  ;;  %v6172_v44 = vor.u32 %v7073_v47, %v6169_v41  ;;  %v6928_v47 = vld [vmem:[#allocation14 + $0x1d4] sm:$0xf0] }
 0x420   :  { %3358 = vmatpush.bf16.msrb.mxu2 %v5740_v1  ;;  %3392 = vmatpush.bf16.msra.mxu1 %v6204_v10  ;;  %v7013_v55 = vld [vmem:[#allocation14 + $0x484] sm:$0xf]  ;;  %v5929_v42 = vld [vmem:[#allocation14 + $0x490] sm:$0xf0]  ;;  %v6332_v2 = vor.u32 %v7113_v24, %v6329_v51  ;;  %v5711_v24 = vld [vmem:[#allocation14 + $0x2c8] sm:$0xf] }
 0x421   :  { %v7037_v49 = vld [vmem:[#allocation14 + $0x544] sm:$0xf]  ;;  %v6025_v23 = vld [vmem:[#allocation14 + $0x550] sm:$0xf0]  ;;  %v5932_v28 = vor.u32 %v7013_v55, %v5929_v42  ;;  %v6960_v51 = vld [vmem:[#allocation14 + $0x2d4] sm:$0xf0] }
 0x422   :  { %3380 = vmatpush.bf16.msra.mxu0 %v6060_v6  ;;  %v7069_v43 = vld [vmem:[#allocation14 + $0x644] sm:$0xf]  ;;  %v6153_v12 = vld [vmem:[#allocation14 + $0x650] sm:$0xf0]  ;;  %v6028_v60 = vor.u32 %v7037_v49, %v6025_v23  ;;  %v5600_v6 = vor.u32 %v6932_v22, %v5599_v36  ;;  %v5471_v49 = vld [vmem:[#allocation14 + $0xe8] sm:$0xf] }
 0x423   :  { %3364 = vmatpush.bf16.msrb.mxu3 %v5980_v30  ;;  %v7109_v25 = vld [vmem:[#allocation14 + $0x784] sm:$0xf]  ;;  %v6313_v54 = vld [vmem:[#allocation14 + $0x790] sm:$0xf0]  ;;  %v6156_v46 = vor.u32 %v7069_v43, %v6153_v12  ;;  %v6900_v43 = vld [vmem:[#allocation14 + $0xf4] sm:$0xf0] }
 0x424   :  { %3403 = vmatpush.bf16.msra.mxu2 %v6364_v11  ;;  %3393 = vmatpush.bf16.msra.mxu1 %v6188_v52  ;;  %v7009_v7 = vld [vmem:[#allocation14 + $0x464] sm:$0xf]  ;;  %v5913_v0 = vld [vmem:[#allocation14 + $0x470] sm:$0xf0]  ;;  %v6316_v56 = vor.u32 %v7109_v25, %v6313_v54  ;;  %v5567_v12 = vld [vmem:[#allocation14 + $0x1a8] sm:$0xf] }
 0x425   :  { %3333 = vmatmul.bf16.vlgmr.msrb.gmra.mxu0 %v8448_v61  ;;  %3346 = vmatmul.bf16.vlgmr.msrb.gmra.mxu1 %v8452_v45  ;;  %v7033_v57 = vld [vmem:[#allocation14 + $0x524] sm:$0xf]  ;;  %v6009_v9 = vld [vmem:[#allocation14 + $0x530] sm:$0xf0]  ;;  %v5916_v26 = vor.u32 %v7009_v7, %v5913_v0  ;;  %v6924_v25 = vld [vmem:[#allocation14 + $0x1b4] sm:$0xf0] }
 0x426   :  { %3381 = vmatpush.bf16.msra.mxu0 %v6044_v34  ;;  %v7065_v62 = vld [vmem:[#allocation14 + $0x624] sm:$0xf]  ;;  %v6137_v37 = vld [vmem:[#allocation14 + $0x630] sm:$0xf0]  ;;  %v6012_v58 = vor.u32 %v7033_v57, %v6009_v9  ;;  %v6996_v0 = vld [vmem:[#allocation14 + $0x3f4] sm:$0xf0]  ;;  %v5472_v57 = vor.u32 %v6900_v43, %v5471_v49  ;;  %v5568_v9 = vor.u32 %v6924_v25, %v5567_v12 }
 0x427   :  { %3365 = vmatpush.bf16.msrb.mxu3 %v5964_v33  ;;  %v7105_v17 = vld [vmem:[#allocation14 + $0x764] sm:$0xf]  ;;  %v6297_v38 = vld [vmem:[#allocation14 + $0x770] sm:$0xf0]  ;;  %v6140_v63 = vor.u32 %v7065_v62, %v6137_v37  ;;  %v5455_v37 = vld [vmem:[#allocation14 + $0xc8] sm:$0xf] }
 0x428   :  { %3404 = vmatpush.bf16.msra.mxu2 %v6348_v3  ;;  %3394 = vmatpush.bf16.msra.mxu1 %v6172_v44  ;;  %v7005_v32 = vld [vmem:[#allocation14 + $0x444] sm:$0xf]  ;;  %v5897_v16 = vld [vmem:[#allocation14 + $0x450] sm:$0xf0]  ;;  %v6300_v10 = vor.u32 %v7105_v17, %v6297_v38  ;;  %v5583_v3 = vld [vmem:[#allocation14 + $0x1c8] sm:$0xf] }
 0x429   :  { %3320 = vmatmul.bf16.vlgmr.msra.gmra.mxu3 %v8479_v48  ;;  %v7101_v30 = vld [vmem:[#allocation14 + $0x744] sm:$0xf]  ;;  %v5993_v8 = vld [vmem:[#allocation14 + $0x510] sm:$0xf0]  ;;  %3359 = vmatmul.bf16.vlgmr.msrb.gmra.mxu2 %v8489_v18  ;;  %v5900_v29 = vor.u32 %v7005_v32, %v5897_v16  ;;  %v5584_v55 = vor.u32 %v6928_v47, %v5583_v3  ;;  %v6896_v17 = vld [vmem:[#allocation14 + $0xd4] sm:$0xf0] }
 0x42a   :  { %3382 = vmatpush.bf16.msra.mxu0 %v6028_v60  ;;  %v7029_v4 = vld [vmem:[#allocation14 + $0x504] sm:$0xf]  ;;  %v6121_v39 = vld [vmem:[#allocation14 + $0x610] sm:$0xf0]  ;;  %v6956_v60 = vld [vmem:[#allocation14 + $0x2b4] sm:$0xf0] }
 0x42b   :  { %3366 = vmatpush.bf16.msrb.mxu3 %v5948_v20  ;;  %v7061_v1 = vld [vmem:[#allocation14 + $0x604] sm:$0xf]  ;;  %v6281_v11 = vld [vmem:[#allocation14 + $0x750] sm:$0xf0]  ;;  %v5996_v5 = vor.u32 %v7029_v4, %v5993_v8  ;;  %v5551_v38 = vld [vmem:[#allocation14 + $0x188] sm:$0xf]  ;;  %v5456_v4 = vor.u32 %v6896_v17, %v5455_v37 }
 0x42c   :  { %3405 = vmatpush.bf16.msra.mxu2 %v6332_v2  ;;  %3395 = vmatpush.bf16.msra.mxu1 %v6156_v46  ;;  %v6124_v33 = vor.u32 %v7061_v1, %v6121_v39  ;;  %v7001_v59 = vld [vmem:[#allocation14 + $0x424] sm:$0xf]  ;;  %v5881_v52 = vld [vmem:[#allocation14 + $0x430] sm:$0xf0]  ;;  %v6284_v40 = vor.u32 %v7101_v30, %v6281_v11  ;;  %v5712_v2 = vor.u32 %v6960_v51, %v5711_v24  ;;  %v5855_v46 = vld [vmem:[#allocation14 + $0x3e8] sm:$0xf] }
 0x42d   :  { %v7097_v27 = vld [vmem:[#allocation14 + $0x724] sm:$0xf]  ;;  %v6265_v41 = vld [vmem:[#allocation14 + $0x730] sm:$0xf0]  ;;  %v5884_v20 = vor.u32 %v7001_v59, %v5881_v52  ;;  %v5679_v32 = vld [vmem:[#allocation14 + $0x288] sm:$0xf] }
 0x42e   :  { %3383 = vmatpush.bf16.msra.mxu0 %v6012_v58  ;;  %v6997_v34 = vld [vmem:[#allocation14 + $0x404] sm:$0xf]  ;;  %v5865_v44 = vld [vmem:[#allocation14 + $0x410] sm:$0xf0]  ;;  %v6268_v23 = vor.u32 %v7097_v27, %v6265_v41  ;;  %v6920_v58 = vld [vmem:[#allocation14 + $0x194] sm:$0xf0] }
 0x42f   :  { %3367 = vmatpush.bf16.msrb.mxu3 %v5932_v28  ;;  %v7093_v42 = vld [vmem:[#allocation14 + $0x704] sm:$0xf]  ;;  %v6249_v54 = vld [vmem:[#allocation14 + $0x710] sm:$0xf0]  ;;  %v5695_v28 = vld [vmem:[#allocation14 + $0x2a8] sm:$0xf]  ;;  %v5868_v7 = vor.u32 %v6997_v34, %v5865_v44  ;;  %v5552_v8 = vor.u32 %v6920_v58, %v5551_v38 }
 0x430   :  { %3406 = vmatpush.bf16.msra.mxu2 %v6316_v56  ;;  %3396 = vmatpush.bf16.msra.mxu1 %v6140_v63  ;;  %v6252_v56 = vor.u32 %v7093_v42, %v6249_v54  ;;  %v5696_v62 = vor.u32 %v6956_v60, %v5695_v28  ;;  %v6952_v16 = vld [vmem:[#allocation14 + $0x294] sm:$0xf0]  ;;  %v5839_v63 = vld [vmem:[#allocation14 + $0x3c8] sm:$0xf] }
 0x431   :  { %v6992_v30 = vld [vmem:[#allocation14 + $0x3d4] sm:$0xf0]  ;;  %v5680_v1 = vor.u32 %v6952_v16, %v5679_v32  ;;  %v5535_v36 = vld [vmem:[#allocation14 + $0x168] sm:$0xf] }
 0x432   :  { %3384 = vmatpush.bf16.msra.mxu0 %v5996_v5  ;;  %v6892_v39 = vld [vmem:[#allocation14 + $0xb4] sm:$0xf0]  ;;  %v5840_v22 = vor.u32 %v6992_v30, %v5839_v63  ;;  %v5423_v52 = vld [vmem:[#allocation14 + $0x88] sm:$0xf] }
 0x433   :  { %3368 = vmatpush.bf16.msrb.mxu3 %v5916_v26  ;;  %v5856_v26 = vor.u32 %v6996_v0, %v5855_v46  ;;  %v6916_v11 = vld [vmem:[#allocation14 + $0x174] sm:$0xf0]  ;;  %v5647_v47 = vld [vmem:[#allocation14 + $0x248] sm:$0xf] }
 0x434   :  { %3407 = vmatpush.bf16.msra.mxu2 %v6300_v10  ;;  %3397 = vmatpush.bf16.msra.mxu1 %v6124_v33  ;;  %v5439_v10 = vld [vmem:[#allocation14 + $0xa8] sm:$0xf]  ;;  %v6948_v21 = vld [vmem:[#allocation14 + $0x274] sm:$0xf0] }
 0x435   :  { %3385 = vmatmul.bf16.vlgmr.msra.gmra.mxu0 %v8501_v53  ;;  %v6988_v5 = vld [vmem:[#allocation14 + $0x3b4] sm:$0xf0]  ;;  %v5440_v33 = vor.u32 %v6892_v39, %v5439_v10  ;;  %v5664_v59 = vor.u32 %v6948_v21, %v5663_v13  ;;  %v5807_v24 = vld [vmem:[#allocation14 + $0x388] sm:$0xf] }
 0x436   :  { %3429 = vmatpush.bf16.msrb.mxu0 %v5600_v6  ;;  %v5536_v6 = vor.u32 %v6916_v11, %v5535_v36  ;;  %v6912_v3 = vld [vmem:[#allocation14 + $0x154] sm:$0xf0]  ;;  %v5407_v44 = vld [vmem:[#allocation14 + $0x68] sm:$0xf] }
 0x437   :  { %3369 = vmatpush.bf16.msrb.mxu3 %v5900_v29  ;;  %3398 = vmatmul.bf16.vlgmr.msra.gmra.mxu1 %v8504_v50  ;;  %v5823_v29 = vld [vmem:[#allocation14 + $0x3a8] sm:$0xf]  ;;  %v6944_v41 = vld [vmem:[#allocation14 + $0x254] sm:$0xf0] }
 0x438   :  { %3408 = vmatpush.bf16.msra.mxu2 %v6284_v40  ;;  %3442 = vmatpush.bf16.msrb.mxu1 %v5728_v19  ;;  %v6888_v40 = vld [vmem:[#allocation14 + $0x94] sm:$0xf0]  ;;  %v5519_v19 = vld [vmem:[#allocation14 + $0x148] sm:$0xf]  ;;  %v5824_v27 = vor.u32 %v6988_v5, %v5823_v29 }
 0x439   :  { %v6984_v51 = vld [vmem:[#allocation14 + $0x394] sm:$0xf0]  ;;  %v5520_v34 = vor.u32 %v6912_v3, %v5519_v19  ;;  %v5503_v49 = vld [vmem:[#allocation14 + $0x128] sm:$0xf] }
 0x43a   :  { %3430 = vmatpush.bf16.msrb.mxu0 %v5584_v55  ;;  %v5648_v55 = vor.u32 %v6944_v41, %v5647_v47  ;;  %v6884_v42 = vld [vmem:[#allocation14 + $0x74] sm:$0xf0]  ;;  %v5631_v43 = vld [vmem:[#allocation14 + $0x228] sm:$0xf] }
 0x43b   :  { %3370 = vmatpush.bf16.msrb.mxu3 %v5884_v20  ;;  %v5424_v20 = vor.u32 %v6888_v40, %v5423_v52  ;;  %v6940_v12 = vld [vmem:[#allocation14 + $0x234] sm:$0xf0]  ;;  %v5791_v25 = vld [vmem:[#allocation14 + $0x368] sm:$0xf]  ;;  %v5408_v28 = vor.u32 %v6884_v42, %v5407_v44 }
 0x43c   :  { %3409 = vmatpush.bf16.msra.mxu2 %v6268_v23  ;;  %3443 = vmatpush.bf16.msrb.mxu1 %v5712_v2  ;;  %v5808_v23 = vor.u32 %v6984_v51, %v5807_v24  ;;  %v6908_v2 = vld [vmem:[#allocation14 + $0x134] sm:$0xf0]  ;;  %v5391_v60 = vld [vmem:[#allocation14 + $0x48] sm:$0xf]  ;;  %v5632_v46 = vor.u32 %v6940_v12, %v5631_v43 }
 0x43d   :  { %v6980_v54 = vld [vmem:[#allocation14 + $0x374] sm:$0xf0]  ;;  %v5615_v37 = vld [vmem:[#allocation14 + $0x208] sm:$0xf] }
 0x43e   :  { %3431 = vmatpush.bf16.msrb.mxu0 %v5568_v9  ;;  %v6880_v0 = vld [vmem:[#allocation14 + $0x54] sm:$0xf0]  ;;  %v5487_v9 = vld [vmem:[#allocation14 + $0x108] sm:$0xf] }
 0x43f   :  { %3371 = vmatpush.bf16.msrb.mxu3 %v5868_v7  ;;  %v5504_v7 = vor.u32 %v6908_v2, %v5503_v49  ;;  %v6936_v17 = vld [vmem:[#allocation14 + $0x214] sm:$0xf0]  ;;  %v5392_v32 = vor.u32 %v6880_v0, %v5391_v60  ;;  %v6239_v16 = vld [vmem:[#allocation14 + $0x6e8] sm:$0xf] }
 0x440   :  { %3410 = vmatpush.bf16.msra.mxu2 %v6252_v56  ;;  %3444 = vmatpush.bf16.msrb.mxu1 %v5696_v62  ;;  %v5792_v56 = vor.u32 %v6980_v54, %v5791_v25  ;;  %v6904_v62 = vld [vmem:[#allocation14 + $0x114] sm:$0xf0]  ;;  %v5759_v36 = vld [vmem:[#allocation14 + $0x328] sm:$0xf] }
 0x441   :  { %v6976_v38 = vld [vmem:[#allocation14 + $0x354] sm:$0xf0]  ;;  %v5488_v30 = vor.u32 %v6904_v62, %v5487_v9  ;;  %v6095_v13 = vld [vmem:[#allocation14 + $0x5c8] sm:$0xf] }
 0x442   :  { %3372 = vmatmul.bf16.vlgmr.msrb.gmra.mxu3 %v8509_v31  ;;  %3432 = vmatpush.bf16.msrb.mxu0 %v5552_v8  ;;  %v7060_v58 = vld [vmem:[#allocation14 + $0x5f4] sm:$0xf0]  ;;  %v5375_v8 = vld [vmem:[#allocation14 + $0x28] sm:$0xf] }
 0x443   :  { %3416 = vmatpush.bf16.msra.mxu3 %v5472_v57  ;;  %3411 = vmatmul.bf16.vlgmr.msra.gmra.mxu2 %v8512_v15  ;;  %v5775_v57 = vld [vmem:[#allocation14 + $0x348] sm:$0xf]  ;;  %v7092_v63 = vld [vmem:[#allocation14 + $0x6f4] sm:$0xf0] }
 0x444   :  { %3455 = vmatpush.bf16.msrb.mxu2 %v5856_v26  ;;  %3445 = vmatpush.bf16.msrb.mxu1 %v5680_v1  ;;  %v6111_v26 = vld [vmem:[#allocation14 + $0x5e8] sm:$0xf]  ;;  %v6876_v1 = vld [vmem:[#allocation14 + $0x34] sm:$0xf0]  ;;  %v5776_v10 = vor.u32 %v6976_v38, %v5775_v57 }
 0x445   :  { %v6112_v39 = vor.u32 %v7060_v58, %v6111_v26  ;;  %v6972_v11 = vld [vmem:[#allocation14 + $0x334] sm:$0xf0]  ;;  %v5376_v29 = vor.u32 %v6876_v1, %v5375_v8  ;;  %v6223_v5 = vld [vmem:[#allocation14 + $0x6c8] sm:$0xf] }
 0x446   :  { %3433 = vmatpush.bf16.msrb.mxu0 %v5536_v6  ;;  %v7056_v21 = vld [vmem:[#allocation14 + $0x5d4] sm:$0xf0]  ;;  %v5359_v6 = vld [vmem:[#allocation14 + $0x8] sm:$0xf]  ;;  %v5760_v52 = vor.u32 %v6972_v11, %v5759_v36 }
 0x447   :  { %3417 = vmatpush.bf16.msra.mxu3 %v5456_v4  ;;  %v5616_v4 = vor.u32 %v6936_v17, %v5615_v37  ;;  %v6096_v40 = vor.u32 %v7056_v21, %v6095_v13  ;;  %v5743_v19 = vld [vmem:[#allocation14 + $0x308] sm:$0xf]  ;;  %v7028_v3 = vld [vmem:[#allocation14 + $0x4f4] sm:$0xf0] }
 0x448   :  { %3456 = vmatpush.bf16.msrb.mxu2 %v5840_v22  ;;  %3446 = vmatpush.bf16.msrb.mxu1 %v5664_v59  ;;  %v6240_v22 = vor.u32 %v7092_v63, %v6239_v16  ;;  %v6872_v59 = vld [vmem:[#allocation14 + $0x14] sm:$0xf0]  ;;  %v6079_v24 = vld [vmem:[#allocation14 + $0x5a8] sm:$0xf] }
 0x449   :  { %v6968_v41 = vld [vmem:[#allocation14 + $0x314] sm:$0xf0]  ;;  %v6207_v42 = vld [vmem:[#allocation14 + $0x6a8] sm:$0xf] }
 0x44a   :  { %3434 = vmatpush.bf16.msrb.mxu0 %v5520_v34  ;;  %v7052_v51 = vld [vmem:[#allocation14 + $0x5b4] sm:$0xf0]  ;;  %v6367_v34 = vld [vmem:[#allocation14 + $0x7e8] sm:$0xf] }
 0x44b   :  { %3418 = vmatpush.bf16.msra.mxu3 %v5440_v33  ;;  %v7088_v33 = vld [vmem:[#allocation14 + $0x6d4] sm:$0xf0]  ;;  %v6080_v2 = vor.u32 %v7052_v51, %v6079_v24  ;;  %v5967_v43 = vld [vmem:[#allocation14 + $0x4c8] sm:$0xf] }
 0x44c   :  { %3457 = vmatpush.bf16.msrb.mxu2 %v5824_v27  ;;  %3447 = vmatpush.bf16.msrb.mxu1 %v5648_v55  ;;  %v5983_v27 = vld [vmem:[#allocation14 + $0x4e8] sm:$0xf]  ;;  %v6224_v47 = vor.u32 %v7088_v33, %v6223_v5  ;;  %v7124_v55 = vld [vmem:[#allocation14 + $0x7f4] sm:$0xf0] }
 0x44d   :  { %v5984_v44 = vor.u32 %v7028_v3, %v5983_v27  ;;  %v7084_v49 = vld [vmem:[#allocation14 + $0x6b4] sm:$0xf0]  ;;  %v6368_v25 = vor.u32 %v7124_v55, %v6367_v34  ;;  %v6063_v54 = vld [vmem:[#allocation14 + $0x588] sm:$0xf] }
 0x44e   :  { %3435 = vmatpush.bf16.msrb.mxu0 %v5504_v7  ;;  %v7024_v12 = vld [vmem:[#allocation14 + $0x4d4] sm:$0xf0]  ;;  %v6208_v60 = vor.u32 %v7084_v49, %v6207_v42  ;;  %v6351_v7 = vld [vmem:[#allocation14 + $0x7c8] sm:$0xf] }
 0x44f   :  { %3419 = vmatpush.bf16.msra.mxu3 %v5424_v20  ;;  %v5360_v20 = vor.u32 %v6872_v59, %v5359_v6  ;;  %v5968_v0 = vor.u32 %v7024_v12, %v5967_v43  ;;  %v6191_v57 = vld [vmem:[#allocation14 + $0x688] sm:$0xf]  ;;  %v7080_v9 = vld [vmem:[#allocation14 + $0x694] sm:$0xf0] }
 0x450   :  { %3458 = vmatpush.bf16.msrb.mxu2 %v5808_v23  ;;  %3448 = vmatpush.bf16.msrb.mxu1 %v5632_v46  ;;  %v5744_v23 = vor.u32 %v6968_v41, %v5743_v19  ;;  %v7120_v46 = vld [vmem:[#allocation14 + $0x7d4] sm:$0xf0]  ;;  %v5951_v62 = vld [vmem:[#allocation14 + $0x4a8] sm:$0xf]  ;;  %v6192_v58 = vor.u32 %v7080_v9, %v6191_v57  ;;  %v5729_v57 = vld [vmem:[#allocation14 + $0x2f8] sm:$0xf0] }
 0x451   :  { %v7020_v37 = vld [vmem:[#allocation14 + $0x4b4] sm:$0xf0]  ;;  %v6352_v17 = vor.u32 %v7120_v46, %v6351_v7  ;;  %v6047_v38 = vld [vmem:[#allocation14 + $0x568] sm:$0xf]  ;;  %v6962_v46 = vld [vmem:[#allocation14 + $0x2ec] sm:$0xf] }
 0x452   :  { %3436 = vmatpush.bf16.msrb.mxu0 %v5488_v30  ;;  %v7044_v26 = vld [vmem:[#allocation14 + $0x574] sm:$0xf0]  ;;  %v5952_v63 = vor.u32 %v7020_v37, %v5951_v62  ;;  %v6175_v30 = vld [vmem:[#allocation14 + $0x668] sm:$0xf] }
 0x453   :  { %3420 = vmatpush.bf16.msra.mxu3 %v5408_v28  ;;  %v7048_v28 = vld [vmem:[#allocation14 + $0x594] sm:$0xf0]  ;;  %v6048_v8 = vor.u32 %v7044_v26, %v6047_v38  ;;  %v5935_v1 = vld [vmem:[#allocation14 + $0x488] sm:$0xf] }
 0x454   :  { %3459 = vmatpush.bf16.msrb.mxu2 %v5792_v56  ;;  %3449 = vmatpush.bf16.msrb.mxu1 %v5616_v4  ;;  %v6064_v56 = vor.u32 %v7048_v28, %v6063_v54  ;;  %v7116_v16 = vld [vmem:[#allocation14 + $0x7b4] sm:$0xf0]  ;;  %v6031_v36 = vld [vmem:[#allocation14 + $0x548] sm:$0xf]  ;;  %v5601_v54 = vld [vmem:[#allocation14 + $0x1f8] sm:$0xf0] }
 0x455   :  { %3437 = vmatmul.bf16.vlgmr.msrb.gmra.mxu0 %v8448_v61  ;;  %v7076_v4 = vld [vmem:[#allocation14 + $0x674] sm:$0xf0]  ;;  %v6319_v13 = vld [vmem:[#allocation14 + $0x788] sm:$0xf] }
 0x456   :  { %3481 = vmatpush.bf16.msra.mxu0 %v6112_v39  ;;  %v6176_v11 = vor.u32 %v7076_v4, %v6175_v30  ;;  %v7112_v21 = vld [vmem:[#allocation14 + $0x794] sm:$0xf0]  ;;  %v6159_v5 = vld [vmem:[#allocation14 + $0x648] sm:$0xf]  ;;  %v6958_v30 = vld [vmem:[#allocation14 + $0x2cc] sm:$0xf] }
 0x457   :  { %3421 = vmatpush.bf16.msra.mxu3 %v5392_v32  ;;  %3450 = vmatmul.bf16.vlgmr.msrb.gmra.mxu1 %v8452_v45  ;;  %v6335_v32 = vld [vmem:[#allocation14 + $0x7a8] sm:$0xf]  ;;  %v7072_v33 = vld [vmem:[#allocation14 + $0x654] sm:$0xf0]  ;;  %v5713_v4 = vld [vmem:[#allocation14 + $0x2d8] sm:$0xf0] }
 0x458   :  { %3460 = vmatpush.bf16.msrb.mxu2 %v5776_v10  ;;  %3494 = vmatpush.bf16.msra.mxu1 %v6240_v22  ;;  %v7016_v10 = vld [vmem:[#allocation14 + $0x494] sm:$0xf0]  ;;  %v6336_v39 = vor.u32 %v7116_v16, %v6335_v32  ;;  %v5919_v59 = vld [vmem:[#allocation14 + $0x468] sm:$0xf]  ;;  %v6160_v3 = vor.u32 %v7072_v33, %v6159_v5  ;;  %v6926_v16 = vld [vmem:[#allocation14 + $0x1cc] sm:$0xf] }
 0x459   :  { %v7040_v22 = vld [vmem:[#allocation14 + $0x554] sm:$0xf0]  ;;  %v6015_v19 = vld [vmem:[#allocation14 + $0x528] sm:$0xf]  ;;  %v6994_v5 = vld [vmem:[#allocation14 + $0x3ec] sm:$0xf] }
 0x45a   :  { %3482 = vmatpush.bf16.msra.mxu0 %v6096_v40  ;;  %v6032_v6 = vor.u32 %v7040_v22, %v6031_v36  ;;  %v6320_v40 = vor.u32 %v7112_v21, %v6319_v13  ;;  %v7036_v27 = vld [vmem:[#allocation14 + $0x534] sm:$0xf0]  ;;  %v6143_v51 = vld [vmem:[#allocation14 + $0x628] sm:$0xf]  ;;  %v5473_v36 = vld [vmem:[#allocation14 + $0xf8] sm:$0xf0]  ;;  %v5716_v21 = vor.u32 %v6958_v30, %v5713_v4 }
 0x45b   :  { %3422 = vmatpush.bf16.msra.mxu3 %v5376_v29  ;;  %v5936_v29 = vor.u32 %v7016_v10, %v5935_v1  ;;  %v7108_v41 = vld [vmem:[#allocation14 + $0x774] sm:$0xf0]  ;;  %v6016_v34 = vor.u32 %v7036_v27, %v6015_v19  ;;  %v5903_v55 = vld [vmem:[#allocation14 + $0x448] sm:$0xf]  ;;  %v5857_v33 = vld [vmem:[#allocation14 + $0x3f8] sm:$0xf0] }
 0x45c   :  { %3461 = vmatpush.bf16.msrb.mxu2 %v5760_v52  ;;  %3495 = vmatpush.bf16.msra.mxu1 %v6224_v47  ;;  %v7012_v52 = vld [vmem:[#allocation14 + $0x474] sm:$0xf0]  ;;  %v6303_v47 = vld [vmem:[#allocation14 + $0x768] sm:$0xf]  ;;  %v6954_v19 = vld [vmem:[#allocation14 + $0x2ac] sm:$0xf] }
 0x45d   :  { %v5920_v24 = vor.u32 %v7012_v52, %v5919_v59  ;;  %v6304_v42 = vor.u32 %v7108_v41, %v6303_v47  ;;  %v6287_v49 = vld [vmem:[#allocation14 + $0x748] sm:$0xf]  ;;  %v7104_v12 = vld [vmem:[#allocation14 + $0x754] sm:$0xf0]  ;;  %v5697_v27 = vld [vmem:[#allocation14 + $0x2b8] sm:$0xf0] }
 0x45e   :  { %3483 = vmatpush.bf16.msra.mxu0 %v6080_v2  ;;  %v7032_v2 = vld [vmem:[#allocation14 + $0x514] sm:$0xf0]  ;;  %v5887_v9 = vld [vmem:[#allocation14 + $0x428] sm:$0xf]  ;;  %v6288_v62 = vor.u32 %v7104_v12, %v6287_v49  ;;  %v6894_v41 = vld [vmem:[#allocation14 + $0xcc] sm:$0xf] }
 0x45f   :  { %3423 = vmatpush.bf16.msra.mxu3 %v5360_v20  ;;  %v7068_v20 = vld [vmem:[#allocation14 + $0x634] sm:$0xf0]  ;;  %v6271_v38 = vld [vmem:[#allocation14 + $0x728] sm:$0xf]  ;;  %v6890_v12 = vld [vmem:[#allocation14 + $0xac] sm:$0xf] }
 0x460   :  { %3462 = vmatpush.bf16.msrb.mxu2 %v5744_v23  ;;  %3496 = vmatpush.bf16.msra.mxu1 %v6208_v60  ;;  %v5999_v23 = vld [vmem:[#allocation14 + $0x508] sm:$0xf]  ;;  %v6144_v43 = vor.u32 %v7068_v20, %v6143_v51  ;;  %v7064_v7 = vld [vmem:[#allocation14 + $0x614] sm:$0xf0]  ;;  %v5860_v51 = vor.u32 %v6994_v5, %v5857_v33  ;;  %v6982_v30 = vld [vmem:[#allocation14 + $0x38c] sm:$0xf] }
 0x461   :  { %v6127_v60 = vld [vmem:[#allocation14 + $0x608] sm:$0xf]  ;;  %v7100_v26 = vld [vmem:[#allocation14 + $0x734] sm:$0xf0]  ;;  %v5809_v4 = vld [vmem:[#allocation14 + $0x398] sm:$0xf0] }
 0x462   :  { %3424 = vmatmul.bf16.vlgmr.msra.gmra.mxu3 %v8479_v48  ;;  %3484 = vmatpush.bf16.msra.mxu0 %v6064_v56  ;;  %v7004_v56 = vld [vmem:[#allocation14 + $0x434] sm:$0xf0]  ;;  %v6272_v10 = vor.u32 %v7100_v26, %v6271_v38  ;;  %v6886_v38 = vld [vmem:[#allocation14 + $0x8c] sm:$0xf]  ;;  %v5425_v26 = vld [vmem:[#allocation14 + $0x98] sm:$0xf0] }
 0x463   :  { %3468 = vmatpush.bf16.msrb.mxu3 %v5984_v44  ;;  %3463 = vmatmul.bf16.vlgmr.msrb.gmra.mxu2 %v8489_v18  ;;  %v7008_v44 = vld [vmem:[#allocation14 + $0x454] sm:$0xf0]  ;;  %v5888_v32 = vor.u32 %v7004_v56, %v5887_v9  ;;  %v5537_v56 = vld [vmem:[#allocation14 + $0x178] sm:$0xf0]  ;;  %v6978_v33 = vld [vmem:[#allocation14 + $0x36c] sm:$0xf] }
 0x464   :  { %3507 = vmatpush.bf16.msra.mxu2 %v6368_v25  ;;  %3497 = vmatpush.bf16.msra.mxu1 %v6192_v58  ;;  %v6930_v25 = vld [vmem:[#allocation14 + $0x1ec] sm:$0xf]  ;;  %v5904_v28 = vor.u32 %v7008_v44, %v5903_v55  ;;  %v5732_v58 = vor.u32 %v6962_v46, %v5729_v57  ;;  %v7000_v1 = vld [vmem:[#allocation14 + $0x414] sm:$0xf0]  ;;  %v5841_v44 = vld [vmem:[#allocation14 + $0x3d8] sm:$0xf0] }
 0x465   :  { %v5604_v37 = vor.u32 %v6930_v25, %v5601_v54  ;;  %v7096_v13 = vld [vmem:[#allocation14 + $0x714] sm:$0xf0]  ;;  %v6990_v55 = vld [vmem:[#allocation14 + $0x3cc] sm:$0xf]  ;;  %v5441_v25 = vld [vmem:[#allocation14 + $0xb8] sm:$0xf0] }
 0x466   :  { %3485 = vmatpush.bf16.msra.mxu0 %v6048_v8  ;;  %v5871_v8 = vld [vmem:[#allocation14 + $0x408] sm:$0xf]  ;;  %v5844_v54 = vor.u32 %v6990_v55, %v5841_v44  ;;  %v5825_v46 = vld [vmem:[#allocation14 + $0x3b8] sm:$0xf0]  ;;  %v5444_v9 = vor.u32 %v6890_v12, %v5441_v25  ;;  %v6934_v25 = vld [vmem:[#allocation14 + $0x20c] sm:$0xf] }
 0x467   :  { %3469 = vmatpush.bf16.msrb.mxu3 %v5968_v0  ;;  %v6000_v0 = vor.u32 %v7032_v2, %v5999_v23  ;;  %v5553_v23 = vld [vmem:[#allocation14 + $0x198] sm:$0xf0]  ;;  %v6950_v2 = vld [vmem:[#allocation14 + $0x28c] sm:$0xf] }
 0x468   :  { %3508 = vmatpush.bf16.msra.mxu2 %v6352_v17  ;;  %3498 = vmatpush.bf16.msra.mxu1 %v6176_v11  ;;  %v6128_v17 = vor.u32 %v7064_v7, %v6127_v60  ;;  %v6255_v11 = vld [vmem:[#allocation14 + $0x708] sm:$0xf]  ;;  %v6986_v7 = vld [vmem:[#allocation14 + $0x3ac] sm:$0xf] }
 0x46a   :  { %3486 = vmatpush.bf16.msra.mxu0 %v6032_v6  ;;  %v6922_v6 = vld [vmem:[#allocation14 + $0x1ac] sm:$0xf] }
 0x46b   :  { %3470 = vmatpush.bf16.msrb.mxu3 %v5952_v63  ;;  %v5585_v63 = vld [vmem:[#allocation14 + $0x1d8] sm:$0xf0] }
 0x46c   :  { %3509 = vmatpush.bf16.msra.mxu2 %v6336_v39  ;;  %3499 = vmatpush.bf16.msra.mxu1 %v6160_v3  ;;  %v6898_v39 = vld [vmem:[#allocation14 + $0xec] sm:$0xf]  ;;  %v5588_v22 = vor.u32 %v6926_v16, %v5585_v63  ;;  %v6256_v3 = vor.u32 %v7096_v13, %v6255_v11  ;;  %v5409_v11 = vld [vmem:[#allocation14 + $0x78] sm:$0xf0] }
 0x46d   :  { %v5476_v52 = vor.u32 %v6898_v39, %v5473_v36  ;;  %v6942_v39 = vld [vmem:[#allocation14 + $0x24c] sm:$0xf]  ;;  %v5649_v36 = vld [vmem:[#allocation14 + $0x258] sm:$0xf0] }
 0x46e   :  { %3487 = vmatpush.bf16.msra.mxu0 %v6016_v34  ;;  %v5700_v34 = vor.u32 %v6954_v19, %v5697_v27  ;;  %v5652_v5 = vor.u32 %v6942_v39, %v5649_v36  ;;  %v5505_v19 = vld [vmem:[#allocation14 + $0x138] sm:$0xf0]  ;;  %v6938_v27 = vld [vmem:[#allocation14 + $0x22c] sm:$0xf] }
 0x46f   :  { %3471 = vmatpush.bf16.msrb.mxu3 %v5936_v29  ;;  %v5872_v29 = vor.u32 %v7000_v1, %v5871_v8  ;;  %v6910_v8 = vld [vmem:[#allocation14 + $0x14c] sm:$0xf]  ;;  %v5428_v1 = vor.u32 %v6886_v38, %v5425_v26  ;;  %v5761_v26 = vld [vmem:[#allocation14 + $0x338] sm:$0xf0] }
 0x470   :  { %3510 = vmatpush.bf16.msra.mxu2 %v6320_v40  ;;  %3500 = vmatpush.bf16.msra.mxu1 %v6144_v43  ;;  %v5569_v40 = vld [vmem:[#allocation14 + $0x1b8] sm:$0xf0]  ;;  %v6970_v38 = vld [vmem:[#allocation14 + $0x32c] sm:$0xf] }
 0x471   :  { %v8529_v59 = vpop.f32.mrf.mxu0  ;;  %v5572_v20 = vor.u32 %v6922_v6, %v5569_v40  ;;  %v5681_v43 = vld [vmem:[#allocation14 + $0x298] sm:$0xf0]  ;;  %v5764_v39 = vor.u32 %v6970_v38, %v5761_v26 }
 0x472   :  { %3488 = vmatpush.bf16.msra.mxu0 %v6000_v0  ;;  %v8532_v47 = vpop.f32.mrf.mxu1  ;;  %v5684_v60 = vor.u32 %v6950_v2, %v5681_v43  ;;  %v6914_v0 = vld [vmem:[#allocation14 + $0x16c] sm:$0xf]  ;;  %v5793_v6 = vld [vmem:[#allocation14 + $0x378] sm:$0xf0] }
 0x473   :  { %3472 = vmatpush.bf16.msrb.mxu3 %v5920_v24  ;;  %v5457_v24 = vld [vmem:[#allocation14 + $0xd8] sm:$0xf0]  ;;  %v5540_v16 = vor.u32 %v6914_v0, %v5537_v56 }
 0x474   :  { %3511 = vmatpush.bf16.msra.mxu2 %v6304_v42  ;;  %3501 = vmatpush.bf16.msra.mxu1 %v6128_v17  ;;  %v6918_v42 = vld [vmem:[#allocation14 + $0x18c] sm:$0xf]  ;;  %v5460_v49 = vor.u32 %v6894_v41, %v5457_v24  ;;  %v5393_v24 = vld [vmem:[#allocation14 + $0x58] sm:$0xf0] }
 0x475   :  { %3489 = vmatmul.bf16.vlgmr.msra.gmra.mxu0 %v8501_v53  ;;  %v6878_v41 = vld [vmem:[#allocation14 + $0x4c] sm:$0xf]  ;;  %v5489_v2 = vld [vmem:[#allocation14 + $0x118] sm:$0xf0] }
 0x476   :  { %3533 = vmatpush.bf16.msrb.mxu0 %v5604_v37  ;;  %v5665_v37 = vld [vmem:[#allocation14 + $0x278] sm:$0xf0]  ;;  %v5396_v12 = vor.u32 %v6878_v41, %v5393_v24  ;;  %v7082_v24 = vld [vmem:[#allocation14 + $0x6ac] sm:$0xf] }
 0x477   :  { %3473 = vmatpush.bf16.msrb.mxu3 %v5904_v28  ;;  %3502 = vmatmul.bf16.vlgmr.msra.gmra.mxu1 %v8504_v50  ;;  %v5556_v28 = vor.u32 %v6918_v42, %v5553_v23  ;;  %v6902_v23 = vld [vmem:[#allocation14 + $0x10c] sm:$0xf]  ;;  %v6241_v0 = vld [vmem:[#allocation14 + $0x6f8] sm:$0xf0] }
 0x478   :  { %3512 = vmatpush.bf16.msra.mxu2 %v6288_v62  ;;  %3546 = vmatpush.bf16.msrb.mxu1 %v5732_v58  ;;  %v6946_v62 = vld [vmem:[#allocation14 + $0x26c] sm:$0xf]  ;;  %v5828_v58 = vor.u32 %v6986_v7, %v5825_v46  ;;  %v6113_v7 = vld [vmem:[#allocation14 + $0x5f8] sm:$0xf0] }
 0x479   :  { %v3232_v57 = vpop.f32.mrf.mxu0  ;;  %v5668_v63 = vor.u32 %v6946_v62, %v5665_v37  ;;  %v7090_v46 = vld [vmem:[#allocation14 + $0x6ec] sm:$0xf]  ;;  %v5377_v56 = vld [vmem:[#allocation14 + $0x38] sm:$0xf0]  ;;  %v5492_v37 = vor.u32 %v6902_v23, %v5489_v2 }
 0x47a   :  { %3534 = vmatpush.bf16.msrb.mxu0 %v5588_v22  ;;  %v3245_v17 = vpop.f32.mrf.mxu1  ;;  %v6882_v22 = vld [vmem:[#allocation14 + $0x6c] sm:$0xf]  ;;  %v5361_v36 = vld [vmem:[#allocation14 + $0x18] sm:$0xf0] }
 0x47b   :  { %3474 = vmatpush.bf16.msrb.mxu3 %v5888_v32  ;;  %v8539_v32 = vld [vmem:[%s8887_s11] sm:$0xf]  ;;  %v5412_v40 = vor.u32 %v6882_v22, %v5409_v11  ;;  %v6966_v22 = vld [vmem:[#allocation14 + $0x30c] sm:$0xf]  ;;  %v5745_v11 = vld [vmem:[#allocation14 + $0x318] sm:$0xf0] }
 0x47c   :  { %3513 = vmatpush.bf16.msra.mxu2 %v6272_v10  ;;  %3547 = vmatpush.bf16.msrb.mxu1 %v5716_v21  ;;  %v5521_v10 = vld [vmem:[#allocation14 + $0x158] sm:$0xf0]  ;;  %v1863_v13 = vperm.slane %v8539_v32, 0  ;;  %v5812_v21 = vor.u32 %v6982_v30, %v5809_v4 }
 0x47d   :  { %v6097_v4 = vld [vmem:[#allocation14 + $0x5d8] sm:$0xf0] }
 0x47e   :  { %3535 = vmatpush.bf16.msrb.mxu0 %v5572_v20  ;;  %v5796_v20 = vor.u32 %v6978_v33, %v5793_v6  ;;  %v7122_v6 = vld [vmem:[#allocation14 + $0x7ec] sm:$0xf]  ;;  %v6353_v23 = vld [vmem:[#allocation14 + $0x7d8] sm:$0xf0] }
 0x47f   :  { %3475 = vmatpush.bf16.msrb.mxu3 %v5872_v29  ;;  %v5524_v29 = vor.u32 %v6910_v8, %v5521_v10  ;;  %v7086_v8 = vld [vmem:[#allocation14 + $0x6cc] sm:$0xf]  ;;  %v6177_v38 = vld [vmem:[#allocation14 + $0x678] sm:$0xf0] }
 0x480   :  { %3514 = vmatpush.bf16.msra.mxu2 %v6256_v3  ;;  %3548 = vmatpush.bf16.msrb.mxu1 %v5700_v34  ;;  %v5633_v3 = vld [vmem:[#allocation14 + $0x238] sm:$0xf0]  ;;  %v6974_v34 = vld [vmem:[#allocation14 + $0x34c] sm:$0xf] }
 0x481   :  { %v5636_v42 = vor.u32 %v6938_v27, %v5633_v3  ;;  %v6081_v27 = vld [vmem:[#allocation14 + $0x5b8] sm:$0xf0]  ;;  %v5748_v3 = vor.u32 %v6966_v22, %v5745_v11  ;;  %v7010_v11 = vld [vmem:[#allocation14 + $0x46c] sm:$0xf] }
 0x482   :  { %3476 = vmatmul.bf16.vlgmr.msrb.gmra.mxu3 %v8509_v31  ;;  %3536 = vmatpush.bf16.msrb.mxu0 %v5556_v28  ;;  %v7058_v28 = vld [vmem:[#allocation14 + $0x5ec] sm:$0xf] }
 0x483   :  { %3520 = vmatpush.bf16.msra.mxu3 %v5476_v52  ;;  %3515 = vmatmul.bf16.vlgmr.msra.gmra.mxu2 %v8512_v15  ;;  %v6906_v52 = vld [vmem:[#allocation14 + $0x12c] sm:$0xf] }
 0x484   :  { %3559 = vmatpush.bf16.msrb.mxu2 %v5860_v51  ;;  %3549 = vmatpush.bf16.msrb.mxu1 %v5684_v60  ;;  %v5508_v44 = vor.u32 %v6906_v52, %v5505_v19  ;;  %v6369_v52 = vld [vmem:[#allocation14 + $0x7f8] sm:$0xf0]  ;;  %v7050_v19 = vld [vmem:[#allocation14 + $0x5ac] sm:$0xf] }
 0x485   :  { %v3217_v51 = vpop.f32.mrf.mxu3 }
 0x486   :  { %3537 = vmatpush.bf16.msrb.mxu0 %v5540_v16  ;;  %v3218_v55 = vadd.f32 %v3217_v51, %v1863_v13  ;;  %v3256_v43 = vpop.f32.mrf.mxu2  ;;  %v6244_v16 = vor.u32 %v7090_v46, %v6241_v0  ;;  %v7026_v13 = vld [vmem:[#allocation14 + $0x4ec] sm:$0xf]  ;;  %v6209_v51 = vld [vmem:[#allocation14 + $0x6b8] sm:$0xf0] }
 0x487   :  { %3521 = vmatpush.bf16.msra.mxu3 %v5460_v49  ;;  %v5777_v49 = vld [vmem:[#allocation14 + $0x358] sm:$0xf0]  ;;  %v6212_v2 = vor.u32 %v7082_v24, %v6209_v51  ;;  %v7114_v0 = vld [vmem:[#allocation14 + $0x7ac] sm:$0xf] }
 0x488   :  { %3560 = vmatpush.bf16.msrb.mxu2 %v5844_v54  ;;  %3550 = vmatpush.bf16.msrb.mxu1 %v5668_v63  ;;  %v5617_v54 = vld [vmem:[#allocation14 + $0x218] sm:$0xf0]  ;;  %v3231_v60 = vadd.f32 %v8529_v59, %v3218_v55  ;;  %v5780_v57 = vor.u32 %v6974_v34, %v5777_v49  ;;  %v7054_v63 = vld [vmem:[#allocation14 + $0x5cc] sm:$0xf] }
 0x489   :  { %v5620_v17 = vor.u32 %v6934_v25, %v5617_v54  ;;  %v7022_v34 = vld [vmem:[#allocation14 + $0x4cc] sm:$0xf]  ;;  %v5969_v55 = vld [vmem:[#allocation14 + $0x4d8] sm:$0xf0] }
 0x48a   :  { %3538 = vmatpush.bf16.msrb.mxu0 %v5524_v29  ;;  %v3244_v62 = vadd.f32 %v8532_v47, %v3231_v60  ;;  %v6870_v47 = vld [vmem:[#allocation14 + $0xc] sm:$0xf]  ;;  %v5972_v25 = vor.u32 %v7022_v34, %v5969_v55  ;;  %v6193_v54 = vld [vmem:[#allocation14 + $0x698] sm:$0xf0] }
 0x48b   :  { %3522 = vmatpush.bf16.msra.mxu3 %v5444_v9  ;;  %v6874_v9 = vld [vmem:[#allocation14 + $0x2c] sm:$0xf]  ;;  %v6145_v24 = vld [vmem:[#allocation14 + $0x638] sm:$0xf0] }
 0x48c   :  { %3561 = vmatpush.bf16.msrb.mxu2 %v5828_v58  ;;  %3551 = vmatpush.bf16.msrb.mxu1 %v5652_v5  ;;  %v6116_v58 = vor.u32 %v7058_v28, %v6113_v7  ;;  %v8544_v59 = vadd.f32 %v3256_v43, %v3244_v62  ;;  %v5380_v30 = vor.u32 %v6874_v9, %v5377_v56  ;;  %v7118_v49 = vld [vmem:[#allocation14 + $0x7cc] sm:$0xf]  ;;  %v5953_v7 = vld [vmem:[#allocation14 + $0x4b8] sm:$0xf0] }
 0x48d   :  { %v3219_v10 = vpop.f32.mrf.mxu3  ;;  %v6100_v5 = vor.u32 %v7054_v63, %v6097_v4  ;;  %v6356_v28 = vor.u32 %v7118_v49, %v6353_v23  ;;  %v7018_v60 = vld [vmem:[#allocation14 + $0x4ac] sm:$0xf]  ;;  %v6049_v62 = vld [vmem:[#allocation14 + $0x578] sm:$0xf0] }
 0x48e   :  { %3539 = vmatpush.bf16.msrb.mxu0 %v5508_v44  ;;  %v3258_v29 = vpop.f32.mrf.mxu2  ;;  %v6084_v44 = vor.u32 %v7050_v19, %v6081_v27  ;;  %v7042_v56 = vld [vmem:[#allocation14 + $0x56c] sm:$0xf]  ;;  %v6321_v4 = vld [vmem:[#allocation14 + $0x798] sm:$0xf0] }
 0x48f   :  { %3523 = vmatpush.bf16.msra.mxu3 %v5428_v1  ;;  %v6225_v1 = vld [vmem:[#allocation14 + $0x6d8] sm:$0xf0]  ;;  %v7106_v29 = vld [vmem:[#allocation14 + $0x76c] sm:$0xf] }
 0x490   :  { %3562 = vmatpush.bf16.msrb.mxu2 %v5812_v21  ;;  %3552 = vmatpush.bf16.msrb.mxu1 %v5636_v42  ;;  %v5985_v21 = vld [vmem:[#allocation14 + $0x4f8] sm:$0xf0]  ;;  %v6228_v33 = vor.u32 %v7086_v8, %v6225_v1  ;;  %v7038_v1 = vld [vmem:[#allocation14 + $0x54c] sm:$0xf] }
 0x491   :  { %v5988_v41 = vor.u32 %v7026_v13, %v5985_v21  ;;  %v6033_v10 = vld [vmem:[#allocation14 + $0x558] sm:$0xf0]  ;;  %v7102_v23 = vld [vmem:[#allocation14 + $0x74c] sm:$0xf] }
 0x492   :  { %3540 = vmatpush.bf16.msrb.mxu0 %v5492_v37  ;;  %v8548_v42 = vpop.f32.mrf.mxu0  ;;  %v8550_v43 = vpop.f32.mrf.mxu1  ;;  %v5956_v37 = vor.u32 %v7018_v60, %v5953_v7  ;;  %v5921_v13 = vld [vmem:[#allocation14 + $0x478] sm:$0xf0]  ;;  %v6036_v21 = vor.u32 %v7038_v1, %v6033_v10  ;;  %v7002_v7 = vld [vmem:[#allocation14 + $0x42c] sm:$0xf] }
 0x493   :  { %3524 = vmatpush.bf16.msra.mxu3 %v5412_v40  ;;  %v5364_v40 = vor.u32 %v6870_v47, %v5361_v36  ;;  %v7070_v47 = vld [vmem:[#allocation14 + $0x64c] sm:$0xf]  ;;  %v6161_v36 = vld [vmem:[#allocation14 + $0x658] sm:$0xf0] }
 0x494   :  { %3563 = vmatpush.bf16.msrb.mxu2 %v5796_v20  ;;  %3553 = vmatpush.bf16.msrb.mxu1 %v5620_v17  ;;  %v6372_v20 = vor.u32 %v7122_v6, %v6369_v52  ;;  %v7074_v17 = vld [vmem:[#allocation14 + $0x66c] sm:$0xf]  ;;  %v5905_v34 = vld [vmem:[#allocation14 + $0x458] sm:$0xf0] }
 0x495   :  { %3541 = vmatmul.bf16.vlgmr.msrb.gmra.mxu0 %v8448_v61  ;;  %v7046_v61 = vld [vmem:[#allocation14 + $0x58c] sm:$0xf]  ;;  %v6180_v8 = vor.u32 %v7074_v17, %v6177_v38  ;;  %v6273_v38 = vld [vmem:[#allocation14 + $0x738] sm:$0xf0] }
 0x496   :  { %3585 = vmatpush.bf16.msra.mxu0 %v6116_v58  ;;  %v7014_v58 = vld [vmem:[#allocation14 + $0x48c] sm:$0xf] }
 0x497   :  { %3525 = vmatpush.bf16.msra.mxu3 %v5396_v12  ;;  %3554 = vmatmul.bf16.vlgmr.msrb.gmra.mxu1 %v8452_v45  ;;  %v6065_v12 = vld [vmem:[#allocation14 + $0x598] sm:$0xf0]  ;;  %v7078_v45 = vld [vmem:[#allocation14 + $0x68c] sm:$0xf] }
 0x498   :  { %3564 = vmatpush.bf16.msrb.mxu2 %v5780_v57  ;;  %3598 = vmatpush.bf16.msra.mxu1 %v6244_v16  ;;  %v6068_v46 = vor.u32 %v7046_v61, %v6065_v12  ;;  %v6337_v57 = vld [vmem:[#allocation14 + $0x7b8] sm:$0xf0]  ;;  %v6196_v9 = vor.u32 %v7078_v45, %v6193_v54  ;;  %v7034_v52 = vld [vmem:[#allocation14 + $0x52c] sm:$0xf] }
 0x499   :  { %v6340_v26 = vor.u32 %v7114_v0, %v6337_v57  ;;  %v5937_v16 = vld [vmem:[#allocation14 + $0x498] sm:$0xf0]  ;;  %v7030_v61 = vld [vmem:[#allocation14 + $0x50c] sm:$0xf] }
 0x49a   :  { %3586 = vmatpush.bf16.msra.mxu0 %v6100_v5  ;;  %v3284_v63 = vpop.f32.mrf.mxu0  ;;  %v6305_v5 = vld [vmem:[#allocation14 + $0x778] sm:$0xf0]  ;;  %v7062_v45 = vld [vmem:[#allocation14 + $0x60c] sm:$0xf] }
 0x49b   :  { %3526 = vmatpush.bf16.msra.mxu3 %v5380_v30  ;;  %v7110_v30 = vld [vmem:[#allocation14 + $0x78c] sm:$0xf]  ;;  %v6308_v51 = vor.u32 %v7106_v29, %v6305_v5  ;;  %v6129_v54 = vld [vmem:[#allocation14 + $0x618] sm:$0xf0] }
 0x49c   :  { %3565 = vmatpush.bf16.msrb.mxu2 %v5764_v39  ;;  %3599 = vmatpush.bf16.msra.mxu1 %v6228_v33  ;;  %v5940_v39 = vor.u32 %v7014_v58, %v5937_v16  ;;  %v6324_v22 = vor.u32 %v7110_v30, %v6321_v4  ;;  %v6164_v33 = vor.u32 %v7070_v47, %v6161_v36  ;;  %v3269_v6 = vpop.f32.mrf.mxu3  ;;  %v3308_v27 = vpop.f32.mrf.mxu2  ;;  %v5889_v57 = vld [vmem:[#allocation14 + $0x438] sm:$0xf0]  ;;  %v7098_v17 = vld [vmem:[#allocation14 + $0x72c] sm:$0xf]  ;;  %v7136_v47 = vld [vmem:[#allocation13 + $0x54] sm:$0xf0] }
 0x49d   :  { %v3270_v19 = vadd.f32 %v3269_v6, %v8544_v59  ;;  %v6998_v16 = vld [vmem:[#allocation14 + $0x40c] sm:$0xf]  ;;  %v5892_v63 = vor.u32 %v7002_v7, %v5889_v57  ;;  %v5873_v4 = vld [vmem:[#allocation14 + $0x418] sm:$0xf0]  ;;  %v6276_v1 = vor.u32 %v7098_v17, %v6273_v38 }
 0x49e   :  { %3587 = vmatpush.bf16.msra.mxu0 %v6084_v44  ;;  %v7094_v10 = vld [vmem:[#allocation14 + $0x70c] sm:$0xf]  ;;  %v5876_v6 = vor.u32 %v6998_v16, %v5873_v4  ;;  %v6375_v16 = vld [vmem:[#allocation13] sm:$0xf] }
 0x49f   :  { %3527 = vmatpush.bf16.msra.mxu3 %v5364_v40  ;;  %v6017_v40 = vld [vmem:[#allocation14 + $0x538] sm:$0xf0]  ;;  %v3283_v55 = vadd.f32 %v8548_v42, %v3270_v19  ;;  %v6425_v42 = vld [vmem:[#allocation13 + $0x70] sm:$0xf0]  ;;  %v7138_v5 = vld [vmem:[#allocation13 + $0x6c] sm:$0xf] }
 0x4a0   :  { %3566 = vmatpush.bf16.msrb.mxu2 %v5748_v3  ;;  %3600 = vmatpush.bf16.msra.mxu1 %v6212_v2  ;;  %v5924_v3 = vor.u32 %v7010_v11, %v5921_v13  ;;  %v6020_v44 = vor.u32 %v7034_v52, %v6017_v40  ;;  %v6289_v2 = vld [vmem:[#allocation14 + $0x758] sm:$0xf0]  ;;  %v6423_v11 = vld [vmem:[#allocation13 + $0x60] sm:$0xf]  ;;  %v7139_v13 = vld [vmem:[#allocation13 + $0x6c] sm:$0xf0] }
 0x4a1   :  { %v6292_v0 = vor.u32 %v7102_v23, %v6289_v2  ;;  %v1864_v40 = vperm.slane %v8539_v32, 1  ;;  %v7129_v19 = vld [vmem:[#allocation13 + $0x24] sm:$0xf]  ;;  %v7134_v2 = vld [vmem:[#allocation13 + $0x4c] sm:$0xf] }
 0x4a2   :  { %3528 = vmatmul.bf16.vlgmr.msra.gmra.mxu3 %v8479_v48  ;;  %3588 = vmatpush.bf16.msra.mxu0 %v6068_v46  ;;  %v6052_v48 = vor.u32 %v7042_v56, %v6049_v62  ;;  %v8556_v49 = vpop.f32.mrf.mxu0  ;;  %v7137_v46 = vld [vmem:[#allocation13 + $0x64] sm:$0xf]  ;;  %v7140_v56 = vld [vmem:[#allocation13 + $0x74] sm:$0xf0] }
 0x4a3   :  { %3572 = vmatpush.bf16.msrb.mxu3 %v5988_v41  ;;  %3567 = vmatmul.bf16.vlgmr.msrb.gmra.mxu2 %v8489_v18  ;;  %v3297_v18 = vpop.f32.mrf.mxu1  ;;  %v7066_v41 = vld [vmem:[#allocation14 + $0x62c] sm:$0xf] }
 0x4a4   :  { %3611 = vmatpush.bf16.msra.mxu2 %v6372_v20  ;;  %3601 = vmatpush.bf16.msra.mxu1 %v6196_v9  ;;  %v7006_v20 = vld [vmem:[#allocation14 + $0x44c] sm:$0xf]  ;;  %v6148_v12 = vor.u32 %v7066_v41, %v6145_v24  ;;  %v6431_v9 = vld [vmem:[#allocation13 + $0x68] sm:$0xf]  ;;  %v3271_v58 = vpop.f32.mrf.mxu3  ;;  %v6409_v18 = vld [vmem:[#allocation13 + $0x50] sm:$0xf0]  ;;  %v6424_v41 = vor.u32 %v7139_v13, %v6423_v11 }
 0x4a5   :  { %v5908_v60 = vor.u32 %v7006_v20, %v5905_v34  ;;  %v6432_v30 = vor.u32 %v7140_v56, %v6431_v9  ;;  %v6399_v24 = vld [vmem:[#allocation13 + $0x28] sm:$0xf]  ;;  %v6407_v34 = vld [vmem:[#allocation13 + $0x40] sm:$0xf]  ;;  %v7130_v56 = vld [vmem:[#allocation13 + $0x2c] sm:$0xf] }
 0x4a6   :  { %3589 = vmatpush.bf16.msra.mxu0 %v6052_v48  ;;  %v3310_v48 = vpop.f32.mrf.mxu2 }
 0x4a7   :  { %3573 = vmatpush.bf16.msrb.mxu3 %v5972_v25  ;;  %v6001_v25 = vld [vmem:[#allocation14 + $0x518] sm:$0xf0]  ;;  %v7127_v48 = vld [vmem:[#allocation13 + $0xc] sm:$0xf0] }
 0x4a8   :  { %3612 = vmatpush.bf16.msra.mxu2 %v6356_v28  ;;  %3602 = vmatpush.bf16.msra.mxu1 %v6180_v8  ;;  %v3296_v28 = vadd.f32 %v8550_v43, %v3283_v55  ;;  %v6428_v43 = vor.u32 %v7137_v46, %v6425_v42  ;;  %v7133_v8 = vld [vmem:[#allocation13 + $0x44] sm:$0xf]  ;;  %v7135_v55 = vld [vmem:[#allocation13 + $0x4c] sm:$0xf0]  ;;  %v6391_v42 = vld [vmem:[#allocation13 + $0x20] sm:$0xf] }
 0x4a9   :  { %v6412_v29 = vor.u32 %v7133_v8, %v6409_v18 }
 0x4aa   :  { %3590 = vmatpush.bf16.msra.mxu0 %v6036_v21  ;;  %v8561_v62 = vadd.f32 %v3308_v27, %v3296_v28  ;;  %v3336_v36 = vpop.f32.mrf.mxu0  ;;  %v6393_v27 = vld [vmem:[#allocation13 + $0x30] sm:$0xf0]  ;;  %v6408_v28 = vor.u32 %v7135_v55, %v6407_v34 }
 0x4ab   :  { %3574 = vmatpush.bf16.msrb.mxu3 %v5956_v37  ;;  %v8558_v59 = vpop.f32.mrf.mxu1  ;;  %v6004_v37 = vor.u32 %v7030_v61, %v6001_v25  ;;  %v6396_v23 = vor.u32 %v7129_v19, %v6393_v27  ;;  %v6417_v61 = vld [vmem:[#allocation13 + $0x58] sm:$0xf0]  ;;  %v1865_v19 = vperm.slane %v8539_v32, 2 }
 0x4ac   :  { %3613 = vmatpush.bf16.msra.mxu2 %v6340_v26  ;;  %3603 = vmatpush.bf16.msra.mxu1 %v6164_v33  ;;  %v6132_v26 = vor.u32 %v7062_v45, %v6129_v54  ;;  %v6433_v33 = vld [vmem:[#allocation13 + $0x78] sm:$0xf0]  ;;  %v7125_v45 = vld [vmem:[#allocation13 + $0x4] sm:$0xf]  ;;  %v6420_v46 = vor.u32 %v7134_v2, %v6417_v61 }
 0x4ad   :  { %v6436_v20 = vor.u32 %v7138_v5, %v6433_v33  ;;  %v8913_v33 = vld [vmem:[#allocation28_spill] sm:$0xff] }
 0x4ae   :  { %3591 = vmatpush.bf16.msra.mxu0 %v6020_v44  ;;  %v3321_v44 = vpop.f32.mrf.mxu3  ;;  %v3360_v54 = vpop.f32.mrf.mxu2 }
 0x4af   :  { %3575 = vmatpush.bf16.msrb.mxu3 %v5940_v39  ;;  %v6415_v39 = vld [vmem:[#allocation13 + $0x48] sm:$0xf] }
 0x4b0   :  { %3614 = vmatpush.bf16.msra.mxu2 %v6324_v22  ;;  %3604 = vmatpush.bf16.msra.mxu1 %v6148_v12  ;;  %v6257_v22 = vld [vmem:[#allocation14 + $0x718] sm:$0xf0]  ;;  %v6416_v52 = vor.u32 %v7136_v47, %v6415_v39  ;;  %v3322_v12 = vadd.f32 %v3321_v44, %v1864_v40 }
 0x4b2   :  { %3592 = vmatpush.bf16.msra.mxu0 %v6004_v37  ;;  %v3335_v7 = vadd.f32 %v8556_v49, %v3322_v12  ;;  %v3386_v57 = vpop.f32.mrf.mxu0  ;;  %v6401_v37 = vld [vmem:[#allocation13 + $0x38] sm:$0xf0] }
 0x4b3   :  { %3576 = vmatpush.bf16.msrb.mxu3 %v5924_v3  ;;  %v3349_v21 = vpop.f32.mrf.mxu1  ;;  %v6260_v3 = vor.u32 %v7094_v10, %v6257_v22 }
 0x4b4   :  { %3615 = vmatpush.bf16.msra.mxu2 %v6308_v51  ;;  %3605 = vmatpush.bf16.msra.mxu1 %v6132_v26  ;;  %v7132_v51 = vld [vmem:[#allocation13 + $0x34] sm:$0xf0]  ;;  %v3348_v17 = vadd.f32 %v8558_v59, %v3335_v7  ;;  %v6376_v59 = vor.u32 %v7127_v48, %v6375_v16 }
 0x4b5   :  { %3593 = vmatmul.bf16.vlgmr.msra.gmra.mxu0 %v8501_v53  ;;  %v6400_v25 = vor.u32 %v7132_v51, %v6399_v24  ;;  %v6377_v53 = vld [vmem:[#allocation13 + $0x10] sm:$0xf0] }
 0x4b6   :  { %3743 = vmatpush.bf16.msrb.mxu0 %v6428_v43  ;;  %v6380_v9 = vor.u32 %v7125_v45, %v6377_v53  ;;  %v3361_v58 = vadd.f32 %v3360_v54, %v3348_v17  ;;  %v6404_v43 = vor.u32 %v7130_v56, %v6401_v37  ;;  %v3362_v4 = vpop.f32.mrf.mxu2  ;;  %v1866_v37 = vperm.slane %v8539_v32, 3 }
 0x4b7   :  { %3577 = vmatpush.bf16.msrb.mxu3 %v5908_v60  ;;  %3606 = vmatmul.bf16.vlgmr.msra.gmra.mxu1 %v8504_v50  ;;  %v6383_v60 = vld [vmem:[#allocation13 + $0x8] sm:$0xf]  ;;  %v7128_v50 = vld [vmem:[#allocation13 + $0x14] sm:$0xf0] }
 0x4b8   :  { %3616 = vmatpush.bf16.msra.mxu2 %v6292_v0  ;;  %3762 = vmatpush.bf16.msrb.mxu1 %v6432_v30  ;;  %v7131_v0 = vld [vmem:[#allocation13 + $0x2c] sm:$0xf0]  ;;  %v6384_v26 = vor.u32 %v7128_v50, %v6383_v60  ;;  %v6385_v30 = vld [vmem:[#allocation13 + $0x18] sm:$0xf0] }
 0x4b9   :  { %v6392_v49 = vor.u32 %v7131_v0, %v6391_v42 }
 0x4ba   :  { %3744 = vmatpush.bf16.msrb.mxu0 %v6412_v29  ;;  %v3388_v8 = vpop.f32.mrf.mxu0 }
 0x4bb   :  { %3578 = vmatpush.bf16.msrb.mxu3 %v5892_v63  ;;  %v3399_v38 = vpop.f32.mrf.mxu1  ;;  %v7126_v63 = vld [vmem:[#allocation13 + $0xc] sm:$0xf] }
 0x4bc   :  { %3617 = vmatpush.bf16.msra.mxu2 %v6276_v1  ;;  %3763 = vmatpush.bf16.msrb.mxu1 %v6416_v52 }
 0x4be   :  { %3745 = vmatpush.bf16.msrb.mxu0 %v6396_v23 }
 0x4bf   :  { %3579 = vmatpush.bf16.msrb.mxu3 %v5876_v6 }
 0x4c0   :  { %3618 = vmatpush.bf16.msra.mxu2 %v6260_v3  ;;  %3764 = vmatpush.bf16.msrb.mxu1 %v6400_v25 }
 0x4c2   :  { %3580 = vmatmul.bf16.vlgmr.msrb.gmra.mxu3 %v8509_v31  ;;  %3746 = vmatpush.bf16.msrb.mxu0 %v6380_v9  ;;  %v3323_v31 = vpop.f32.mrf.mxu3 }
 0x4c3   :  { %3724 = vmatpush.bf16.msra.mxu3 %v6424_v41  ;;  %3619 = vmatmul.bf16.vlgmr.msra.gmra.mxu2 %v8512_v15  ;;  %v6388_v15 = vor.u32 %v7126_v63, %v6385_v30  ;;  %v3401_v18 = vpop.f32.mrf.mxu1 }
 0x4c4   :  { %3781 = vmatpush.bf16.msrb.mxu2 %v6436_v20  ;;  %3765 = vmatpush.bf16.msrb.mxu1 %v6384_v26 }
 0x4c5   :  { %6439 = vmatmul.msk.bf16.vlgmr.msrb.gmra.mxu0 %vm265_vm2, %v7821_v14 }
 0x4c6   :  { %v3412_v39 = vpop.f32.mrf.mxu2 }
 0x4c7   :  { %3725 = vmatpush.bf16.msra.mxu3 %v6408_v28  ;;  %6441 = vmatmul.msk.bf16.vlgmr.msrb.gmra.mxu1 %vm265_vm2, %v7821_v14 }
 0x4c8   :  { %3782 = vmatpush.bf16.msrb.mxu2 %v6420_v46 }
 0x4ca   :  { %v3373_v1 = vpop.f32.mrf.mxu3 }
 0x4cb   :  { %3726 = vmatpush.bf16.msra.mxu3 %v6392_v49  ;;  %v3374_v10 = vadd.f32 %v3373_v1, %v3361_v58 }
 0x4cc   :  { %3783 = vmatpush.bf16.msrb.mxu2 %v6404_v43 }
 0x4cd   :  { %v3387_v47 = vadd.f32 %v3386_v57, %v3374_v10 }
 0x4ce   :  { %v3414_v21 = vpop.f32.mrf.mxu2 }
 0x4cf   :  { %3727 = vmatpush.bf16.msra.mxu3 %v6376_v59  ;;  %v3400_v36 = vadd.f32 %v3399_v38, %v3387_v47 }
 0x4d0   :  { %3784 = vmatpush.bf16.msrb.mxu2 %v6388_v15 }
 0x4d1   :  { %v3413_v22 = vadd.f32 %v3412_v39, %v3400_v36 }
 0x4d2   :  { %6437 = vmatmul.msk.bf16.vlgmr.msra.gmra.mxu3 %vm265_vm2, %v7821_v14  ;;  %v3375_v11 = vpop.f32.mrf.mxu3 }
 0x4d3   :  { %6443 = vmatmul.msk.bf16.vlgmr.msrb.gmra.mxu2 %vm265_vm2, %v7821_v14  ;;  %v3800_v13 = vrot.slane %v3413_v22, 7  ;;  %v3438_v14 = vpop.f32.mrf.mxu0 }
 0x4d4   :  { %v3451_v6 = vpop.f32.mrf.mxu1 }
 0x4d5   :  { %v8579_v29 = vsel %vm3803_vm10, %v8561_v62, %v3800_v13  ;;  %v8583_v5 = vsel %vm1903_vm6, %v8561_v62, %v3800_v13  ;;  %6440 = vmatmul.msk.bf16.gmra.mxu0 %vm265_vm2, %v8913_v33 }
 0x4d7   :  { %6442 = vmatmul.msk.bf16.gmra.mxu1 %vm265_vm2, %v8913_v33 }
 0x4db   :  { %v3440_v52 = vpop.f32.mrf.mxu0 }
 0x4dc   :  { %v3453_v40 = vpop.f32.mrf.mxu1 }
 0x4e2   :  { %6438 = vmatmul.msk.bf16.gmra.mxu3 %vm265_vm2, %v8913_v33 }
 0x4e3   :  { %6444 = vmatmul.msk.bf16.gmra.mxu2 %vm265_vm2, %v8913_v33  ;;  %vm3805_vm2 = vcmask 1042434  }
 0x4e5   :  { %v3425_v62 = vpop.f32.mrf.mxu3 }
 0x4e6   :  { %v3426_v27 = vadd.f32 %v3425_v62, %v1865_v19  ;;  %v3464_v3 = vpop.f32.mrf.mxu2 }
 0x4e8   :  { %v3439_v41 = vadd.f32 %v3438_v14, %v3426_v27 }
 0x4ea   :  { %v3452_v24 = vadd.f32 %v3451_v6, %v3439_v41 }
 0x4ec   :  { %v3465_v51 = vadd.f32 %v3464_v3, %v3452_v24 }
 0x4ed   :  { %v3427_v20 = vpop.f32.mrf.mxu3 }
 0x4ee   :  { %v3466_v34 = vpop.f32.mrf.mxu2 }
 0x4f2   :  { %v3490_v55 = vpop.f32.mrf.mxu0 }
 0x4f4   :  { %v3503_v44 = vpop.f32.mrf.mxu1 }
 0x4fa   :  { %v3492_v23 = vpop.f32.mrf.mxu0 }
 0x4fc   :  { %v3505_v2 = vpop.f32.mrf.mxu1 }
 0x505   :  { %v3477_v61 = vpop.f32.mrf.mxu3 }
 0x506   :  { %v3478_v12 = vadd.f32 %v3477_v61, %v3465_v51  ;;  %v3516_v25 = vpop.f32.mrf.mxu2 }
 0x508   :  { %v3491_v45 = vadd.f32 %v3490_v55, %v3478_v12 }
 0x50a   :  { %v3504_v53 = vadd.f32 %v3503_v44, %v3491_v45 }
 0x50c   :  { %v3517_v54 = vadd.f32 %v3516_v25, %v3504_v53 }
 0x50d   :  { %v3479_v28 = vpop.f32.mrf.mxu3 }
 0x50e   :  { %v3518_v60 = vpop.f32.mrf.mxu2  ;;  %v3801_v32 = vrot.slane %v3517_v54, 6 }
 0x512   :  { %v3542_v50 = vpop.f32.mrf.mxu0 }
 0x514   :  { %v3555_v7 = vpop.f32.mrf.mxu1 }
 0x51a   :  { %v3544_v46 = vpop.f32.mrf.mxu0 }
 0x51c   :  { %v3557_v42 = vpop.f32.mrf.mxu1 }
 0x525   :  { %v3529_v0 = vpop.f32.mrf.mxu3 }
 0x526   :  { %v3568_v57 = vpop.f32.mrf.mxu2  ;;  %v3530_v17 = vadd.f32 %v3529_v0, %v1866_v37 }
 0x528   :  { %v3543_v49 = vadd.f32 %v3542_v50, %v3530_v17 }
 0x52a   :  { %v3556_v58 = vadd.f32 %v3555_v7, %v3543_v49 }
 0x52c   :  { %v3569_v48 = vadd.f32 %v3568_v57, %v3556_v58 }
 0x52d   :  { %v3531_v9 = vpop.f32.mrf.mxu3 }
 0x52e   :  { %v3570_v56 = vpop.f32.mrf.mxu2 }
 0x532   :  { %v3594_v38 = vpop.f32.mrf.mxu0 }
 0x534   :  { %v3607_v26 = vpop.f32.mrf.mxu1 }
 0x53a   :  { %v3596_v43 = vpop.f32.mrf.mxu0 }
 0x53c   :  { %v3609_v16 = vpop.f32.mrf.mxu1 }
 0x542   :  { %v3748_v59 = vpop.f32.mrf.mxu0 }
 0x544   :  { %v3767_v8 = vpop.f32.mrf.mxu1 }
 0x545   :  { %v3581_v31 = vpop.f32.mrf.mxu3 }
 0x546   :  { %v3582_v63 = vadd.f32 %v3581_v31, %v3569_v48  ;;  %v3620_v30 = vpop.f32.mrf.mxu2 }
 0x548   :  { %v3595_v4 = vadd.f32 %v3594_v38, %v3582_v63 }
 0x54a   :  { %v3608_v15 = vadd.f32 %v3607_v26, %v3595_v4  ;;  %v3750_v13 = vpop.f32.mrf.mxu0  ;;  %v6567_v4 = vld [vmem:[#allocation16 + $0xf0] sm:$0xf] }
 0x54c   :  { %v3621_v18 = vadd.f32 %v3620_v30, %v3608_v15  ;;  %v3769_v33 = vpop.f32.mrf.mxu1 }
 0x54d   :  { %v3583_v1 = vpop.f32.mrf.mxu3 }
 0x54e   :  { %v3802_v10 = vrot.slane %v3621_v18, 5  ;;  %v3622_v39 = vpop.f32.mrf.mxu2  ;;  %v6631_v18 = vld [vmem:[#allocation16 + $0x170] sm:$0xf]  ;;  %v7188_v1 = vld [vmem:[#allocation16 + $0x174] sm:$0xf0] }
 0x550   :  { %v3806_v47 = vsel %vm3805_vm2, %v3801_v32, %v3802_v10  ;;  %v3810_v36 = vsel %vm3809_vm11, %v3801_v32, %v3802_v10  ;;  %v6632_v10 = vor.u32 %v7188_v1, %v6631_v18 }
 0x551   :  { %v3812_v22 = vsel %vm3811_vm12, %v8583_v5, %v3810_v36  ;;  %v3807_v11 = vsel %vm242_vm0, %v8579_v29, %v3806_v47 }
 0x552   :  { %v3815_v21 = vperm.slane %v3807_v11, 1  ;;  %v3816_v14 = vperm.slane %v3807_v11, 2  ;;  %v8598_v6 = vrot.slane %v3812_v22, 1  ;;  %v3753_v41 = vpop.f32.mrf.mxu0  ;;  %v3814_v12 = vperm.slane %v3807_v11, 0  ;;  %4466 = vmatpush.bf16.msra.mxu1 %v6632_v10 }
 0x553   :  { %v3817_v25 = vperm.slane %v3807_v11, 3 }
 0x554   :  { %v8600_v40 = vadd.f32 %v3815_v21, %v3748_v59  ;;  %v8602_v19 = vadd.f32 %v3815_v21, %v3750_v13  ;;  %v8604_v27 = vadd.f32 %v3816_v14, %v3767_v8  ;;  %v8606_v3 = vadd.f32 %v3816_v14, %v3769_v33  ;;  %v3772_v20 = vpop.f32.mrf.mxu1  ;;  %v7172_v59 = vld [vmem:[#allocation16 + $0xf4] sm:$0xf0]  ;;  %v6559_v13 = vld [vmem:[#allocation16 + $0xe0] sm:$0xf]  ;;  %v7170_v21 = vld [vmem:[#allocation16 + $0xe4] sm:$0xf0] }
 0x555   :  { %v3729_v52 = vpop.f32.mrf.mxu3  ;;  %v3819_v5 = vperm.slane %v8598_v6, 1  ;;  %v3820_v29 = vperm.slane %v8598_v6, 2  ;;  %v3818_v42 = vperm.slane %v8598_v6, 0  ;;  %v3821_v56 = vperm.slane %v8598_v6, 3 }
 0x556   :  { %v3786_v62 = vpop.f32.mrf.mxu2  ;;  %v3855_v24 = vadd.f32 %v8602_v19, %v8600_v40  ;;  %v3864_v34 = vadd.f32 %v8606_v3, %v8604_v27  ;;  %v8626_v7 = vadd.f32 %v3814_v12, %v3729_v52  ;;  %v6568_v8 = vor.u32 %v7172_v59, %v6567_v4  ;;  %v6623_v52 = vld [vmem:[#allocation16 + $0x160] sm:$0xf] }
 0x557   :  { %v8612_v51 = vadd.f32 %v3819_v5, %v3753_v41  ;;  %v8616_v55 = vadd.f32 %v3820_v29, %v3772_v20  ;;  %v8629_v0 = vadd.f32 %v3817_v25, %v3786_v62  ;;  %v6560_v6 = vor.u32 %v7170_v21, %v6559_v13  ;;  %v7186_v62 = vld [vmem:[#allocation16 + $0x164] sm:$0xf0]  ;;  %v6495_v13 = vld [vmem:[#allocation16 + $0x60] sm:$0xf] }
 0x558   :  { %4447 = vmatpush.bf16.msra.mxu0 %v6568_v8  ;;  %v7204_v8 = vld [vmem:[#allocation16 + $0x1f4] sm:$0xf0]  ;;  %v7154_v21 = vld [vmem:[#allocation16 + $0x64] sm:$0xf0] }
 0x559   :  { %v3856_v44 = vadd.f32 %v3855_v24, %v8612_v51  ;;  %v3865_v23 = vadd.f32 %v3864_v34, %v8616_v55 }
 0x55a   :  { %v3755_v45 = vpop.f32.mrf.mxu0 }
 0x55b   :  { %v3843_v54 = vadd.f32 %v3819_v5, %v3755_v45 }
 0x55c   :  { %v3774_v28 = vpop.f32.mrf.mxu1  ;;  %4448 = vmatpush.bf16.msra.mxu0 %v6560_v6 }
 0x55d   :  { %v3731_v2 = vpop.f32.mrf.mxu3  ;;  %v8624_v50 = vadd.f32 %v3820_v29, %v3774_v28  ;;  %v3857_v46 = vadd.f32 %v3856_v44, %v3843_v54  ;;  %v6624_v29 = vor.u32 %v7186_v62, %v6623_v52  ;;  %v6551_v44 = vld [vmem:[#allocation16 + $0xd0] sm:$0xf]  ;;  %v6496_v52 = vor.u32 %v7154_v21, %v6495_v13 }
 0x55e   :  { %v3788_v61 = vpop.f32.mrf.mxu2  ;;  %v8620_v53 = vadd.f32 %v3814_v12, %v3731_v2  ;;  %v6535_v62 = vld [vmem:[#allocation16 + $0xb0] sm:$0xf] }
 0x55f   :  { %v8622_v60 = vadd.f32 %v3817_v25, %v3788_v61  ;;  %v3866_v57 = vadd.f32 %v3865_v23, %v8624_v50  ;;  %v3858_v17 = vrot.slane %v3857_v46, 4  ;;  %4467 = vmatpush.bf16.msra.mxu1 %v6624_v29  ;;  %v7168_v23 = vld [vmem:[#allocation16 + $0xd4] sm:$0xf0] }
 0x560   :  { %v3846_v37 = vadd.f32 %v8620_v53, %v8626_v7  ;;  %v6552_v25 = vor.u32 %v7168_v23, %v6551_v44  ;;  %v7180_v44 = vld [vmem:[#allocation16 + $0x134] sm:$0xf0]  ;;  %v6687_v23 = vld [vmem:[#allocation16 + $0x1e0] sm:$0xf] }
 0x561   :  { %v3873_v49 = vadd.f32 %v8622_v60, %v8629_v0  ;;  %v3867_v58 = vrot.slane %v3866_v57, 4  ;;  %v3859_v16 = vadd.f32 %v3858_v17, %v3857_v46  ;;  %v7156_v17 = vld [vmem:[#allocation16 + $0x74] sm:$0xf0] }
 0x562   :  { %4449 = vmatpush.bf16.msra.mxu0 %v6552_v25 }
 0x563   :  { %v3868_v31 = vadd.f32 %v3867_v58, %v3866_v57  ;;  %v3860_v30 = vrot.slane %v3859_v16, 2 }
 0x565   :  { %v3734_v9 = vpop.f32.mrf.mxu3  ;;  %v3869_v15 = vrot.slane %v3868_v31, 2  ;;  %v3861_v32 = vadd.f32 %v3860_v30, %v3859_v16  ;;  %v7166_v16 = vld [vmem:[#allocation16 + $0xc4] sm:$0xf0] }
 0x566   :  { %v8635_v38 = vadd.f32 %v3818_v42, %v3734_v9  ;;  %v3791_v26 = vpop.f32.mrf.mxu2 }
 0x567   :  { %v8639_v43 = vadd.f32 %v3821_v56, %v3791_v26  ;;  %v3870_v39 = vadd.f32 %v3869_v15, %v3868_v31  ;;  %v3862_v36 = vrot.slane %v3861_v32, 1  ;;  %v6543_v26 = vld [vmem:[#allocation16 + $0xc0] sm:$0xf]  ;;  %v7182_v31 = vld [vmem:[#allocation16 + $0x144] sm:$0xf0] }
 0x568   :  { %v3847_v48 = vadd.f32 %v3846_v37, %v8635_v38  ;;  %v7184_v37 = vld [vmem:[#allocation16 + $0x154] sm:$0xf0]  ;;  %v6695_v15 = vld [vmem:[#allocation16 + $0x1f0] sm:$0xf] }
 0x569   :  { %v3874_v63 = vadd.f32 %v3873_v49, %v8639_v43  ;;  %v3871_v33 = vrot.slane %v3870_v39, 1  ;;  %v3863_v5 = vadd.f32 %v3862_v36, %v3861_v32  ;;  %v6544_v32 = vor.u32 %v7166_v16, %v6543_v26  ;;  %v6591_v16 = vld [vmem:[#allocation16 + $0x120] sm:$0xf] }
 0x56b   :  { %v3872_v24 = vadd.f32 %v3871_v33, %v3870_v39  ;;  %v3883_v34 = vmul.f32 %v3863_v5, %v7789_v35  ;;  %4450 = vmatpush.bf16.msra.mxu0 %v6544_v32  ;;  %v7164_v5 = vld [vmem:[#allocation16 + $0xb4] sm:$0xf0]  ;;  %v6479_v32 = vld [vmem:[#allocation16 + $0x40] sm:$0xf] }
 0x56d   :  { %v3736_v47 = vpop.f32.mrf.mxu3  ;;  %v3884_v2 = vmul.f32 %v3872_v24, %v7789_v35  ;;  %v8652_v45 = vsub.f32 %v8600_v40, %v3883_v34  ;;  %v8655_v28 = vsub.f32 %v8602_v19, %v3883_v34  ;;  %v8658_v46 = vsub.f32 %v8612_v51, %v3883_v34  ;;  %v6615_v19 = vld [vmem:[#allocation16 + $0x150] sm:$0xf] }
 0x56e   :  { %v8643_v22 = vadd.f32 %v3818_v42, %v3736_v47  ;;  %v3793_v11 = vpop.f32.mrf.mxu2  ;;  %v8660_v42 = vsub.f32 %v3843_v54, %v3883_v34  ;;  %v6616_v59 = vor.u32 %v7184_v37, %v6615_v19  ;;  %v6536_v34 = vor.u32 %v7164_v5, %v6535_v62  ;;  %v6519_v5 = vld [vmem:[#allocation16 + $0x90] sm:$0xf] }
 0x56f   :  { %v8645_v14 = vadd.f32 %v3821_v56, %v3793_v11  ;;  %v8663_v57 = vsub.f32 %v8604_v27, %v3884_v2  ;;  %v8666_v9 = vsub.f32 %v8606_v3, %v3884_v2  ;;  %v8669_v56 = vsub.f32 %v8616_v55, %v3884_v2  ;;  %v6503_v3 = vld [vmem:[#allocation16 + $0x70] sm:$0xf] }
 0x570   :  { %v3848_v41 = vadd.f32 %v3847_v48, %v8643_v22  ;;  %v8672_v40 = vsub.f32 %v8624_v50, %v3884_v2  ;;  %v3903_v51 = vmul.f32 %v8652_v45, %v8652_v45  ;;  %v3907_v54 = vmul.f32 %v8655_v28, %v8655_v28  ;;  %v6607_v48 = vld [vmem:[#allocation16 + $0x140] sm:$0xf]  ;;  %4468 = vmatpush.bf16.msra.mxu1 %v6616_v59  ;;  %v7202_v2 = vld [vmem:[#allocation16 + $0x1e4] sm:$0xf0]  ;;  %v7200_v59 = vld [vmem:[#allocation16 + $0x1d4] sm:$0xf0] }
 0x571   :  { %v3875_v20 = vadd.f32 %v3874_v63, %v8645_v14  ;;  %v3911_v27 = vmul.f32 %v8658_v46, %v8658_v46  ;;  %v3915_v55 = vmul.f32 %v8660_v42, %v8660_v42  ;;  %v3904_v50 = vmul.f32 %v8663_v57, %v8663_v57  ;;  %4451 = vmatpush.bf16.msra.mxu0 %v6536_v34 }
 0x572   :  { %v3849_v61 = vrot.slane %v3848_v41, 4  ;;  %v3908_v49 = vmul.f32 %v8666_v9, %v8666_v9  ;;  %v3912_v58 = vmul.f32 %v8669_v56, %v8669_v56  ;;  %v3927_v63 = vadd.f32 %v3907_v54, %v3903_v51  ;;  %v6487_v54 = vld [vmem:[#allocation16 + $0x50] sm:$0xf] }
 0x573   :  { %v3876_v12 = vrot.slane %v3875_v20, 4  ;;  %v6504_v1 = vor.u32 %v7156_v17, %v6503_v3  ;;  %v6608_v10 = vor.u32 %v7182_v31, %v6607_v48  ;;  %v6696_v11 = vor.u32 %v7204_v8, %v6695_v15  ;;  %v7152_v3 = vld [vmem:[#allocation16 + $0x54] sm:$0xf0]  ;;  %v6527_v17 = vld [vmem:[#allocation16 + $0xa0] sm:$0xf] }
 0x574   :  { %v3850_v30 = vadd.f32 %v3849_v61, %v3848_v41  ;;  %v3936_v18 = vadd.f32 %v3908_v49, %v3904_v50  ;;  %v3928_v39 = vadd.f32 %v3927_v63, %v3911_v27  ;;  %v3916_v33 = vmul.f32 %v8672_v40, %v8672_v40  ;;  %v6599_v41 = vld [vmem:[#allocation16 + $0x130] sm:$0xf]  ;;  %v7178_v48 = vld [vmem:[#allocation16 + $0x124] sm:$0xf0] }
 0x575   :  { %v3877_v4 = vadd.f32 %v3876_v12, %v3875_v20  ;;  %4428 = vmatpush.bf16.msrb.mxu3 %v6504_v1  ;;  %4485 = vmatpush.bf16.msra.mxu2 %v6696_v11  ;;  %v6688_v12 = vor.u32 %v7202_v2, %v6687_v23  ;;  %v6600_v51 = vor.u32 %v7180_v44, %v6599_v41  ;;  %v6583_v41 = vld [vmem:[#allocation16 + $0x110] sm:$0xf]  ;;  %v7198_v44 = vld [vmem:[#allocation16 + $0x1c4] sm:$0xf0] }
 0x576   :  { %v3851_v47 = vrot.slane %v3850_v30, 2  ;;  %v3937_v6 = vadd.f32 %v3936_v18, %v3912_v58  ;;  %v3929_v29 = vadd.f32 %v3928_v39, %v3915_v55  ;;  %4469 = vmatpush.bf16.msra.mxu1 %v6608_v10  ;;  %v6488_v49 = vor.u32 %v7152_v3, %v6487_v54  ;;  %v7162_v58 = vld [vmem:[#allocation16 + $0xa4] sm:$0xf0]  ;;  %v6471_v23 = vld [vmem:[#allocation16 + $0x30] sm:$0xf] }
 0x577   :  { %v3878_v36 = vrot.slane %v3877_v4, 2  ;;  %v6528_v63 = vor.u32 %v7162_v58, %v6527_v17  ;;  %v7150_v10 = vld [vmem:[#allocation16 + $0x44] sm:$0xf0]  ;;  %v6575_v3 = vld [vmem:[#allocation16 + $0x100] sm:$0xf] }
 0x578   :  { %v3852_v24 = vadd.f32 %v3851_v47, %v3850_v30  ;;  %v3938_v61 = vadd.f32 %v3937_v6, %v3916_v33  ;;  %v3930_v25 = vrot.slane %v3929_v29, 4  ;;  %v6592_v30 = vor.u32 %v7178_v48, %v6591_v16  ;;  %v6663_v58 = vld [vmem:[#allocation16 + $0x1b0] sm:$0xf]  ;;  %v7196_v16 = vld [vmem:[#allocation16 + $0x1b4] sm:$0xf0] }
 0x579   :  { %v3879_v20 = vadd.f32 %v3878_v36, %v3877_v4  ;;  %4429 = vmatpush.bf16.msrb.mxu3 %v6496_v52  ;;  %4486 = vmatpush.bf16.msra.mxu2 %v6688_v12  ;;  %v6679_v4 = vld [vmem:[#allocation16 + $0x1d0] sm:$0xf]  ;;  %v6480_v47 = vor.u32 %v7150_v10, %v6479_v32  ;;  %v6569_v32 = vld [vmem:[#allocation16 + $0xf8] sm:$0xf0]  ;;  %v7187_v10 = vld [vmem:[#allocation16 + $0x174] sm:$0xf] }
 0x57a   :  { %v3853_v19 = vrot.slane %v3852_v24, 1  ;;  %v3939_v27 = vrot.slane %v3938_v61, 4  ;;  %v3931_v26 = vadd.f32 %v3930_v25, %v3929_v29  ;;  %4470 = vmatpush.bf16.msra.mxu1 %v6600_v51  ;;  %v6680_v1 = vor.u32 %v7200_v59, %v6679_v4  ;;  %4452 = vmatpush.bf16.msra.mxu0 %v6528_v63  ;;  %v7158_v51 = vld [vmem:[#allocation16 + $0x84] sm:$0xf0]  ;;  %v6463_v4 = vld [vmem:[#allocation16 + $0x20] sm:$0xf] }
 0x57b   :  { %v3880_v37 = vrot.slane %v3879_v20, 1  ;;  %v7146_v59 = vld [vmem:[#allocation16 + $0x24] sm:$0xf0] }
 0x57c   :  { %v3854_v55 = vadd.f32 %v3853_v19, %v3852_v24  ;;  %v3940_v31 = vadd.f32 %v3939_v27, %v3938_v61  ;;  %v3932_v15 = vrot.slane %v3931_v26, 2  ;;  %v7176_v24 = vld [vmem:[#allocation16 + $0x114] sm:$0xf0] }
 0x57d   :  { %v3881_v50 = vadd.f32 %v3880_v37, %v3879_v20  ;;  %4430 = vmatpush.bf16.msrb.mxu3 %v6488_v49  ;;  %4487 = vmatpush.bf16.msra.mxu2 %v6680_v1  ;;  %v7148_v19 = vld [vmem:[#allocation16 + $0x34] sm:$0xf0]  ;;  %v6511_v37 = vld [vmem:[#allocation16 + $0x80] sm:$0xf]  ;;  %v7174_v49 = vld [vmem:[#allocation16 + $0x104] sm:$0xf0] }
 0x57e   :  { %v3882_v8 = vmul.f32 %v3854_v55, %v7789_v35  ;;  %v3941_v39 = vrot.slane %v3940_v31, 2  ;;  %v3933_v36 = vadd.f32 %v3932_v15, %v3931_v26  ;;  %4471 = vmatpush.bf16.msra.mxu1 %v6592_v30  ;;  %v6472_v63 = vor.u32 %v7148_v19, %v6471_v23  ;;  %v7171_v15 = vld [vmem:[#allocation16 + $0xf4] sm:$0xf]  ;;  %v6561_v23 = vld [vmem:[#allocation16 + $0xe8] sm:$0xf0] }
 0x57f   :  { %v3885_v18 = vmul.f32 %v3881_v50, %v7789_v35  ;;  %v6584_v50 = vor.u32 %v7176_v24, %v6583_v41  ;;  %v6512_v30 = vor.u32 %v7158_v51, %v6511_v37  ;;  %v6572_v24 = vor.u32 %v7171_v15, %v6569_v32  ;;  %v7192_v19 = vld [vmem:[#allocation16 + $0x194] sm:$0xf0]  ;;  %v6625_v37 = vld [vmem:[#allocation16 + $0x168] sm:$0xf0]  ;;  %v6617_v32 = vld [vmem:[#allocation16 + $0x158] sm:$0xf0] }
 0x580   :  { %v8693_v11 = vsub.f32 %v8626_v7, %v3882_v8  ;;  %v8696_v13 = vsub.f32 %v8620_v53, %v3882_v8  ;;  %v8699_v21 = vsub.f32 %v8635_v38, %v3882_v8  ;;  %v3942_v33 = vadd.f32 %v3941_v39, %v3940_v31  ;;  %v7160_v7 = vld [vmem:[#allocation16 + $0x94] sm:$0xf0]  ;;  %v6633_v39 = vld [vmem:[#allocation16 + $0x178] sm:$0xf0] }
 0x581   :  { %v8702_v6 = vsub.f32 %v8643_v22, %v3882_v8  ;;  %v8705_v52 = vsub.f32 %v8629_v0, %v3885_v18  ;;  %v8708_v62 = vsub.f32 %v8622_v60, %v3885_v18  ;;  %v3934_v29 = vrot.slane %v3933_v36, 1  ;;  %v6671_v22 = vld [vmem:[#allocation16 + $0x1c0] sm:$0xf]  ;;  %4431 = vmatpush.bf16.msrb.mxu3 %v6480_v47 }
 0x582   :  { %v3902_v53 = vmul.f32 %v8693_v11, %v8693_v11  ;;  %v3906_v38 = vmul.f32 %v8696_v13, %v8696_v13  ;;  %v3943_v20 = vrot.slane %v3942_v33, 1  ;;  %v3910_v0 = vmul.f32 %v8699_v21, %v8699_v21  ;;  %4472 = vmatpush.bf16.msra.mxu1 %v6584_v50 }
 0x583   :  { %v8717_v60 = vsub.f32 %v8639_v43, %v3885_v18  ;;  %v8720_v34 = vsub.f32 %v8645_v14, %v3885_v18  ;;  %v3935_v2 = vadd.f32 %v3934_v29, %v3933_v36  ;;  %v3905_v12 = vmul.f32 %v8705_v52, %v8705_v52 }
 0x584   :  { %v3918_v61 = vadd.f32 %v3906_v38, %v3902_v53  ;;  %v3909_v25 = vmul.f32 %v8708_v62, %v8708_v62  ;;  %v3944_v54 = vadd.f32 %v3943_v20, %v3942_v33  ;;  %v3914_v43 = vmul.f32 %v8702_v6, %v8702_v6  ;;  %v6655_v33 = vld [vmem:[#allocation16 + $0x1a0] sm:$0xf]  ;;  %v6455_v53 = vld [vmem:[#allocation16 + $0x10] sm:$0xf]  ;;  %v7144_v38 = vld [vmem:[#allocation16 + $0x14] sm:$0xf0] }
 0x585   :  { %v3913_v14 = vmul.f32 %v8717_v60, %v8717_v60  ;;  %v6520_v27 = vor.u32 %v7160_v7, %v6519_v5  ;;  %v8731_v17 = vmul.f32 %v3935_v2, %v7789_v35  ;;  %v6672_v31 = vor.u32 %v7198_v44, %v6671_v22  ;;  %4432 = vmatpush.bf16.msrb.mxu3 %v6472_v63  ;;  %v7194_v5 = vld [vmem:[#allocation16 + $0x1a4] sm:$0xf0]  ;;  %v7169_v20 = vld [vmem:[#allocation16 + $0xe4] sm:$0xf] }
 0x586   :  { %v3919_v26 = vadd.f32 %v3918_v61, %v3910_v0  ;;  %v3945_v55 = vadd.f32 %v3909_v25, %v3905_v12  ;;  %v8734_v48 = vmul.f32 %v3944_v54, %v7789_v35  ;;  %v3917_v18 = vmul.f32 %v8720_v34, %v8720_v34  ;;  %v7185_v2 = vld [vmem:[#allocation16 + $0x164] sm:$0xf]  ;;  %v6647_v25 = vld [vmem:[#allocation16 + $0x190] sm:$0xf] }
 0x587   :  { %4453 = vmatpush.bf16.msra.mxu0 %v6520_v27  ;;  %7287 = vrsqrt.f32 %v8731_v17  ;;  %4488 = vmatpush.bf16.msra.mxu2 %v6672_v31  ;;  %v6576_v47 = vor.u32 %v7174_v49, %v6575_v3  ;;  %v6664_v36 = vor.u32 %v7196_v16, %v6663_v58  ;;  %v6464_v29 = vor.u32 %v7146_v59, %v6463_v4  ;;  %v6447_v3 = vld [vmem:[#allocation16] sm:$0xf]  ;;  %v7167_v49 = vld [vmem:[#allocation16 + $0xd4] sm:$0xf] }
 0x588   :  { %v3920_v8 = vadd.f32 %v3919_v26, %v3914_v43  ;;  %v3946_v1 = vadd.f32 %v3945_v55, %v3913_v14  ;;  %7289 = vrsqrt.f32 %v8734_v48  ;;  %v6636_v22 = vor.u32 %v7187_v10, %v6633_v39  ;;  %v7142_v26 = vld [vmem:[#allocation16 + $0x4] sm:$0xf0]  ;;  %v7183_v4 = vld [vmem:[#allocation16 + $0x154] sm:$0xf] }
 0x589   :  { %4473 = vmatpush.bf16.msra.mxu1 %v6576_v47  ;;  %4433 = vmatpush.bf16.msrb.mxu3 %v6464_v29  ;;  %v6656_v61 = vor.u32 %v7194_v5, %v6655_v33  ;;  %v6456_v12 = vor.u32 %v7144_v38, %v6455_v53  ;;  %v6564_v14 = vor.u32 %v7169_v20, %v6561_v23  ;;  %v7155_v33 = vld [vmem:[#allocation16 + $0x74] sm:$0xf]  ;;  %v6505_v5 = vld [vmem:[#allocation16 + $0x78] sm:$0xf0]  ;;  %v7165_v29 = vld [vmem:[#allocation16 + $0xc4] sm:$0xf]  ;;  %vm3974_vm13 = vweird.f32 %v8731_v17 }
 0x58a   :  { %v3921_v7 = vrot.slane %v3920_v8, 4  ;;  %v3947_v41 = vadd.f32 %v3946_v1, %v3917_v18  ;;  %v6628_v27 = vor.u32 %v7185_v2, %v6625_v37  ;;  %v6648_v63 = vor.u32 %v7192_v19, %v6647_v25  ;;  %v7190_v18 = vld [vmem:[#allocation16 + $0x184] sm:$0xf0]  ;;  %v6545_v53 = vld [vmem:[#allocation16 + $0xc8] sm:$0xf0] }
 0x58b   :  { %4454 = vmatpush.bf16.msra.mxu0 %v6512_v30  ;;  %4489 = vmatpush.bf16.msra.mxu2 %v6664_v36  ;;  %v6553_v30 = vld [vmem:[#allocation16 + $0xd8] sm:$0xf0]  ;;  %v6448_v15 = vor.u32 %v7142_v26, %v6447_v3  ;;  %v6620_v36 = vor.u32 %v7183_v4, %v6617_v32  ;;  %v7181_v20 = vld [vmem:[#allocation16 + $0x144] sm:$0xf]  ;;  %v7203_v2 = vld [vmem:[#allocation16 + $0x1f4] sm:$0xf]  ;;  %vm3984_vm1 = vweird.f32 %v8734_v48 }
 0x58c   :  { %v3922_v0 = vadd.f32 %v3921_v7, %v3920_v8  ;;  %v3948_v44 = vrot.slane %v3947_v41, 4  ;;  %v6639_v8 = vld [vmem:[#allocation16 + $0x180] sm:$0xf]  ;;  %v6556_v1 = vor.u32 %v7167_v49, %v6553_v30  ;;  %v7163_v26 = vld [vmem:[#allocation16 + $0xb4] sm:$0xf] }
 0x58d   :  { %v8740_v51 = vpop.eup %7287  ;;  %4542 = vmatpush.bf16.msrb.mxu1 %v6636_v22  ;;  %4434 = vmatpush.bf16.msrb.mxu3 %v6456_v12  ;;  %v6640_v23 = vor.u32 %v7190_v18, %v6639_v8  ;;  %v7179_v49 = vld [vmem:[#allocation16 + $0x134] sm:$0xf]  ;;  %v7201_v30 = vld [vmem:[#allocation16 + $0x1e4] sm:$0xf]  ;;  %v6689_v4 = vld [vmem:[#allocation16 + $0x1e8] sm:$0xf0] }
 0x58e   :  { %v3923_v54 = vrot.slane %v3922_v0, 2  ;;  %v3949_v43 = vadd.f32 %v3948_v44, %v3947_v41  ;;  %v8742_v55 = vpop.eup %7289  ;;  %v3969_v50 = vmul.f32 %v8740_v51, %v8731_v17  ;;  %vm3975_vm0 = vweird.f32 %v8740_v51  ;;  %v6521_v12 = vld [vmem:[#allocation16 + $0x98] sm:$0xf0] }
 0x58f   :  { %4523 = vmatpush.bf16.msrb.mxu0 %v6572_v24  ;;  %v3979_v58 = vmul.f32 %v8742_v55, %v8734_v48  ;;  %4490 = vmatpush.bf16.msra.mxu2 %v6656_v61  ;;  %v6508_v41 = vor.u32 %v7155_v33, %v6505_v5  ;;  %vm3985_vm14 = vweird.f32 %v8742_v55  ;;  %v6697_v61 = vld [vmem:[#allocation16 + $0x1f8] sm:$0xf0]  ;;  %vm8755_vm15 = vmor %vm3974_vm13, %vm3975_vm0  ;;  %v6548_v17 = vor.u32 %v7165_v29, %v6545_v53  ;;  %v6529_v33 = vld [vmem:[#allocation16 + $0xa8] sm:$0xf0] }
 0x590   :  { %v3924_v16 = vadd.f32 %v3923_v54, %v3922_v0  ;;  %v3950_v31 = vrot.slane %v3949_v43, 2  ;;  %v3970_v59 = vmul.f32 %v8740_v51, %v3969_v50  ;;  %v6609_v0 = vld [vmem:[#allocation16 + $0x148] sm:$0xf0]  ;;  %v7153_v54 = vld [vmem:[#allocation16 + $0x64] sm:$0xf]  ;;  %v6700_v3 = vor.u32 %v7203_v2, %v6697_v61  ;;  %vm3986_vm3 = vmor %vm3984_vm1, %vm3985_vm14 }
 0x591   :  { %v3980_v10 = vmul.f32 %v8742_v55, %v3979_v58  ;;  %4543 = vmatpush.bf16.msrb.mxu1 %v6628_v27  ;;  %4435 = vmatpush.bf16.msrb.mxu3 %v6448_v15  ;;  %v6612_v27 = vor.u32 %v7181_v20, %v6609_v0  ;;  %v6537_v50 = vld [vmem:[#allocation16 + $0xb8] sm:$0xf0]  ;;  %v6692_v18 = vor.u32 %v7201_v30, %v6689_v4  ;;  %v6481_v20 = vld [vmem:[#allocation16 + $0x48] sm:$0xf0]  ;;  %v7159_v61 = vld [vmem:[#allocation16 + $0x94] sm:$0xf] }
 0x592   :  { %v3925_v39 = vrot.slane %v3924_v16, 1  ;;  %v3951_v47 = vadd.f32 %v3950_v31, %v3949_v43  ;;  %v3971_v7 = vmul.f32 0.5, %v3970_v59  ;;  %v6497_v43 = vld [vmem:[#allocation16 + $0x68] sm:$0xf0]  ;;  %v6540_v15 = vor.u32 %v7163_v26, %v6537_v50  ;;  %v7147_v4 = vld [vmem:[#allocation16 + $0x34] sm:$0xf] }
 0x593   :  { %4524 = vmatpush.bf16.msrb.mxu0 %v6564_v14  ;;  %v3981_v38 = vmul.f32 0.5, %v3980_v10  ;;  %4491 = vmatpush.bf16.msra.mxu2 %v6648_v63  ;;  %v6500_v31 = vor.u32 %v7153_v54, %v6497_v43  ;;  %v6601_v63 = vld [vmem:[#allocation16 + $0x138] sm:$0xf0]  ;;  %v6673_v26 = vld [vmem:[#allocation16 + $0x1c8] sm:$0xf0]  ;;  %v6524_v30 = vor.u32 %v7159_v61, %v6521_v12 }
 0x594   :  { %v3926_v24 = vadd.f32 %v3925_v39, %v3924_v16  ;;  %v3952_v22 = vrot.slane %v3951_v47, 1  ;;  %v3972_v44 = vsub.f32 1.5, %v3971_v7  ;;  %v6604_v8 = vor.u32 %v7179_v49, %v6601_v63  ;;  %v6585_v54 = vld [vmem:[#allocation16 + $0x118] sm:$0xf0] }
 0x595   :  { %v3982_v25 = vsub.f32 1.5, %v3981_v38  ;;  %4544 = vmatpush.bf16.msrb.mxu1 %v6620_v36  ;;  %4504 = vmatpush.bf16.msra.mxu3 %v6508_v41  ;;  %v7161_v36 = vld [vmem:[#allocation16 + $0xa4] sm:$0xf]  ;;  %v7199_v41 = vld [vmem:[#allocation16 + $0x1d4] sm:$0xf] }
 0x596   :  { %v8760_v19 = vmul.f32 %v3926_v24, %v7789_v35  ;;  %v3953_v37 = vadd.f32 %v3952_v22, %v3951_v47  ;;  %v3973_v14 = vmul.f32 %v8740_v51, %v3972_v44  ;;  %v7149_v38 = vld [vmem:[#allocation16 + $0x44] sm:$0xf]  ;;  %v6532_v2 = vor.u32 %v7161_v36, %v6529_v33  ;;  %v7195_v36 = vld [vmem:[#allocation16 + $0x1b4] sm:$0xf]  ;;  %v6665_v33 = vld [vmem:[#allocation16 + $0x1b8] sm:$0xf0] }
 0x597   :  { %4525 = vmatpush.bf16.msrb.mxu0 %v6556_v1  ;;  %v3983_v58 = vmul.f32 %v8742_v55, %v3982_v25  ;;  %4492 = vmatpush.bf16.msra.mxu2 %v6640_v23  ;;  %v7151_v1 = vld [vmem:[#allocation16 + $0x54] sm:$0xf] }
 0x598   :  { %7291 = vrsqrt.f32 %v8760_v19  ;;  %v8767_v16 = vmul.f32 %v3953_v37, %v7789_v35  ;;  %v3977_v59 = vsel %vm8755_vm15, %v8740_v51, %v3973_v14  ;;  %v6489_v51 = vld [vmem:[#allocation16 + $0x58] sm:$0xf0]  ;;  %vm3964_vm5 = vweird.f32 %v8760_v19 }
 0x599   :  { %v3999_v32 = vmul.f32 %v3977_v59, %v8652_v45  ;;  %v4003_v10 = vmul.f32 %v3977_v59, %v8655_v28  ;;  %v4011_v39 = vmul.f32 %v3977_v59, %v8660_v42  ;;  %v3987_v47 = vsel %vm3986_vm3, %v8742_v55, %v3983_v58  ;;  %4545 = vmatpush.bf16.msrb.mxu1 %v6612_v27  ;;  %v7177_v45 = vld [vmem:[#allocation16 + $0x124] sm:$0xf]  ;;  %v6593_v28 = vld [vmem:[#allocation16 + $0x128] sm:$0xf0]  ;;  %v6681_v42 = vld [vmem:[#allocation16 + $0x1d8] sm:$0xf0] }
 0x59a   :  { %v4000_v48 = vmul.f32 %v3987_v47, %v8663_v57  ;;  %v4004_v5 = vmul.f32 %v3987_v47, %v8666_v9  ;;  %v4012_v7 = vmul.f32 %v3987_v47, %v8672_v40  ;;  %7293 = vrsqrt.f32 %v8767_v16  ;;  %4505 = vmatpush.bf16.msra.mxu3 %v6500_v31 }
 0x59b   :  { %4526 = vmatpush.bf16.msrb.mxu0 %v6548_v17  ;;  %4561 = vmatpush.bf16.msrb.mxu2 %v6700_v3  ;;  %v4015_v29 = vmax.f32 %v3999_v32, 0.0  ;;  %v4019_v55 = vmax.f32 %v4003_v10, 0.0  ;;  %v4027_v53 = vmax.f32 %v4011_v39, 0.0  ;;  %v4007_v9 = vmul.f32 %v3977_v59, %v8658_v46  ;;  %v7175_v46 = vld [vmem:[#allocation16 + $0x114] sm:$0xf] }
 0x59c   :  { %v4016_v24 = vmax.f32 %v4000_v48, 0.0  ;;  %v4020_v22 = vmax.f32 %v4004_v5, 0.0  ;;  %v4028_v57 = vmax.f32 %v4012_v7, 0.0  ;;  %v4008_v44 = vmul.f32 %v3987_v47, %v8669_v56  ;;  %v7197_v3 = vld [vmem:[#allocation16 + $0x1c4] sm:$0xf] }
 0x59d   :  { %v8787_v0 = vpack.c.bf16 %v4019_v55, %v4015_v29  ;;  %v6492_v23 = vor.u32 %v7151_v1, %v6489_v51  ;;  %v4023_v17 = vmax.f32 %v4007_v9, 0.0  ;;  %4546 = vmatpush.bf16.msrb.mxu1 %v6604_v8  ;;  %v6596_v56 = vor.u32 %v7177_v45, %v6593_v28  ;;  %v6473_v59 = vld [vmem:[#allocation16 + $0x38] sm:$0xf0]  ;;  %v6513_v32 = vld [vmem:[#allocation16 + $0x88] sm:$0xf0] }
 0x59e   :  { %v8785_v40 = vpop.eup %7291  ;;  %v8792_v37 = vpack.c.bf16 %v4020_v22, %v4016_v24  ;;  %v4024_v43 = vmax.f32 %v4008_v44, 0.0  ;;  %v6684_v14 = vor.u32 %v7199_v41, %v6681_v42  ;;  %v6484_v27 = vor.u32 %v7149_v38, %v6481_v20  ;;  %v7173_v10 = vld [vmem:[#allocation16 + $0x104] sm:$0xf]  ;;  %v6577_v51 = vld [vmem:[#allocation16 + $0x108] sm:$0xf0] }
 0x59f   :  { %4527 = vmatpush.bf16.msrb.mxu0 %v6540_v15  ;;  %v3959_v25 = vmul.f32 %v8785_v40, %v8760_v19  ;;  %4562 = vmatpush.bf16.msrb.mxu2 %v6692_v18  ;;  %v8799_v58 = vpack.c.bf16 %v4027_v53, %v4023_v17  ;;  %v7157_v15 = vld [vmem:[#allocation16 + $0x84] sm:$0xf]  ;;  %v6588_v18 = vor.u32 %v7175_v46, %v6585_v54  ;;  %vm3965_vm4 = vweird.f32 %v8785_v40  ;;  %v6465_v7 = vld [vmem:[#allocation16 + $0x28] sm:$0xf0]  ;;  %v7143_v22 = vld [vmem:[#allocation16 + $0x14] sm:$0xf] }
 0x5a0   :  { %4455 = vmatmul.bf16.vlgmr.msra.gmra.mxu0 %v8787_v0  ;;  %4506 = vmatpush.bf16.msra.mxu3 %v6492_v23  ;;  %v8795_v50 = vpop.eup %7293  ;;  %v8803_v63 = vpack.c.bf16 %v4028_v57, %v4024_v43  ;;  %v6676_v1 = vor.u32 %v7197_v3, %v6673_v26  ;;  %v6476_v47 = vor.u32 %v7147_v4, %v6473_v59  ;;  %v7145_v5 = vld [vmem:[#allocation16 + $0x24] sm:$0xf]  ;;  %v6657_v53 = vld [vmem:[#allocation16 + $0x1a8] sm:$0xf0]  ;;  %vm3966_vm6 = vmor %vm3964_vm5, %vm3965_vm4  ;;  %vm3994_vm8 = vweird.f32 %v8767_v16 }
 0x5a1   :  { %v3960_v49 = vmul.f32 %v8785_v40, %v3959_v25  ;;  %4474 = vmatmul.bf16.vlgmr.msra.gmra.mxu1 %v8792_v37  ;;  %v3989_v31 = vmul.f32 %v8795_v50, %v8767_v16  ;;  %v6516_v28 = vor.u32 %v7157_v15, %v6513_v32  ;;  %v6580_v42 = vor.u32 %v7173_v10, %v6577_v51  ;;  %v7193_v55 = vld [vmem:[#allocation16 + $0x1a4] sm:$0xf]  ;;  %v6457_v57 = vld [vmem:[#allocation16 + $0x18] sm:$0xf0]  ;;  %v7191_v54 = vld [vmem:[#allocation16 + $0x194] sm:$0xf] }
 0x5a2   :  { %4547 = vmatpush.bf16.msrb.mxu1 %v6596_v56  ;;  %v6668_v29 = vor.u32 %v7195_v36, %v6665_v33  ;;  %vm3995_vm7 = vweird.f32 %v8795_v50  ;;  %v6468_v24 = vor.u32 %v7145_v5, %v6465_v7  ;;  %v6660_v61 = vor.u32 %v7193_v55, %v6657_v53  ;;  %v6649_v43 = vld [vmem:[#allocation16 + $0x198] sm:$0xf0]  ;;  %v6641_v4 = vld [vmem:[#allocation16 + $0x188] sm:$0xf0] }
 0x5a3   :  { %4528 = vmatpush.bf16.msrb.mxu0 %v6532_v2  ;;  %v3961_v8 = vmul.f32 0.5, %v3960_v49  ;;  %4563 = vmatpush.bf16.msrb.mxu2 %v6684_v14  ;;  %v3990_v39 = vmul.f32 %v8795_v50, %v3989_v31  ;;  %vm3996_vm9 = vmor %vm3994_vm8, %vm3995_vm7  ;;  %v6460_v12 = vor.u32 %v7143_v22, %v6457_v57  ;;  %v7141_v14 = vld [vmem:[#allocation16 + $0x4] sm:$0xf] }
 0x5a4   :  { %4507 = vmatpush.bf16.msra.mxu3 %v6484_v27  ;;  %v6449_v27 = vld [vmem:[#allocation16 + $0x8] sm:$0xf0] }
 0x5a5   :  { %v3962_v48 = vsub.f32 1.5, %v3961_v8  ;;  %v3991_v45 = vmul.f32 0.5, %v3990_v39 }
 0x5a6   :  { %4548 = vmatpush.bf16.msrb.mxu1 %v6588_v18 }
 0x5a7   :  { %4529 = vmatpush.bf16.msrb.mxu0 %v6524_v30  ;;  %v3963_v41 = vmul.f32 %v8785_v40, %v3962_v48  ;;  %4564 = vmatpush.bf16.msrb.mxu2 %v6676_v1  ;;  %v3992_v38 = vsub.f32 1.5, %v3991_v45  ;;  %v7189_v30 = vld [vmem:[#allocation16 + $0x184] sm:$0xf] }
 0x5a8   :  { %4508 = vmatpush.bf16.msra.mxu3 %v6476_v47  ;;  %v6644_v59 = vor.u32 %v7189_v30, %v6641_v4  ;;  %v7209_v4 = vld [vmem:[#allocation17 + $0x20] sm:$0xff] }
 0x5a9   :  { %v3967_v9 = vsel %vm3966_vm6, %v8785_v40, %v3963_v41  ;;  %v3993_v23 = vmul.f32 %v8795_v50, %v3992_v38 }
 0x5aa   :  { %v3998_v19 = vmul.f32 %v3967_v9, %v8693_v11  ;;  %v4002_v20 = vmul.f32 %v3967_v9, %v8696_v13  ;;  %v4010_v44 = vmul.f32 %v3967_v9, %v8702_v6  ;;  %v4006_v2 = vmul.f32 %v3967_v9, %v8699_v21  ;;  %4549 = vmatpush.bf16.msrb.mxu1 %v6580_v42 }
 0x5ab   :  { %4530 = vmatpush.bf16.msrb.mxu0 %v6516_v28  ;;  %4565 = vmatpush.bf16.msrb.mxu2 %v6668_v29  ;;  %v3997_v16 = vsel %vm3996_vm9, %v8795_v50, %v3993_v23 }
 0x5ac   :  { %v4014_v25 = vmax.f32 %v3998_v19, 0.0  ;;  %v4018_v40 = vmax.f32 %v4002_v20, 0.0  ;;  %v4026_v17 = vmax.f32 %v4010_v44, 0.0  ;;  %4509 = vmatpush.bf16.msra.mxu3 %v6468_v24  ;;  %v4001_v11 = vmul.f32 %v3997_v16, %v8705_v52 }
 0x5ad   :  { %v4005_v13 = vmul.f32 %v3997_v16, %v8708_v62  ;;  %v4013_v6 = vmul.f32 %v3997_v16, %v8720_v34  ;;  %v4022_v46 = vmax.f32 %v4006_v2, 0.0  ;;  %v4009_v56 = vmul.f32 %v3997_v16, %v8717_v60 }
 0x5ae   :  { %v4030_v21 = vpack.c.bf16 %v4018_v40, %v4014_v25  ;;  %v4017_v3 = vmax.f32 %v4001_v11, 0.0  ;;  %v6652_v62 = vor.u32 %v7191_v54, %v6649_v43  ;;  %v6452_v34 = vor.u32 %v7141_v14, %v6449_v27 }
 0x5af   :  { %v4021_v26 = vmax.f32 %v4005_v13, 0.0  ;;  %v4029_v49 = vmax.f32 %v4013_v6, 0.0  ;;  %v4034_v31 = vpack.c.bf16 %v4026_v17, %v4022_v46  ;;  %4566 = vmatpush.bf16.msrb.mxu2 %v6660_v61  ;;  %v4025_v52 = vmax.f32 %v4009_v56, 0.0  ;;  %v7212_v13 = vld [vmem:[#allocation17 + $0x38] sm:$0xff]  ;;  %v7211_v56 = vld [vmem:[#allocation17 + $0x30] sm:$0xff] }
 0x5b0   :  { %4436 = vmatmul.bf16.vlgmr.msrb.gmra.mxu3 %v4030_v21  ;;  %4460 = vmatmul.bf16.gmra.mxu0 %v8799_v58 }
 0x5b1   :  { %v4033_v50 = vpack.c.bf16 %v4021_v26, %v4017_v3  ;;  %4479 = vmatmul.bf16.gmra.mxu1 %v8803_v63  ;;  %4510 = vmatpush.bf16.msra.mxu3 %v6460_v12  ;;  %v4037_v60 = vpack.c.bf16 %v4029_v49, %v4025_v52  ;;  %v7210_v49 = vld [vmem:[#allocation17 + $0x28] sm:$0xff] }
 0x5b3   :  { %4493 = vmatmul.bf16.vlgmr.msra.gmra.mxu2 %v4033_v50 }
 0x5b4   :  { %4567 = vmatpush.bf16.msrb.mxu2 %v6652_v62 }
 0x5b5   :  { %4511 = vmatpush.bf16.msra.mxu3 %v6452_v34 }
 0x5b8   :  { %4568 = vmatpush.bf16.msrb.mxu2 %v6644_v59 }
 0x5b9   :  { %4808 = vmatpush.bf16.msrb.mxu3 %v7212_v13 }
 0x5bd   :  { %4809 = vmatpush.bf16.msrb.mxu3 %v7211_v56 }
 0x5c0   :  { %4441 = vmatmul.bf16.gmra.mxu3 %v4034_v31  ;;  %4531 = vmatmul.bf16.vlgmr.msrb.gmra.mxu0 %v8787_v0  ;;  %v4102_v0 = vld [vmem:[%s8889_s13] sm:$0x3] }
 0x5c1   :  { %4550 = vmatmul.bf16.vlgmr.msrb.gmra.mxu1 %v8792_v37  ;;  %v4104_v51 = vperm.slane %v4102_v0, 0  ;;  %v4105_v3 = vperm.slane %v4102_v0, 1  ;;  %4810 = vmatpush.bf16.msrb.mxu3 %v7210_v49 }
 0x5c3   :  { %4498 = vmatmul.bf16.gmra.mxu2 %v4037_v60 }
 0x5c5   :  { %4811 = vmatpush.bf16.msrb.mxu3 %v7209_v4 }
 0x5d0   :  { %4512 = vmatmul.bf16.vlgmr.msra.gmra.mxu3 %v4030_v21  ;;  %4536 = vmatmul.bf16.gmra.mxu0 %v8799_v58 }
 0x5d1   :  { %4555 = vmatmul.bf16.gmra.mxu1 %v8803_v63 }
 0x5d3   :  { %4569 = vmatmul.bf16.vlgmr.msrb.gmra.mxu2 %v4033_v50 }
 0x5e0   :  { %4517 = vmatmul.bf16.gmra.mxu3 %v4034_v31 }
 0x5e3   :  { %4574 = vmatmul.bf16.gmra.mxu2 %v4037_v60 }
 0x61d   :  { %v4456_v15 = vpop.f32.mrf.mxu0 }
 0x61e   :  { %v4475_v8 = vpop.f32.mrf.mxu1 }
 0x625   :  { %v4458_v18 = vpop.f32.mrf.mxu0 }
 0x626   :  { %v4477_v1 = vpop.f32.mrf.mxu1 }
 0x62d   :  { %v4461_v39 = vpop.f32.mrf.mxu0 }
 0x62e   :  { %v4480_v47 = vpop.f32.mrf.mxu1 }
 0x633   :  { %v4437_v32 = vpop.f32.mrf.mxu3 }
 0x634   :  { %v4438_v63 = vadd.f32 %v4437_v32, %v4104_v51 }
 0x635   :  { %v4463_v7 = vpop.f32.mrf.mxu0 }
 0x636   :  { %v4494_v10 = vpop.f32.mrf.mxu2  ;;  %v4457_v45 = vadd.f32 %v4456_v15, %v4438_v63  ;;  %v4482_v42 = vpop.f32.mrf.mxu1 }
 0x638   :  { %v4476_v55 = vadd.f32 %v4475_v8, %v4457_v45 }
 0x63a   :  { %v4495_v57 = vadd.f32 %v4494_v10, %v4476_v55 }
 0x63b   :  { %v4439_v37 = vpop.f32.mrf.mxu3 }
 0x63c   :  { %v4440_v36 = vadd.f32 %v4439_v37, %v4104_v51 }
 0x63d   :  { %v4532_v44 = vpop.f32.mrf.mxu0 }
 0x63e   :  { %v4496_v58 = vpop.f32.mrf.mxu2  ;;  %v4459_v48 = vadd.f32 %v4458_v18, %v4440_v36  ;;  %v4551_v61 = vpop.f32.mrf.mxu1 }
 0x640   :  { %v4478_v29 = vadd.f32 %v4477_v1, %v4459_v48 }
 0x642   :  { %v4497_v24 = vadd.f32 %v4496_v58, %v4478_v29 }
 0x643   :  { %v4442_v33 = vpop.f32.mrf.mxu3 }
 0x644   :  { %v4443_v5 = vadd.f32 %v4442_v33, %v4104_v51  ;;  %v4580_v23 = vadd.f32 %v4497_v24, %v4495_v57 }
 0x645   :  { %v4534_v46 = vpop.f32.mrf.mxu0 }
 0x646   :  { %v4462_v28 = vadd.f32 %v4461_v39, %v4443_v5  ;;  %v4499_v41 = vpop.f32.mrf.mxu2  ;;  %v4553_v43 = vpop.f32.mrf.mxu1 }
 0x648   :  { %v4481_v53 = vadd.f32 %v4480_v47, %v4462_v28  ;;  %v7207_v28 = vld [vmem:[#allocation17 + $0x10] sm:$0xff] }
 0x64a   :  { %v4500_v9 = vadd.f32 %v4499_v41, %v4481_v53 }
 0x64b   :  { %v4444_v38 = vpop.f32.mrf.mxu3 }
 0x64c   :  { %v4445_v22 = vadd.f32 %v4444_v38, %v4104_v51  ;;  %v4581_v12 = vadd.f32 %v4580_v23, %v4500_v9  ;;  %v7208_v51 = vld [vmem:[#allocation17 + $0x18] sm:$0xff] }
 0x64d   :  { %v4537_v34 = vpop.f32.mrf.mxu0  ;;  %4812 = vmatpush.bf16.msrb.mxu3 %v7208_v51 }
 0x64e   :  { %v4464_v19 = vadd.f32 %v4463_v7, %v4445_v22  ;;  %v4501_v20 = vpop.f32.mrf.mxu2  ;;  %v4556_v18 = vpop.f32.mrf.mxu1 }
 0x650   :  { %v4483_v2 = vadd.f32 %v4482_v42, %v4464_v19 }
 0x651   :  { %4813 = vmatpush.bf16.msrb.mxu3 %v7207_v28 }
 0x652   :  { %v4502_v25 = vadd.f32 %v4501_v20, %v4483_v2 }
 0x653   :  { %v4513_v40 = vpop.f32.mrf.mxu3 }
 0x654   :  { %v4582_v17 = vadd.f32 %v4581_v12, %v4502_v25  ;;  %v4514_v50 = vadd.f32 %v4513_v40, %v4105_v3 }
 0x655   :  { %v4539_v55 = vpop.f32.mrf.mxu0 }
 0x656   :  { %v4583_v16 = vrot.slane %v4582_v17, 4  ;;  %v4570_v11 = vpop.f32.mrf.mxu2  ;;  %v4533_v0 = vadd.f32 %v4532_v44, %v4514_v50 }
 0x658   :  { %v4584_v6 = vadd.f32 %v4583_v16, %v4582_v17  ;;  %v4552_v5 = vadd.f32 %v4551_v61, %v4533_v0 }
 0x65a   :  { %v4585_v54 = vrot.slane %v4584_v6, 2  ;;  %v4571_v38 = vadd.f32 %v4570_v11, %v4552_v5 }
 0x65b   :  { %v4515_v21 = vpop.f32.mrf.mxu3 }
 0x65c   :  { %v4586_v14 = vadd.f32 %v4585_v54, %v4584_v6  ;;  %v4516_v52 = vadd.f32 %v4515_v21, %v4105_v3  ;;  %v7220_v6 = vld [vmem:[#allocation17 + $0x78] sm:$0xff]  ;;  %v7219_v21 = vld [vmem:[#allocation17 + $0x70] sm:$0xff] }
 0x65d   :  { %4827 = vmatpush.bf16.msra.mxu0 %v7220_v6 }
 0x65e   :  { %v4587_v27 = vrot.slane %v4586_v14, 1  ;;  %v4572_v26 = vpop.f32.mrf.mxu2  ;;  %v4535_v8 = vadd.f32 %v4534_v46, %v4516_v52  ;;  %v7217_v52 = vld [vmem:[#allocation17 + $0x60] sm:$0xff] }
 0x660   :  { %v4588_v31 = vadd.f32 %v4587_v27, %v4586_v14  ;;  %v4554_v63 = vadd.f32 %v4553_v43, %v4535_v8  ;;  %v7218_v27 = vld [vmem:[#allocation17 + $0x68] sm:$0xff] }
 0x661   :  { %4828 = vmatpush.bf16.msra.mxu0 %v7219_v21 }
 0x662   :  { %v4598_v62 = vmul.f32 %v4588_v31, %v7789_v35  ;;  %v4573_v42 = vadd.f32 %v4572_v26, %v4554_v63 }
 0x663   :  { %v4518_v30 = vpop.f32.mrf.mxu3 }
 0x664   :  { %v8832_v60 = vsub.f32 %v4495_v57, %v4598_v62  ;;  %v8834_v59 = vsub.f32 %v4497_v24, %v4598_v62  ;;  %v8836_v15 = vsub.f32 %v4500_v9, %v4598_v62  ;;  %v4519_v1 = vadd.f32 %v4518_v30, %v4105_v3  ;;  %v4558_v57 = vpop.f32.mrf.mxu1  ;;  %v7206_v9 = vld [vmem:[#allocation17 + $0x8] sm:$0xff] }
 0x665   :  { %v8838_v32 = vsub.f32 %v4502_v25, %v4598_v62  ;;  %v4589_v20 = vadd.f32 %v4573_v42, %v4571_v38  ;;  %4814 = vmatpush.bf16.msrb.mxu3 %v7206_v9  ;;  %v7205_v25 = vld [vmem:[#allocation17] sm:$0xff]  ;;  %4829 = vmatpush.bf16.msra.mxu0 %v7218_v27 }
 0x666   :  { %v4608_v10 = vmul.f32 %v8832_v60, %v8832_v60  ;;  %v4610_v39 = vmul.f32 %v8834_v59, %v8834_v59  ;;  %v4538_v37 = vadd.f32 %v4537_v34, %v4519_v1  ;;  %v4575_v47 = vpop.f32.mrf.mxu2  ;;  %v4612_v58 = vmul.f32 %v8836_v15, %v8836_v15 }
 0x667   :  { %v4614_v33 = vmul.f32 %v8838_v32, %v8838_v32 }
 0x668   :  { %v4616_v36 = vadd.f32 %v4610_v39, %v4608_v10  ;;  %v4557_v7 = vadd.f32 %v4556_v18, %v4538_v37  ;;  %v7216_v10 = vld [vmem:[#allocation17 + $0x58] sm:$0xff] }
 0x669   :  { %4815 = vmatpush.bf16.msrb.mxu3 %v7205_v25  ;;  %4830 = vmatpush.bf16.msra.mxu0 %v7217_v52 }
 0x66a   :  { %v4617_v48 = vadd.f32 %v4616_v36, %v4612_v58  ;;  %v4576_v24 = vadd.f32 %v4575_v47, %v4557_v7  ;;  %v7215_v36 = vld [vmem:[#allocation17 + $0x50] sm:$0xff] }
 0x66b   :  { %v4520_v45 = vpop.f32.mrf.mxu3 }
 0x66c   :  { %v4618_v41 = vadd.f32 %v4617_v48, %v4614_v33  ;;  %v4521_v29 = vadd.f32 %v4520_v45, %v4105_v3  ;;  %v4590_v61 = vadd.f32 %v4589_v20, %v4576_v24  ;;  %v7214_v45 = vld [vmem:[#allocation17 + $0x48] sm:$0xff] }
 0x66d   :  { %4831 = vmatpush.bf16.msra.mxu0 %v7216_v10 }
 0x66e   :  { %v4619_v53 = vrot.slane %v4618_v41, 4  ;;  %v4540_v22 = vadd.f32 %v4539_v55, %v4521_v29  ;;  %v4577_v23 = vpop.f32.mrf.mxu2  ;;  %v7213_v29 = vld [vmem:[#allocation17 + $0x40] sm:$0xff] }
 0x670   :  { %v4620_v19 = vadd.f32 %v4619_v53, %v4618_v41  ;;  %v4559_v44 = vadd.f32 %v4558_v57, %v4540_v22 }
 0x671   :  { %4832 = vmatpush.bf16.msra.mxu0 %v7215_v36  ;;  %v7227_v36 = vld [vmem:[#allocation19 + $0x30] sm:$0xff] }
 0x672   :  { %v4621_v2 = vrot.slane %v4620_v19, 2  ;;  %v4578_v12 = vadd.f32 %v4577_v23, %v4559_v44 }
 0x674   :  { %v4622_v40 = vadd.f32 %v4621_v2, %v4620_v19  ;;  %v4591_v17 = vadd.f32 %v4590_v61, %v4578_v12 }
 0x675   :  { %4833 = vmatpush.bf16.msra.mxu0 %v7214_v45  ;;  %v7225_v45 = vld [vmem:[#allocation19 + $0x20] sm:$0xff] }
 0x676   :  { %v4623_v16 = vrot.slane %v4622_v40, 1  ;;  %v4592_v13 = vrot.slane %v4591_v17, 4 }
 0x678   :  { %v4624_v11 = vadd.f32 %v4623_v16, %v4622_v40  ;;  %v4593_v46 = vadd.f32 %v4592_v13, %v4591_v17 }
 0x679   :  { %4834 = vmatpush.bf16.msra.mxu0 %v7213_v29 }
 0x67a   :  { %v4634_v54 = vmul.f32 %v4624_v11, %v7789_v35  ;;  %v4594_v43 = vrot.slane %v4593_v46, 2 }
 0x67c   :  { %7295 = vrsqrt.f32 %v4634_v54  ;;  %v4595_v56 = vadd.f32 %v4594_v43, %v4593_v46  ;;  %vm4642_vm2 = vweird.f32 %v4634_v54 }
 0x67e   :  { %v4596_v14 = vrot.slane %v4595_v56, 1 }
 0x680   :  { %v4597_v3 = vadd.f32 %v4596_v14, %v4595_v56 }
 0x682   :  { %v7296_v26 = vpop.eup %7295  ;;  %v4599_v49 = vmul.f32 %v4597_v3, %v7789_v35 }
 0x683   :  { %v4637_v31 = vmul.f32 %v7296_v26, %v4634_v54  ;;  %vm4643_vm10 = vweird.f32 %v7296_v26 }
 0x684   :  { %v4601_v62 = vsub.f32 %v4571_v38, %v4599_v49  ;;  %v4603_v50 = vsub.f32 %v4573_v42, %v4599_v49  ;;  %v8850_v34 = vsub.f32 %v4576_v24, %v4599_v49  ;;  %v4607_v4 = vsub.f32 %v4578_v12, %v4599_v49  ;;  %vm4644_vm11 = vmor %vm4642_vm2, %vm4643_vm10 }
 0x685   :  { %v4638_v30 = vmul.f32 %v7296_v26, %v4637_v31 }
 0x686   :  { %v4609_v8 = vmul.f32 %v4601_v62, %v4601_v62  ;;  %v4611_v18 = vmul.f32 %v4603_v50, %v4603_v50  ;;  %v4613_v39 = vmul.f32 %v8850_v34, %v8850_v34  ;;  %v4615_v47 = vmul.f32 %v4607_v4, %v4607_v4 }
 0x687   :  { %v4639_v1 = vmul.f32 0.5, %v4638_v30 }
 0x688   :  { %v4625_v0 = vadd.f32 %v4611_v18, %v4609_v8 }
 0x689   :  { %v4640_v37 = vsub.f32 1.5, %v4639_v1 }
 0x68a   :  { %v4626_v51 = vadd.f32 %v4625_v0, %v4613_v39 }
 0x68b   :  { %v4641_v58 = vmul.f32 %v7296_v26, %v4640_v37 }
 0x68c   :  { %v4627_v63 = vadd.f32 %v4626_v51, %v4615_v47  ;;  %v7228_v47 = vld [vmem:[#allocation19 + $0x38] sm:$0xff] }
 0x68d   :  { %v4645_v33 = vsel %vm4644_vm11, %v7296_v26, %v4641_v58  ;;  %v7261_v26 = vld [vmem:[%s8891_s15] ss:$0 sm:$0xff]  ;;  %7229 = vmatpush.bf16.msra.mxu2 %v7228_v47  ;;  %4962 = vmatpush.bf16.msra.mxu1 %v7228_v47 }
 0x68e   :  { %v4656_v48 = vmul.f32 %v4645_v33, %v8832_v60  ;;  %v4658_v5 = vmul.f32 %v4645_v33, %v8834_v59  ;;  %v4628_v7 = vrot.slane %v4627_v63, 4  ;;  %v4662_v57 = vmul.f32 %v4645_v33, %v8838_v32 }
 0x68f   :  { %v4660_v59 = vmul.f32 %v4645_v33, %v8836_v15 }
 0x690   :  { %v4664_v28 = vmax.f32 %v4656_v48, 0.0  ;;  %v4666_v41 = vmax.f32 %v4658_v5, 0.0  ;;  %v4629_v42 = vadd.f32 %v4628_v7, %v4627_v63  ;;  %v4670_v9 = vmax.f32 %v4662_v57, 0.0  ;;  %v7226_v48 = vld [vmem:[#allocation19 + $0x28] sm:$0xff] }
 0x691   :  { %v4668_v19 = vmax.f32 %v4660_v59, 0.0  ;;  %7230 = vmatpush.bf16.msra.mxu2 %v7227_v36  ;;  %4963 = vmatpush.bf16.msra.mxu1 %v7227_v36  ;;  %v7223_v59 = vld [vmem:[#allocation19 + $0x10] sm:$0xff] }
 0x692   :  { %v4630_v55 = vrot.slane %v4629_v42, 2  ;;  %v4672_v53 = vpack.c.bf16 %v4666_v41, %v4664_v28 }
 0x693   :  { %v4674_v44 = vpack.c.bf16 %v4670_v9, %v4668_v19 }
 0x694   :  { %v4631_v38 = vadd.f32 %v4630_v55, %v4629_v42  ;;  %4816 = vmatmul.bf16.vlgmr.msrb.gmra.mxu3 %v4672_v53 }
 0x695   :  { %7231 = vmatpush.bf16.msra.mxu2 %v7226_v48  ;;  %4964 = vmatpush.bf16.msra.mxu1 %v7226_v48 }
 0x696   :  { %v4632_v24 = vrot.slane %v4631_v38, 1 }
 0x698   :  { %v4633_v22 = vadd.f32 %v4632_v24, %v4631_v38  ;;  %v7224_v38 = vld [vmem:[#allocation19 + $0x18] sm:$0xff] }
 0x699   :  { %7232 = vmatpush.bf16.msra.mxu2 %v7225_v45  ;;  %4965 = vmatpush.bf16.msra.mxu1 %v7225_v45 }
 0x69a   :  { %v4635_v60 = vmul.f32 %v4633_v22, %v7789_v35 }
 0x69c   :  { %7297 = vrsqrt.f32 %v4635_v60  ;;  %vm4652_vm0 = vweird.f32 %v4635_v60 }
 0x69d   :  { %7233 = vmatpush.bf16.msra.mxu2 %v7224_v38  ;;  %4966 = vmatpush.bf16.msra.mxu1 %v7224_v38 }
 0x6a1   :  { %7234 = vmatpush.bf16.msra.mxu2 %v7223_v59  ;;  %4967 = vmatpush.bf16.msra.mxu1 %v7223_v59 }
 0x6a2   :  { %v7298_v20 = vpop.eup %7297 }
 0x6a3   :  { %v4647_v23 = vmul.f32 %v7298_v20, %v4635_v60  ;;  %vm4653_vm12 = vweird.f32 %v7298_v20 }
 0x6a4   :  { %4821 = vmatmul.bf16.gmra.mxu3 %v4674_v44  ;;  %vm4654_vm13 = vmor %vm4652_vm0, %vm4653_vm12 }
 0x6a5   :  { %v4648_v2 = vmul.f32 %v7298_v20, %v4647_v23 }
 0x6a7   :  { %v4649_v61 = vmul.f32 0.5, %v4648_v2  ;;  %v7221_v2 = vld [vmem:[#allocation19] sm:$0xff] }
 0x6a9   :  { %v4650_v12 = vsub.f32 1.5, %v4649_v61 }
 0x6ab   :  { %v4651_v25 = vmul.f32 %v7298_v20, %v4650_v12 }
 0x6ad   :  { %v4655_v40 = vsel %vm4654_vm13, %v7298_v20, %v4651_v25  ;;  %v7222_v20 = vld [vmem:[#allocation19 + $0x8] sm:$0xff] }
 0x6ae   :  { %v4657_v32 = vmul.f32 %v4655_v40, %v4601_v62  ;;  %v4659_v17 = vmul.f32 %v4655_v40, %v4603_v50  ;;  %v4663_v6 = vmul.f32 %v4655_v40, %v4607_v4  ;;  %v4661_v11 = vmul.f32 %v4655_v40, %v8850_v34  ;;  %7235 = vmatpush.bf16.msra.mxu2 %v7222_v20 }
 0x6af   :  { %4968 = vmatpush.bf16.msra.mxu1 %v7222_v20 }
 0x6b0   :  { %v4665_v16 = vmax.f32 %v4657_v32, 0.0  ;;  %v4667_v13 = vmax.f32 %v4659_v17, 0.0  ;;  %v4671_v46 = vmax.f32 %v4663_v6, 0.0  ;;  %v4669_v54 = vmax.f32 %v4661_v11, 0.0 }
 0x6b2   :  { %v4673_v15 = vpack.c.bf16 %v4667_v13, %v4665_v16  ;;  %v4675_v43 = vpack.c.bf16 %v4671_v46, %v4669_v54  ;;  %7236 = vmatpush.bf16.msra.mxu2 %v7221_v2 }
 0x6b3   :  { %4969 = vmatpush.bf16.msra.mxu1 %v7221_v2 }
 0x6b4   :  { %4835 = vmatmul.bf16.vlgmr.msra.gmra.mxu0 %v4673_v15 }
 0x6c4   :  { %4840 = vmatmul.bf16.gmra.mxu0 %v4675_v43 }
 0x717   :  { %v4817_v21 = vpop.f32.mrf.mxu3 }
 0x718   :  { %v4818_v52 = vadd.f32 %v7261_v26, %v4817_v21 }
 0x71f   :  { %v4819_v56 = vpop.f32.mrf.mxu3 }
 0x720   :  { %v4820_v31 = vadd.f32 %v7261_v26, %v4819_v56 }
 0x727   :  { %v4822_v3 = vpop.f32.mrf.mxu3 }
 0x728   :  { %v4823_v62 = vadd.f32 %v7261_v26, %v4822_v3 }
 0x72f   :  { %v4824_v30 = vpop.f32.mrf.mxu3 }
 0x730   :  { %v4825_v8 = vadd.f32 %v7261_v26, %v4824_v30 }
 0x731   :  { %v4836_v14 = vpop.f32.mrf.mxu0 }
 0x732   :  { %v4837_v34 = vadd.f32 %v4836_v14, %v4818_v52  ;;  %v7262_v52 = vld [vmem:[%s8893_s17] ss:$0 sm:$0xff]  ;;  %s7625_s17 = smov [#allocation20]  }
 0x733   :  { %s5035_s21 = sshll.u32 %s7625_s17, 4  ;;  %s5036_s21 = int_to_ptr.vmem [resolvable:$true] %s5035_s21 }
 0x739   :  { %v4838_v27 = vpop.f32.mrf.mxu0 }
 0x73a   :  { %v4839_v50 = vadd.f32 %v4838_v27, %v4820_v31 }
 0x73c   :  { %v4846_v18 = vadd.f32 %v4839_v50, %v4837_v34 }
 0x741   :  { %v4841_v49 = vpop.f32.mrf.mxu0 }
 0x742   :  { %v4842_v4 = vadd.f32 %v4841_v49, %v4823_v62 }
 0x744   :  { %v4847_v10 = vadd.f32 %v4846_v18, %v4842_v4 }
 0x749   :  { %v4843_v1 = vpop.f32.mrf.mxu0 }
 0x74a   :  { %v4844_v39 = vadd.f32 %v4843_v1, %v4825_v8 }
 0x74c   :  { %v4848_v0 = vadd.f32 %v4847_v10, %v4844_v39 }
 0x74e   :  { %v4849_v37 = vrot.slane %v4848_v0, 4 }
 0x750   :  { %v4850_v51 = vadd.f32 %v4849_v37, %v4848_v0 }
 0x752   :  { %v4851_v58 = vrot.slane %v4850_v51, 2 }
 0x754   :  { %v4852_v63 = vadd.f32 %v4851_v58, %v4850_v51 }
 0x756   :  { %v4853_v33 = vrot.slane %v4852_v63, 1 }
 0x758   :  { %v4854_v5 = vadd.f32 %v4853_v33, %v4852_v63 }
 0x75a   :  { %v4855_v7 = vmul.f32 %v4854_v5, %v7789_v35 }
 0x75c   :  { %v4856_v28 = vsub.f32 %v4837_v34, %v4855_v7  ;;  %v4857_v41 = vsub.f32 %v4839_v50, %v4855_v7  ;;  %v4858_v42 = vsub.f32 %v4842_v4, %v4855_v7  ;;  %v4859_v29 = vsub.f32 %v4844_v39, %v4855_v7 }
 0x75e   :  { %v4860_v55 = vmul.f32 %v4856_v28, %v4856_v28  ;;  %v4861_v53 = vmul.f32 %v4857_v41, %v4857_v41  ;;  %v4862_v24 = vmul.f32 %v4858_v42, %v4858_v42  ;;  %v4863_v57 = vmul.f32 %v4859_v29, %v4859_v29 }
 0x760   :  { %v4864_v22 = vadd.f32 %v4861_v53, %v4860_v55 }
 0x762   :  { %v4865_v60 = vadd.f32 %v4864_v22, %v4862_v24 }
 0x764   :  { %v4866_v9 = vadd.f32 %v4865_v60, %v4863_v57 }
 0x766   :  { %v4867_v19 = vrot.slane %v4866_v9, 4 }
 0x768   :  { %v4868_v44 = vadd.f32 %v4867_v19, %v4866_v9 }
 0x76a   :  { %v4869_v23 = vrot.slane %v4868_v44, 2 }
 0x76c   :  { %v4870_v61 = vadd.f32 %v4869_v23, %v4868_v44 }
 0x76e   :  { %v4871_v12 = vrot.slane %v4870_v61, 1 }
 0x770   :  { %v4872_v25 = vadd.f32 %v4871_v12, %v4870_v61 }
 0x772   :  { %v4873_v40 = vmul.f32 %v4872_v25, %v7789_v35 }
 0x774   :  { %7299 = vrsqrt.f32 %v4873_v40  ;;  %vm4880_vm15 = vweird.f32 %v4873_v40 }
 0x77a   :  { %v7300_v32 = vpop.eup %7299 }
 0x77b   :  { %v4875_v17 = vmul.f32 %v7300_v32, %v4873_v40  ;;  %vm4881_vm14 = vweird.f32 %v7300_v32 }
 0x77c   :  { %vm4882_vm1 = vmor %vm4880_vm15, %vm4881_vm14 }
 0x77d   :  { %v4876_v16 = vmul.f32 %v7300_v32, %v4875_v17 }
 0x77f   :  { %v4877_v13 = vmul.f32 0.5, %v4876_v16 }
 0x781   :  { %v4878_v15 = vsub.f32 1.5, %v4877_v13 }
 0x783   :  { %v4879_v6 = vmul.f32 %v7300_v32, %v4878_v15 }
 0x785   :  { %v4883_v11 = vsel %vm4882_vm1, %v7300_v32, %v4879_v6 }
 0x786   :  { %v4884_v46 = vmul.f32 %v4883_v11, %v4856_v28  ;;  %v4885_v54 = vmul.f32 %v4883_v11, %v4857_v41  ;;  %v4886_v43 = vmul.f32 %v4883_v11, %v4858_v42  ;;  %v4887_v21 = vmul.f32 %v4883_v11, %v4859_v29 }
 0x788   :  { %v4888_v56 = vmax.f32 %v4884_v46, 0.0  ;;  %v4889_v14 = vmax.f32 %v4885_v54, 0.0  ;;  %v4890_v27 = vmax.f32 %v4886_v43, 0.0  ;;  %v4891_v3 = vmax.f32 %v4887_v21, 0.0 }
 0x78a   :  { %v4893_v26 = vpack.c.bf16 %v4891_v3, %v4890_v27  ;;  %v4892_v49 = vpack.c.bf16 %v4889_v14, %v4888_v56 }
 0x78c   :  { %4970 = vmatmul.bf16.vlgmr.msra.gmra.mxu1 %v4892_v49  ;;  %4975 = vmatmul.bf16.vlgmr.msra.gmra.mxu2 %v4893_v26 }
 0x809   :  { %v4971_v31 = vpop.f32.mrf.mxu1 }
 0x80a   :  { %v4972_v30 = vadd.f32 %v7262_v52, %v4971_v31 }
 0x80f   :  { %v4976_v62 = vpop.f32.mrf.mxu2 }
 0x810   :  { %v4977_v8 = vadd.f32 %v7262_v52, %v4976_v62 }
 0x811   :  { %v4973_v50 = vpop.f32.mrf.mxu1 }
 0x812   :  { %v4974_v34 = vadd.f32 %v7262_v52, %v4973_v50 }
 0x814   :  { %v4981_v4 = vadd.f32 %v4974_v34, %v4972_v30 }
 0x816   :  { %v4982_v10 = vadd.f32 %v4981_v4, %v4977_v8 }
 0x817   :  { %v4978_v18 = vpop.f32.mrf.mxu2 }
 0x818   :  { %v4979_v1 = vadd.f32 %v7262_v52, %v4978_v18 }
 0x81a   :  { %v4983_v39 = vadd.f32 %v4982_v10, %v4979_v1 }
 0x81c   :  { %v4984_v0 = vrot.slane %v4983_v39, 4 }
 0x81e   :  { %v4985_v37 = vadd.f32 %v4984_v0, %v4983_v39 }
 0x820   :  { %v4986_v47 = vrot.slane %v4985_v37, 2 }
 0x822   :  { %v4987_v51 = vadd.f32 %v4986_v47, %v4985_v37 }
 0x824   :  { %v4988_v58 = vrot.slane %v4987_v51, 1 }
 0x826   :  { %v4989_v36 = vadd.f32 %v4988_v58, %v4987_v51 }
 0x828   :  { %v4990_v63 = vmul.f32 %v4989_v36, %v7789_v35 }
 0x82a   :  { %v4991_v33 = vsub.f32 %v4972_v30, %v4990_v63  ;;  %v4992_v48 = vsub.f32 %v4974_v34, %v4990_v63  ;;  %v4993_v5 = vsub.f32 %v4977_v8, %v4990_v63  ;;  %v4994_v7 = vsub.f32 %v4979_v1, %v4990_v63 }
 0x82c   :  { %v4995_v45 = vmul.f32 %v4991_v33, %v4991_v33  ;;  %v4996_v28 = vmul.f32 %v4992_v48, %v4992_v48  ;;  %v4997_v41 = vmul.f32 %v4993_v5, %v4993_v5  ;;  %v4998_v29 = vmul.f32 %v4994_v7, %v4994_v7 }
 0x82e   :  { %v4999_v42 = vadd.f32 %v4996_v28, %v4995_v45 }
 0x830   :  { %v5000_v55 = vadd.f32 %v4999_v42, %v4997_v41 }
 0x832   :  { %v5001_v53 = vadd.f32 %v5000_v55, %v4998_v29 }
 0x834   :  { %v5002_v38 = vrot.slane %v5001_v53, 4 }
 0x836   :  { %v5003_v24 = vadd.f32 %v5002_v38, %v5001_v53 }
 0x838   :  { %v5004_v22 = vrot.slane %v5003_v24, 2 }
 0x83a   :  { %v5005_v57 = vadd.f32 %v5004_v22, %v5003_v24 }
 0x83c   :  { %v5006_v60 = vrot.slane %v5005_v57, 1 }
 0x83e   :  { %v5007_v59 = vadd.f32 %v5006_v60, %v5005_v57 }
 0x840   :  { %v5008_v9 = vmul.f32 %v5007_v59, %v7789_v35 }
 0x842   :  { %7301 = vrsqrt.f32 %v5008_v9  ;;  %vm5015_vm4 = vweird.f32 %v5008_v9 }
 0x848   :  { %v7302_v19 = vpop.eup %7301 }
 0x849   :  { %v5010_v20 = vmul.f32 %v7302_v19, %v5008_v9  ;;  %vm5016_vm3 = vweird.f32 %v7302_v19 }
 0x84a   :  { %vm5017_vm5 = vmor %vm5015_vm4, %vm5016_vm3 }
 0x84b   :  { %v5011_v44 = vmul.f32 %v7302_v19, %v5010_v20 }
 0x84d   :  { %v5012_v23 = vmul.f32 0.5, %v5011_v44 }
 0x84f   :  { %v5013_v2 = vsub.f32 1.5, %v5012_v23 }
 0x851   :  { %v5014_v61 = vmul.f32 %v7302_v19, %v5013_v2 }
 0x853   :  { %v5018_v12 = vsel %vm5017_vm5, %v7302_v19, %v5014_v61 }
 0x854   :  { %v5019_v25 = vmul.f32 %v5018_v12, %v4991_v33  ;;  %v5020_v40 = vmul.f32 %v5018_v12, %v4992_v48  ;;  %v5021_v32 = vmul.f32 %v5018_v12, %v4993_v5  ;;  %v5022_v17 = vmul.f32 %v5018_v12, %v4994_v7 }
 0x856   :  { %v5023_v16 = vmax.f32 %v5019_v25, 0.0  ;;  %v5024_v13 = vmax.f32 %v5020_v40, 0.0  ;;  %v5026_v15 = vmax.f32 %v5022_v17, 0.0  ;;  %v5025_v35 = vmax.f32 %v5021_v32, 0.0 }
 0x858   :  { %5030 = vst [vmem:[#allocation20 + $0x18] sm:$0xff] %v5026_v15 }
 0x859   :  { %5027 = vst [vmem:[#allocation20] sm:$0xff] %v5023_v16 }
 0x85a   :  { %5028 = vst [vmem:[#allocation20 + $0x8] sm:$0xff] %v5024_v13 }
 0x85b   :  { %5029 = vst [vmem:[#allocation20 + $0x10] sm:$0xff] %v5025_v35 }
 0x85c   :  { %5043 = dma.vmem_to_hbm [thread:$0]  %s5036_s21, 512, %s5038_s26, [#allocation4], %s7621_s19, %s7621_s19, %s7622_s9  }
 0x85d   :  { %7603 = dma.done.wait [#allocation4], 512  }
 0x85e   :  { %7604 = vsyncadd [#allocation4], 4294966784 }
 0x85f   :  { %5048 = vsyncpa [#allocation3], 1 }
 0x860   :  { %5049 = vsyncpa [#allocation6], 1 }
 0x861   :  { %5050 = vsyncpa [#allocation9], 1 }
 0x862   :  { %5051 = vsyncpa [#allocation12], 1 }
 0x863   :  { %5052 = vsyncpa [#allocation15], 1 }
 0x864   :  { %5053 = vsyncpa [#allocation18], 1 }
 0x865   :  { %5054 = vsyncpa [#allocation4], 1 }

</bundles_post_ra>
